<compile_context>
chip_gen: v5e
topology: v5e:2x2
jax: 0.10.0
libtpu: 0.0.40
codegen_flags: <defaults>
</compile_context>

<pallas_src>
import functools

import jax
import jax.numpy as jnp
from jax import lax
from jax.experimental import pallas as pl
from jax.experimental.pallas import tpu as pltpu


# --------------------------------------------------------------------------------------
# Host-side weight builders (pair-layout conv taps, BN scales folded into columns).
# --------------------------------------------------------------------------------------
def _fold_bn(gamma, beta, mean, var, eps=1e-5):
    s = gamma / jnp.sqrt(var + eps)
    return s.astype(jnp.float32), (beta - mean * s).astype(jnp.float32)


def _pair_conv_taps(w_hwio, col_scale, cin, cout):
    """3x3 stride-1 conv in column-pair layout -> (9, 2*cin, 2*cout), tap = dy*3 + pj."""
    w = w_hwio * col_scale[None, None, None, :]
    wp = jnp.zeros((3, 3, 2 * cin, 2 * cout), jnp.float32)
    for s in range(2):            # output column slot within a pair
        for dx in range(3):       # original kernel column tap
            pj = 1 + (s + dx - 1) // 2          # input pair offset (0..2)
            slot = (s + dx + 1) % 2             # input column slot within that pair
            wp = wp.at[:, pj, slot * cin:(slot + 1) * cin,
                       s * cout:(s + 1) * cout].add(w[:, dx])
    return wp.reshape(9, 2 * cin, 2 * cout)


def _stride2_conv_taps(w_hwio, col_scale, c):
    """3x3 stride-2 conv: pair-layout input -> plain (ho,wo) output.

    Returns (6, 2*c, c), tap = dy*2 + po.  dx=0 -> (po=0, slot=1); dx=1 -> (1,0);
    dx=2 -> (1,1)."""
    w = w_hwio * col_scale[None, None, None, :]
    wp = jnp.zeros((3, 2, 2 * c, c), jnp.float32)
    for dx, (po, slot) in {0: (0, 1), 1: (1, 0), 2: (1, 1)}.items():
        wp = wp.at[:, po, slot * c:(slot + 1) * c, :].add(w[:, dx])
    return wp.reshape(6, 2 * c, c)


def _block_diag_pair(w2d, cin, cout):
    """1x1 stride-1 conv in pair layout: block-diagonal (2*cin, 2*cout)."""
    wp = jnp.zeros((2 * cin, 2 * cout), jnp.float32)
    for s in range(2):
        wp = wp.at[s * cin:(s + 1) * cin, s * cout:(s + 1) * cout].set(w2d)
    return wp


# --------------------------------------------------------------------------------------
# Kernel
# --------------------------------------------------------------------------------------
def bottleneck_kernel(x_ref, w1p_ref, w2p_ref, wsc_ref, bn_in_ref, bn_out_ref,
                      o_ref, pad1_ref, pad2_ref, *,
                      H, Wh, Cin, Cout, stride, Ho, Wo):
    f32 = jnp.float32
    bf = pad1_ref.dtype                      # bf16 MXU operand dtype

    s1 = bn_in_ref[0:1, :]                   # (1, 2*Cin)  BN1 scale (pair-tiled)
    b1 = bn_in_ref[1:2, :]                   # (1, 2*Cin)  BN1 bias
    b2 = bn_out_ref[0:1, :]                  # (1, 2*Cout) BN2 bias (scale folded in w1)
    alpha = bn_out_ref[1:2, :]               # (1, 2*Cout) PReLU slope
    bias = bn_out_ref[2:3, :]                # (1, 2*Cout) combined b3 + bsc

    # ---------- BN1 (f32 VPU) + zero-pad into pair-layout scratch ----------
    xp = x_ref[0]                                              # (H, Wh, 2*Cin) bf16
    y = xp.astype(f32) * s1 + b1
    pad1_ref[...] = jnp.zeros(pad1_ref.shape, bf)              # bulk halo zero (cheap)
    pad1_ref[1:H + 1, 1:Wh + 1, :] = y.astype(bf)

    # ---------- conv1: 3x3, stride 1 -> 9 accumulated pair-tap matmuls ----------
    acc1 = jnp.zeros((H * Wh, 2 * Cout), f32)
    for dy in range(3):
        for pj in range(3):
            lhs = pad1_ref[dy:dy + H, pj:pj + Wh, :].reshape(H * Wh, 2 * Cin)
            acc1 = acc1 + jnp.dot(lhs, w1p_ref[dy * 3 + pj],
                                  preferred_element_type=f32)

    # ---------- BN2 bias + PReLU (per-channel, f32) ----------
    t = acc1 + b2
    t = jnp.where(t > 0, t, t * alpha)

    # ---------- pad PReLU output into pair-layout scratch for conv2 ----------
    pad2_ref[...] = jnp.zeros(pad2_ref.shape, bf)
    pad2_ref[1:H + 1, 1:Wh + 1, :] = t.reshape(H, Wh, 2 * Cout).astype(bf)

    if stride == 1:
        # ---------- conv2: same pair-conv structure as conv1 ----------
        acc2 = jnp.zeros((H * Wh, 2 * Cout), f32)
        for dy in range(3):
            for pj in range(3):
                lhs = pad2_ref[dy:dy + H, pj:pj + Wh, :].reshape(H * Wh, 2 * Cout)
                acc2 = acc2 + jnp.dot(lhs, w2p_ref[dy * 3 + pj],
                                      preferred_element_type=f32)
        # shortcut: 1x1 stride-1 conv on raw x (block-diagonal pair weights)
        sc = jnp.dot(xp.reshape(H * Wh, 2 * Cin), wsc_ref[...],
                     preferred_element_type=f32)
        out = acc2 + sc + bias
        o_ref[0] = out.reshape(H, Wh, 2 * Cout).astype(o_ref.dtype)
    else:
        # ---------- conv2: 3x3, stride 2 -> 6 taps ----------
        # vertical stride:   leading-dim reshape (layout-free)
        # horizontal stride: contiguous pair slice; slot selection folded into weights
        acc2 = jnp.zeros((Ho * Wo, Cout), f32)
        for dy in range(3):
            for po in range(2):
                v = pad2_ref[dy:dy + 2 * Ho, po:po + Wo, :]        # (2*Ho, Wo, 2*Cout)
                v = v.reshape(Ho, 2, Wo, 2 * Cout)[:, 0]           # keep even rows
                acc2 = acc2 + jnp.dot(v.reshape(Ho * Wo, 2 * Cout),
                                      w2p_ref[dy * 2 + po],
                                      preferred_element_type=f32)
        # shortcut: 1x1 stride-2 conv on raw x; even columns = slot-0 lanes of xp
        xs = xp.reshape(Ho, 2, Wh, 2 * Cin)[:, 0][:, :, 0:Cin]     # (Ho, Wo, Cin)
        sc = jnp.dot(xs.reshape(Ho * Wo, Cin), wsc_ref[...],
                     preferred_element_type=f32)
        out = acc2 + sc + bias[:, 0:Cout]
        o_ref[0] = out.reshape(Ho, Wo, Cout).astype(o_ref.dtype)


# --------------------------------------------------------------------------------------
# Wrapper
# --------------------------------------------------------------------------------------
def bottleneck_forward(x_nchw, params, *, stride):
    N, Cin, H, W = x_nchw.shape
    Cout = params["w1"].shape[0]
    assert stride in (1, 2)
    assert W % 2 == 0, "column-pair layout requires even W"
    if stride == 2:
        assert H % 2 == 0, "stride-2 path requires even H"
    Ho = (H + 2 - 3) // stride + 1
    Wo = (W + 2 - 3) // stride + 1
    Wh = W // 2
    if stride == 2:
        assert Ho * 2 == H and Wo == Wh

    # NCHW -> NHWC -> column-pair layout; cast to bf16 to halve the activation DMA.
    x = jnp.transpose(x_nchw, (0, 2, 3, 1)).reshape(N, H, Wh, 2 * Cin).astype(jnp.bfloat16)

    # Fold eval-mode BN into scales/biases; scales go into the bf16 weights host-side.
    s1, b1 = _fold_bn(*params["bn1"])
    s2, b2 = _fold_bn(*params["bn2"])
    s3, b3 = _fold_bn(*params["bn3"])
    ssc, bsc = _fold_bn(*params["bnsc"])
    alpha = params["prelu"].astype(jnp.float32)

    w1_hwio = jnp.transpose(params["w1"], (2, 3, 1, 0)).astype(jnp.float32)   # (3,3,Cin,Cout)
    w2_hwio = jnp.transpose(params["w2"], (2, 3, 1, 0)).astype(jnp.float32)   # (3,3,Cout,Cout)
    wsc_2d = jnp.transpose(params["wsc"], (2, 3, 1, 0))[0, 0].astype(jnp.float32)  # (Cin,Cout)

    w1p = _pair_conv_taps(w1_hwio, s2, Cin, Cout).astype(jnp.bfloat16)        # (9,2Cin,2Cout)
    if stride == 1:
        w2p = _pair_conv_taps(w2_hwio, s3, Cout, Cout).astype(jnp.bfloat16)   # (9,2Cout,2Cout)
        wscp = _block_diag_pair(wsc_2d * ssc[None, :], Cin, Cout).astype(jnp.bfloat16)
        out_block = (1, H, Wh, 2 * Cout)
        out_shape = (N, H, Wh, 2 * Cout)
    else:
        w2p = _stride2_conv_taps(w2_hwio, s3, Cout).astype(jnp.bfloat16)      # (6,2Cout,Cout)
        wscp = (wsc_2d * ssc[None, :]).astype(jnp.bfloat16)                   # (Cin,Cout)
        out_block = (1, Ho, Wo, Cout)
        out_shape = (N, Ho, Wo, Cout)

    bn_in = jnp.stack([jnp.tile(s1, 2), jnp.tile(b1, 2)])                     # (2, 2*Cin)
    bn_out = jnp.stack([jnp.tile(b2, 2), jnp.tile(alpha, 2),
                        jnp.tile(b3 + bsc, 2)])                               # (3, 2*Cout)

    kernel = functools.partial(bottleneck_kernel, H=H, Wh=Wh, Cin=Cin, Cout=Cout,
                               stride=stride, Ho=Ho, Wo=Wo)

    def full(shape):
        return pl.BlockSpec(shape, lambda b: (0,) * len(shape))

    out = pl.pallas_call(
        kernel,
        out_shape=jax.ShapeDtypeStruct(out_shape, jnp.float32),
        grid_spec=pltpu.PrefetchScalarGridSpec(
            num_scalar_prefetch=0,
            grid=(N,),
            in_specs=[
                pl.BlockSpec((1, H, Wh, 2 * Cin), lambda b: (b, 0, 0, 0)),    # x (pair, bf16)
                full(w1p.shape),                                              # conv1 taps
                full(w2p.shape),                                              # conv2 taps
                full(wscp.shape),                                             # shortcut 1x1
                full(bn_in.shape),                                            # s1, b1
                full(bn_out.shape),                                           # b2, alpha, b3+bsc
            ],
            out_specs=pl.BlockSpec(out_block, lambda b: (b, 0, 0, 0)),
            scratch_shapes=[
                pltpu.VMEM((H + 2, Wh + 2, 2 * Cin), jnp.bfloat16),           # padded BN1(x)
                pltpu.VMEM((stride * Ho + 2, Wh + 2, 2 * Cout), jnp.bfloat16),  # padded PReLU out
            ],
        ),
        # No vmem_limit override: scratch is tiny and we must not pin v7x's full 64 MiB.
        compiler_params=pltpu.CompilerParams(
            dimension_semantics=("parallel",),
        ),
    )(x, w1p, w2p, wscp, bn_in, bn_out)

    if stride == 1:
        out = out.reshape(N, H, W, Cout)       # pair layout -> plain NHWC (free reshape)
    return jnp.transpose(out, (0, 3, 1, 2))    # back to NCHW


# --------------------------------------------------------------------------------------
# Pure-JAX reference (eval-mode BN, f32 HIGHEST precision)
# --------------------------------------------------------------------------------------
def ref_forward(x_nchw, params, *, stride):
    dn = ("NHWC", "HWIO", "NHWC")
    hp = lax.Precision.HIGHEST
    x = jnp.transpose(x_nchw, (0, 2, 3, 1)).astype(jnp.float32)
    w1 = jnp.transpose(params["w1"], (2, 3, 1, 0)).astype(jnp.float32)
    w2 = jnp.transpose(params["w2"], (2, 3, 1, 0)).astype(jnp.float32)
    wsc = jnp.transpose(params["wsc"], (2, 3, 1, 0)).astype(jnp.float32)
    s1, b1 = _fold_bn(*params["bn1"])
    s2, b2 = _fold_bn(*params["bn2"])
    s3, b3 = _fold_bn(*params["bn3"])
    ssc, bsc = _fold_bn(*params["bnsc"])
    alpha = params["prelu"].astype(jnp.float32)

    y = x * s1 + b1
    y = lax.conv_general_dilated(y, w1, (1, 1), [(1, 1), (1, 1)],
                                 dimension_numbers=dn, precision=hp)
    y = y * s2 + b2
    y = jnp.where(y > 0, y, y * alpha)
    y = lax.conv_general_dilated(y, w2, (stride, stride), [(1, 1), (1, 1)],
                                 dimension_numbers=dn, precision=hp)
    y = y * s3 + b3
    sc = lax.conv_general_dilated(x, wsc, (stride, stride), [(0, 0), (0, 0)],
                                  dimension_numbers=dn, precision=hp)
    sc = sc * ssc + bsc
    return jnp.transpose(y + sc, (0, 3, 1, 2))


if __name__ == "__main__":
    key = jax.random.PRNGKey(0)
    N, Cin, Cout, H, W, stride = 2, 4, 8, 16, 16, 2   # dim_match=False -> conv shortcut
    ks = jax.random.split(key, 10)

    def bn_params(k, c):
        k1, k2, k3, k4 = jax.random.split(k, 4)
        gamma = jax.random.uniform(k1, (c,), minval=0.5, maxval=1.5)
        beta = 0.1 * jax.random.normal(k2, (c,))
        mean = 0.1 * jax.random.normal(k3, (c,))
        var = jax.random.uniform(k4, (c,), minval=0.5, maxval=1.5)
        return (gamma, beta, mean, var)

    params = dict(
        w1=0.1 * jax.random.normal(ks[0], (Cout, Cin, 3, 3), jnp.float32),
        w2=0.1 * jax.random.normal(ks[1], (Cout, Cout, 3, 3), jnp.float32),
        wsc=0.1 * jax.random.normal(ks[2], (Cout, Cin, 1, 1), jnp.float32),
        bn1=bn_params(ks[3], Cin),
        bn2=bn_params(ks[4], Cout),
        bn3=bn_params(ks[5], Cout),
        bnsc=bn_params(ks[6], Cout),
        prelu=jnp.full((Cout,), 0.25, jnp.float32),   # nn.PReLU default init
    )
    x = jax.random.normal(ks[7], (N, Cin, H, W), jnp.float32)

    out = jax.block_until_ready(bottleneck_forward(x, params, stride=stride))
    ref = ref_forward(x, params, stride=stride)

    assert out.shape == (N, Cout, H // stride, W // stride)
    # bf16 MXU operands / bf16 activation DMA (f32 accumulation) -> small drift vs ref
    if not jnp.allclose(out, ref, atol=5e-2, rtol=5e-2):
        raise AssertionError(
            "Pallas kernel output mismatch vs JAX reference; max abs diff = "
            f"{float(jnp.max(jnp.abs(out - ref)))}")
    print("KERNEL_OK")
</pallas_src>

<mosaic_0001>
module attributes {stable_mosaic.version = 11 : i64} {
  func.func @bottleneck_kernel(%arg0: i32, %arg1: memref<1x16x8x8xbf16, #tpu.memory_space<vmem>>, %arg2: memref<9x8x16xbf16, #tpu.memory_space<vmem>>, %arg3: memref<6x16x8xbf16, #tpu.memory_space<vmem>>, %arg4: memref<4x8xbf16, #tpu.memory_space<vmem>>, %arg5: memref<2x8xf32, #tpu.memory_space<vmem>>, %arg6: memref<3x16xf32, #tpu.memory_space<vmem>>, %arg7: memref<1x8x8x8xf32, #tpu.memory_space<vmem>>, %arg8: memref<18x10x8xbf16, #tpu.memory_space<vmem>>, %arg9: memref<18x10x16xbf16, #tpu.memory_space<vmem>>) attributes {dimension_semantics = [#tpu.dimension_semantics<parallel>], iteration_bounds = array<i64: 2>, scalar_prefetch = 0 : i64, scratch_operands = 2 : i64, tpu.core_type = #tpu.core_type<tc>, window_params = [{transform_indices = @transform_0, window_bounds = array<i64: 1, 16, 8, 8>}, {pipeline_mode = #tpu.pipeline_mode<synchronous>, transform_indices = @transform_1, window_bounds = array<i64: 9, 8, 16>}, {pipeline_mode = #tpu.pipeline_mode<synchronous>, transform_indices = @transform_2, window_bounds = array<i64: 6, 16, 8>}, {pipeline_mode = #tpu.pipeline_mode<synchronous>, transform_indices = @transform_3, window_bounds = array<i64: 4, 8>}, {pipeline_mode = #tpu.pipeline_mode<synchronous>, transform_indices = @transform_4, window_bounds = array<i64: 2, 8>}, {pipeline_mode = #tpu.pipeline_mode<synchronous>, transform_indices = @transform_5, window_bounds = array<i64: 3, 16>}, {transform_indices = @transform_6, window_bounds = array<i64: 1, 8, 8, 8>}]} {
    %c0 = arith.constant 0 : index
    %c0_0 = arith.constant 0 : index
    %0 = vector.load %arg5[%c0, %c0_0] : memref<2x8xf32, #tpu.memory_space<vmem>>, vector<1x8xf32>
    %c1 = arith.constant 1 : index
    %c0_1 = arith.constant 0 : index
    %1 = vector.load %arg5[%c1, %c0_1] : memref<2x8xf32, #tpu.memory_space<vmem>>, vector<1x8xf32>
    %c0_2 = arith.constant 0 : index
    %c0_3 = arith.constant 0 : index
    %2 = vector.load %arg6[%c0_2, %c0_3] : memref<3x16xf32, #tpu.memory_space<vmem>>, vector<1x16xf32>
    %c1_4 = arith.constant 1 : index
    %c0_5 = arith.constant 0 : index
    %3 = vector.load %arg6[%c1_4, %c0_5] : memref<3x16xf32, #tpu.memory_space<vmem>>, vector<1x16xf32>
    %c2 = arith.constant 2 : index
    %c0_6 = arith.constant 0 : index
    %4 = vector.load %arg6[%c2, %c0_6] : memref<3x16xf32, #tpu.memory_space<vmem>>, vector<1x16xf32>
    %c0_7 = arith.constant 0 : index
    %c0_8 = arith.constant 0 : index
    %c0_9 = arith.constant 0 : index
    %c0_10 = arith.constant 0 : index
    %5 = vector.load %arg1[%c0_7, %c0_8, %c0_9, %c0_10] : memref<1x16x8x8xbf16, #tpu.memory_space<vmem>>, vector<1x16x8x8xbf16>
    %6 = vector.shape_cast %5 : vector<1x16x8x8xbf16> to vector<16x8x8xbf16>
    %7 = arith.extf %6 : vector<16x8x8xbf16> to vector<16x8x8xf32>
    %8 = vector.shape_cast %0 : vector<1x8xf32> to vector<1x1x8xf32>
    %9 = vector.broadcast %8 : vector<1x1x8xf32> to vector<16x8x8xf32>
    %10 = arith.mulf %7, %9 : vector<16x8x8xf32>
    %11 = vector.shape_cast %1 : vector<1x8xf32> to vector<1x1x8xf32>
    %12 = vector.broadcast %11 : vector<1x1x8xf32> to vector<16x8x8xf32>
    %13 = arith.addf %10, %12 : vector<16x8x8xf32>
    %cst = arith.constant 0.000000e+00 : bf16
    %14 = vector.broadcast %cst : bf16 to vector<18x10x8xbf16>
    %c0_11 = arith.constant 0 : index
    %c0_12 = arith.constant 0 : index
    %c0_13 = arith.constant 0 : index
    %15 = vector.load %arg8[%c0_11, %c0_12, %c0_13] : memref<18x10x8xbf16, #tpu.memory_space<vmem>>, vector<18x10x8xbf16>
    tpu.vector_store %arg8[%c0_11, %c0_12, %c0_13], %14 {strides = array<i32>} : memref<18x10x8xbf16, #tpu.memory_space<vmem>>, vector<18x10x8xbf16>,
    %16 = arith.truncf %13 : vector<16x8x8xf32> to vector<16x8x8xbf16>
    %c1_14 = arith.constant 1 : index
    %c1_15 = arith.constant 1 : index
    %c0_16 = arith.constant 0 : index
    %17 = vector.load %arg8[%c1_14, %c1_15, %c0_16] : memref<18x10x8xbf16, #tpu.memory_space<vmem>>, vector<16x8x8xbf16>
    tpu.vector_store %arg8[%c1_14, %c1_15, %c0_16], %16 {strides = array<i32>} : memref<18x10x8xbf16, #tpu.memory_space<vmem>>, vector<16x8x8xbf16>,
    %cst_17 = arith.constant 0.000000e+00 : f32
    %18 = vector.broadcast %cst_17 : f32 to vector<128x16xf32>
    %c0_18 = arith.constant 0 : index
    %c0_19 = arith.constant 0 : index
    %c0_20 = arith.constant 0 : index
    %19 = vector.load %arg8[%c0_18, %c0_19, %c0_20] : memref<18x10x8xbf16, #tpu.memory_space<vmem>>, vector<16x8x8xbf16>
    %20 = vector.shape_cast %19 : vector<16x8x8xbf16> to vector<128x8xbf16>
    %c0_21 = arith.constant 0 : index
    %c0_22 = arith.constant 0 : index
    %c0_23 = arith.constant 0 : index
    %21 = vector.load %arg2[%c0_21, %c0_22, %c0_23] : memref<9x8x16xbf16, #tpu.memory_space<vmem>>, vector<1x8x16xbf16>
    %22 = vector.shape_cast %21 : vector<1x8x16xbf16> to vector<8x16xbf16>
    %cst_24 = arith.constant dense<0.000000e+00> : vector<128x16xf32>
    %23 = tpu.matmul %20, %22, %cst_24 {dimension_numbers = #tpu.dot_dimension_numbers<[1], [0], [0], [1], [0, 0, 1, 1], [], []>} : vector<128x8xbf16>, vector<8x16xbf16>, vector<128x16xf32> -> vector<128x16xf32>
    %24 = arith.addf %18, %23 : vector<128x16xf32>
    %c0_25 = arith.constant 0 : index
    %c1_26 = arith.constant 1 : index
    %c0_27 = arith.constant 0 : index
    %25 = vector.load %arg8[%c0_25, %c1_26, %c0_27] : memref<18x10x8xbf16, #tpu.memory_space<vmem>>, vector<16x8x8xbf16>
    %26 = vector.shape_cast %25 : vector<16x8x8xbf16> to vector<128x8xbf16>
    %c1_28 = arith.constant 1 : index
    %c0_29 = arith.constant 0 : index
    %c0_30 = arith.constant 0 : index
    %27 = vector.load %arg2[%c1_28, %c0_29, %c0_30] : memref<9x8x16xbf16, #tpu.memory_space<vmem>>, vector<1x8x16xbf16>
    %28 = vector.shape_cast %27 : vector<1x8x16xbf16> to vector<8x16xbf16>
    %cst_31 = arith.constant dense<0.000000e+00> : vector<128x16xf32>
    %29 = tpu.matmul %26, %28, %cst_31 {dimension_numbers = #tpu.dot_dimension_numbers<[1], [0], [0], [1], [0, 0, 1, 1], [], []>} : vector<128x8xbf16>, vector<8x16xbf16>, vector<128x16xf32> -> vector<128x16xf32>
    %30 = arith.addf %24, %29 : vector<128x16xf32>
    %c0_32 = arith.constant 0 : index
    %c2_33 = arith.constant 2 : index
    %c0_34 = arith.constant 0 : index
    %31 = vector.load %arg8[%c0_32, %c2_33, %c0_34] : memref<18x10x8xbf16, #tpu.memory_space<vmem>>, vector<16x8x8xbf16>
    %32 = vector.shape_cast %31 : vector<16x8x8xbf16> to vector<128x8xbf16>
    %c2_35 = arith.constant 2 : index
    %c0_36 = arith.constant 0 : index
    %c0_37 = arith.constant 0 : index
    %33 = vector.load %arg2[%c2_35, %c0_36, %c0_37] : memref<9x8x16xbf16, #tpu.memory_space<vmem>>, vector<1x8x16xbf16>
    %34 = vector.shape_cast %33 : vector<1x8x16xbf16> to vector<8x16xbf16>
    %cst_38 = arith.constant dense<0.000000e+00> : vector<128x16xf32>
    %35 = tpu.matmul %32, %34, %cst_38 {dimension_numbers = #tpu.dot_dimension_numbers<[1], [0], [0], [1], [0, 0, 1, 1], [], []>} : vector<128x8xbf16>, vector<8x16xbf16>, vector<128x16xf32> -> vector<128x16xf32>
    %36 = arith.addf %30, %35 : vector<128x16xf32>
    %c1_39 = arith.constant 1 : index
    %c0_40 = arith.constant 0 : index
    %c0_41 = arith.constant 0 : index
    %37 = vector.load %arg8[%c1_39, %c0_40, %c0_41] : memref<18x10x8xbf16, #tpu.memory_space<vmem>>, vector<16x8x8xbf16>
    %38 = vector.shape_cast %37 : vector<16x8x8xbf16> to vector<128x8xbf16>
    %c3 = arith.constant 3 : index
    %c0_42 = arith.constant 0 : index
    %c0_43 = arith.constant 0 : index
    %39 = vector.load %arg2[%c3, %c0_42, %c0_43] : memref<9x8x16xbf16, #tpu.memory_space<vmem>>, vector<1x8x16xbf16>
    %40 = vector.shape_cast %39 : vector<1x8x16xbf16> to vector<8x16xbf16>
    %cst_44 = arith.constant dense<0.000000e+00> : vector<128x16xf32>
    %41 = tpu.matmul %38, %40, %cst_44 {dimension_numbers = #tpu.dot_dimension_numbers<[1], [0], [0], [1], [0, 0, 1, 1], [], []>} : vector<128x8xbf16>, vector<8x16xbf16>, vector<128x16xf32> -> vector<128x16xf32>
    %42 = arith.addf %36, %41 : vector<128x16xf32>
    %c1_45 = arith.constant 1 : index
    %c1_46 = arith.constant 1 : index
    %c0_47 = arith.constant 0 : index
    %43 = vector.load %arg8[%c1_45, %c1_46, %c0_47] : memref<18x10x8xbf16, #tpu.memory_space<vmem>>, vector<16x8x8xbf16>
    %44 = vector.shape_cast %43 : vector<16x8x8xbf16> to vector<128x8xbf16>
    %c4 = arith.constant 4 : index
    %c0_48 = arith.constant 0 : index
    %c0_49 = arith.constant 0 : index
    %45 = vector.load %arg2[%c4, %c0_48, %c0_49] : memref<9x8x16xbf16, #tpu.memory_space<vmem>>, vector<1x8x16xbf16>
    %46 = vector.shape_cast %45 : vector<1x8x16xbf16> to vector<8x16xbf16>
    %cst_50 = arith.constant dense<0.000000e+00> : vector<128x16xf32>
    %47 = tpu.matmul %44, %46, %cst_50 {dimension_numbers = #tpu.dot_dimension_numbers<[1], [0], [0], [1], [0, 0, 1, 1], [], []>} : vector<128x8xbf16>, vector<8x16xbf16>, vector<128x16xf32> -> vector<128x16xf32>
    %48 = arith.addf %42, %47 : vector<128x16xf32>
    %c1_51 = arith.constant 1 : index
    %c2_52 = arith.constant 2 : index
    %c0_53 = arith.constant 0 : index
    %49 = vector.load %arg8[%c1_51, %c2_52, %c0_53] : memref<18x10x8xbf16, #tpu.memory_space<vmem>>, vector<16x8x8xbf16>
    %50 = vector.shape_cast %49 : vector<16x8x8xbf16> to vector<128x8xbf16>
    %c5 = arith.constant 5 : index
    %c0_54 = arith.constant 0 : index
    %c0_55 = arith.constant 0 : index
    %51 = vector.load %arg2[%c5, %c0_54, %c0_55] : memref<9x8x16xbf16, #tpu.memory_space<vmem>>, vector<1x8x16xbf16>
    %52 = vector.shape_cast %51 : vector<1x8x16xbf16> to vector<8x16xbf16>
    %cst_56 = arith.constant dense<0.000000e+00> : vector<128x16xf32>
    %53 = tpu.matmul %50, %52, %cst_56 {dimension_numbers = #tpu.dot_dimension_numbers<[1], [0], [0], [1], [0, 0, 1, 1], [], []>} : vector<128x8xbf16>, vector<8x16xbf16>, vector<128x16xf32> -> vector<128x16xf32>
    %54 = arith.addf %48, %53 : vector<128x16xf32>
    %c2_57 = arith.constant 2 : index
    %c0_58 = arith.constant 0 : index
    %c0_59 = arith.constant 0 : index
    %55 = vector.load %arg8[%c2_57, %c0_58, %c0_59] : memref<18x10x8xbf16, #tpu.memory_space<vmem>>, vector<16x8x8xbf16>
    %56 = vector.shape_cast %55 : vector<16x8x8xbf16> to vector<128x8xbf16>
    %c6 = arith.constant 6 : index
    %c0_60 = arith.constant 0 : index
    %c0_61 = arith.constant 0 : index
    %57 = vector.load %arg2[%c6, %c0_60, %c0_61] : memref<9x8x16xbf16, #tpu.memory_space<vmem>>, vector<1x8x16xbf16>
    %58 = vector.shape_cast %57 : vector<1x8x16xbf16> to vector<8x16xbf16>
    %cst_62 = arith.constant dense<0.000000e+00> : vector<128x16xf32>
    %59 = tpu.matmul %56, %58, %cst_62 {dimension_numbers = #tpu.dot_dimension_numbers<[1], [0], [0], [1], [0, 0, 1, 1], [], []>} : vector<128x8xbf16>, vector<8x16xbf16>, vector<128x16xf32> -> vector<128x16xf32>
    %60 = arith.addf %54, %59 : vector<128x16xf32>
    %c2_63 = arith.constant 2 : index
    %c1_64 = arith.constant 1 : index
    %c0_65 = arith.constant 0 : index
    %61 = vector.load %arg8[%c2_63, %c1_64, %c0_65] : memref<18x10x8xbf16, #tpu.memory_space<vmem>>, vector<16x8x8xbf16>
    %62 = vector.shape_cast %61 : vector<16x8x8xbf16> to vector<128x8xbf16>
    %c7 = arith.constant 7 : index
    %c0_66 = arith.constant 0 : index
    %c0_67 = arith.constant 0 : index
    %63 = vector.load %arg2[%c7, %c0_66, %c0_67] : memref<9x8x16xbf16, #tpu.memory_space<vmem>>, vector<1x8x16xbf16>
    %64 = vector.shape_cast %63 : vector<1x8x16xbf16> to vector<8x16xbf16>
    %cst_68 = arith.constant dense<0.000000e+00> : vector<128x16xf32>
    %65 = tpu.matmul %62, %64, %cst_68 {dimension_numbers = #tpu.dot_dimension_numbers<[1], [0], [0], [1], [0, 0, 1, 1], [], []>} : vector<128x8xbf16>, vector<8x16xbf16>, vector<128x16xf32> -> vector<128x16xf32>
    %66 = arith.addf %60, %65 : vector<128x16xf32>
    %c2_69 = arith.constant 2 : index
    %c2_70 = arith.constant 2 : index
    %c0_71 = arith.constant 0 : index
    %67 = vector.load %arg8[%c2_69, %c2_70, %c0_71] : memref<18x10x8xbf16, #tpu.memory_space<vmem>>, vector<16x8x8xbf16>
    %68 = vector.shape_cast %67 : vector<16x8x8xbf16> to vector<128x8xbf16>
    %c8 = arith.constant 8 : index
    %c0_72 = arith.constant 0 : index
    %c0_73 = arith.constant 0 : index
    %69 = vector.load %arg2[%c8, %c0_72, %c0_73] : memref<9x8x16xbf16, #tpu.memory_space<vmem>>, vector<1x8x16xbf16>
    %70 = vector.shape_cast %69 : vector<1x8x16xbf16> to vector<8x16xbf16>
    %cst_74 = arith.constant dense<0.000000e+00> : vector<128x16xf32>
    %71 = tpu.matmul %68, %70, %cst_74 {dimension_numbers = #tpu.dot_dimension_numbers<[1], [0], [0], [1], [0, 0, 1, 1], [], []>} : vector<128x8xbf16>, vector<8x16xbf16>, vector<128x16xf32> -> vector<128x16xf32>
    %72 = arith.addf %66, %71 : vector<128x16xf32>
    %73 = vector.broadcast %2 : vector<1x16xf32> to vector<128x16xf32>
    %74 = arith.addf %72, %73 : vector<128x16xf32>
    %cst_75 = arith.constant 0.000000e+00 : f32
    %75 = vector.broadcast %cst_75 : f32 to vector<128x16xf32>
    %76 = arith.cmpf ogt, %74, %75 : vector<128x16xf32>
    %77 = vector.broadcast %3 : vector<1x16xf32> to vector<128x16xf32>
    %78 = arith.mulf %74, %77 : vector<128x16xf32>
    %79 = arith.select %76, %74, %78 : vector<128x16xi1>, vector<128x16xf32>
    %cst_76 = arith.constant 0.000000e+00 : bf16
    %80 = vector.broadcast %cst_76 : bf16 to vector<18x10x16xbf16>
    %c0_77 = arith.constant 0 : index
    %c0_78 = arith.constant 0 : index
    %c0_79 = arith.constant 0 : index
    %81 = vector.load %arg9[%c0_77, %c0_78, %c0_79] : memref<18x10x16xbf16, #tpu.memory_space<vmem>>, vector<18x10x16xbf16>
    tpu.vector_store %arg9[%c0_77, %c0_78, %c0_79], %80 {strides = array<i32>} : memref<18x10x16xbf16, #tpu.memory_space<vmem>>, vector<18x10x16xbf16>,
    %82 = vector.shape_cast %79 : vector<128x16xf32> to vector<16x8x16xf32>
    %83 = arith.truncf %82 : vector<16x8x16xf32> to vector<16x8x16xbf16>
    %c1_80 = arith.constant 1 : index
    %c1_81 = arith.constant 1 : index
    %c0_82 = arith.constant 0 : index
    %84 = vector.load %arg9[%c1_80, %c1_81, %c0_82] : memref<18x10x16xbf16, #tpu.memory_space<vmem>>, vector<16x8x16xbf16>
    tpu.vector_store %arg9[%c1_80, %c1_81, %c0_82], %83 {strides = array<i32>} : memref<18x10x16xbf16, #tpu.memory_space<vmem>>, vector<16x8x16xbf16>,
    %cst_83 = arith.constant 0.000000e+00 : f32
    %85 = vector.broadcast %cst_83 : f32 to vector<64x8xf32>
    %c0_84 = arith.constant 0 : index
    %c0_85 = arith.constant 0 : index
    %c0_86 = arith.constant 0 : index
    %86 = vector.load %arg9[%c0_84, %c0_85, %c0_86] : memref<18x10x16xbf16, #tpu.memory_space<vmem>>, vector<16x8x16xbf16>
    %87 = vector.shape_cast %86 : vector<16x8x16xbf16> to vector<8x2x8x16xbf16>
    %88 = vector.extract_strided_slice %87 {offsets = [0, 0, 0, 0], sizes = [8, 1, 8, 16], strides = [1, 1, 1, 1]} : vector<8x2x8x16xbf16> to vector<8x1x8x16xbf16>
    %89 = vector.shape_cast %88 : vector<8x1x8x16xbf16> to vector<8x8x16xbf16>
    %90 = vector.shape_cast %89 : vector<8x8x16xbf16> to vector<64x16xbf16>
    %c0_87 = arith.constant 0 : index
    %c0_88 = arith.constant 0 : index
    %c0_89 = arith.constant 0 : index
    %91 = vector.load %arg3[%c0_87, %c0_88, %c0_89] : memref<6x16x8xbf16, #tpu.memory_space<vmem>>, vector<1x16x8xbf16>
    %92 = vector.shape_cast %91 : vector<1x16x8xbf16> to vector<16x8xbf16>
    %cst_90 = arith.constant dense<0.000000e+00> : vector<64x8xf32>
    %93 = tpu.matmul %90, %92, %cst_90 {dimension_numbers = #tpu.dot_dimension_numbers<[1], [0], [0], [1], [0, 0, 1, 1], [], []>} : vector<64x16xbf16>, vector<16x8xbf16>, vector<64x8xf32> -> vector<64x8xf32>
    %94 = arith.addf %85, %93 : vector<64x8xf32>
    %c0_91 = arith.constant 0 : index
    %c1_92 = arith.constant 1 : index
    %c0_93 = arith.constant 0 : index
    %95 = vector.load %arg9[%c0_91, %c1_92, %c0_93] : memref<18x10x16xbf16, #tpu.memory_space<vmem>>, vector<16x8x16xbf16>
    %96 = vector.shape_cast %95 : vector<16x8x16xbf16> to vector<8x2x8x16xbf16>
    %97 = vector.extract_strided_slice %96 {offsets = [0, 0, 0, 0], sizes = [8, 1, 8, 16], strides = [1, 1, 1, 1]} : vector<8x2x8x16xbf16> to vector<8x1x8x16xbf16>
    %98 = vector.shape_cast %97 : vector<8x1x8x16xbf16> to vector<8x8x16xbf16>
    %99 = vector.shape_cast %98 : vector<8x8x16xbf16> to vector<64x16xbf16>
    %c1_94 = arith.constant 1 : index
    %c0_95 = arith.constant 0 : index
    %c0_96 = arith.constant 0 : index
    %100 = vector.load %arg3[%c1_94, %c0_95, %c0_96] : memref<6x16x8xbf16, #tpu.memory_space<vmem>>, vector<1x16x8xbf16>
    %101 = vector.shape_cast %100 : vector<1x16x8xbf16> to vector<16x8xbf16>
    %cst_97 = arith.constant dense<0.000000e+00> : vector<64x8xf32>
    %102 = tpu.matmul %99, %101, %cst_97 {dimension_numbers = #tpu.dot_dimension_numbers<[1], [0], [0], [1], [0, 0, 1, 1], [], []>} : vector<64x16xbf16>, vector<16x8xbf16>, vector<64x8xf32> -> vector<64x8xf32>
    %103 = arith.addf %94, %102 : vector<64x8xf32>
    %c1_98 = arith.constant 1 : index
    %c0_99 = arith.constant 0 : index
    %c0_100 = arith.constant 0 : index
    %104 = vector.load %arg9[%c1_98, %c0_99, %c0_100] : memref<18x10x16xbf16, #tpu.memory_space<vmem>>, vector<16x8x16xbf16>
    %105 = vector.shape_cast %104 : vector<16x8x16xbf16> to vector<8x2x8x16xbf16>
    %106 = vector.extract_strided_slice %105 {offsets = [0, 0, 0, 0], sizes = [8, 1, 8, 16], strides = [1, 1, 1, 1]} : vector<8x2x8x16xbf16> to vector<8x1x8x16xbf16>
    %107 = vector.shape_cast %106 : vector<8x1x8x16xbf16> to vector<8x8x16xbf16>
    %108 = vector.shape_cast %107 : vector<8x8x16xbf16> to vector<64x16xbf16>
    %c2_101 = arith.constant 2 : index
    %c0_102 = arith.constant 0 : index
    %c0_103 = arith.constant 0 : index
    %109 = vector.load %arg3[%c2_101, %c0_102, %c0_103] : memref<6x16x8xbf16, #tpu.memory_space<vmem>>, vector<1x16x8xbf16>
    %110 = vector.shape_cast %109 : vector<1x16x8xbf16> to vector<16x8xbf16>
    %cst_104 = arith.constant dense<0.000000e+00> : vector<64x8xf32>
    %111 = tpu.matmul %108, %110, %cst_104 {dimension_numbers = #tpu.dot_dimension_numbers<[1], [0], [0], [1], [0, 0, 1, 1], [], []>} : vector<64x16xbf16>, vector<16x8xbf16>, vector<64x8xf32> -> vector<64x8xf32>
    %112 = arith.addf %103, %111 : vector<64x8xf32>
    %c1_105 = arith.constant 1 : index
    %c1_106 = arith.constant 1 : index
    %c0_107 = arith.constant 0 : index
    %113 = vector.load %arg9[%c1_105, %c1_106, %c0_107] : memref<18x10x16xbf16, #tpu.memory_space<vmem>>, vector<16x8x16xbf16>
    %114 = vector.shape_cast %113 : vector<16x8x16xbf16> to vector<8x2x8x16xbf16>
    %115 = vector.extract_strided_slice %114 {offsets = [0, 0, 0, 0], sizes = [8, 1, 8, 16], strides = [1, 1, 1, 1]} : vector<8x2x8x16xbf16> to vector<8x1x8x16xbf16>
    %116 = vector.shape_cast %115 : vector<8x1x8x16xbf16> to vector<8x8x16xbf16>
    %117 = vector.shape_cast %116 : vector<8x8x16xbf16> to vector<64x16xbf16>
    %c3_108 = arith.constant 3 : index
    %c0_109 = arith.constant 0 : index
    %c0_110 = arith.constant 0 : index
    %118 = vector.load %arg3[%c3_108, %c0_109, %c0_110] : memref<6x16x8xbf16, #tpu.memory_space<vmem>>, vector<1x16x8xbf16>
    %119 = vector.shape_cast %118 : vector<1x16x8xbf16> to vector<16x8xbf16>
    %cst_111 = arith.constant dense<0.000000e+00> : vector<64x8xf32>
    %120 = tpu.matmul %117, %119, %cst_111 {dimension_numbers = #tpu.dot_dimension_numbers<[1], [0], [0], [1], [0, 0, 1, 1], [], []>} : vector<64x16xbf16>, vector<16x8xbf16>, vector<64x8xf32> -> vector<64x8xf32>
    %121 = arith.addf %112, %120 : vector<64x8xf32>
    %c2_112 = arith.constant 2 : index
    %c0_113 = arith.constant 0 : index
    %c0_114 = arith.constant 0 : index
    %122 = vector.load %arg9[%c2_112, %c0_113, %c0_114] : memref<18x10x16xbf16, #tpu.memory_space<vmem>>, vector<16x8x16xbf16>
    %123 = vector.shape_cast %122 : vector<16x8x16xbf16> to vector<8x2x8x16xbf16>
    %124 = vector.extract_strided_slice %123 {offsets = [0, 0, 0, 0], sizes = [8, 1, 8, 16], strides = [1, 1, 1, 1]} : vector<8x2x8x16xbf16> to vector<8x1x8x16xbf16>
    %125 = vector.shape_cast %124 : vector<8x1x8x16xbf16> to vector<8x8x16xbf16>
    %126 = vector.shape_cast %125 : vector<8x8x16xbf16> to vector<64x16xbf16>
    %c4_115 = arith.constant 4 : index
    %c0_116 = arith.constant 0 : index
    %c0_117 = arith.constant 0 : index
    %127 = vector.load %arg3[%c4_115, %c0_116, %c0_117] : memref<6x16x8xbf16, #tpu.memory_space<vmem>>, vector<1x16x8xbf16>
    %128 = vector.shape_cast %127 : vector<1x16x8xbf16> to vector<16x8xbf16>
    %cst_118 = arith.constant dense<0.000000e+00> : vector<64x8xf32>
    %129 = tpu.matmul %126, %128, %cst_118 {dimension_numbers = #tpu.dot_dimension_numbers<[1], [0], [0], [1], [0, 0, 1, 1], [], []>} : vector<64x16xbf16>, vector<16x8xbf16>, vector<64x8xf32> -> vector<64x8xf32>
    %130 = arith.addf %121, %129 : vector<64x8xf32>
    %c2_119 = arith.constant 2 : index
    %c1_120 = arith.constant 1 : index
    %c0_121 = arith.constant 0 : index
    %131 = vector.load %arg9[%c2_119, %c1_120, %c0_121] : memref<18x10x16xbf16, #tpu.memory_space<vmem>>, vector<16x8x16xbf16>
    %132 = vector.shape_cast %131 : vector<16x8x16xbf16> to vector<8x2x8x16xbf16>
    %133 = vector.extract_strided_slice %132 {offsets = [0, 0, 0, 0], sizes = [8, 1, 8, 16], strides = [1, 1, 1, 1]} : vector<8x2x8x16xbf16> to vector<8x1x8x16xbf16>
    %134 = vector.shape_cast %133 : vector<8x1x8x16xbf16> to vector<8x8x16xbf16>
    %135 = vector.shape_cast %134 : vector<8x8x16xbf16> to vector<64x16xbf16>
    %c5_122 = arith.constant 5 : index
    %c0_123 = arith.constant 0 : index
    %c0_124 = arith.constant 0 : index
    %136 = vector.load %arg3[%c5_122, %c0_123, %c0_124] : memref<6x16x8xbf16, #tpu.memory_space<vmem>>, vector<1x16x8xbf16>
    %137 = vector.shape_cast %136 : vector<1x16x8xbf16> to vector<16x8xbf16>
    %cst_125 = arith.constant dense<0.000000e+00> : vector<64x8xf32>
    %138 = tpu.matmul %135, %137, %cst_125 {dimension_numbers = #tpu.dot_dimension_numbers<[1], [0], [0], [1], [0, 0, 1, 1], [], []>} : vector<64x16xbf16>, vector<16x8xbf16>, vector<64x8xf32> -> vector<64x8xf32>
    %139 = arith.addf %130, %138 : vector<64x8xf32>
    %140 = vector.shape_cast %6 : vector<16x8x8xbf16> to vector<8x2x8x8xbf16>
    %141 = vector.extract_strided_slice %140 {offsets = [0, 0, 0, 0], sizes = [8, 1, 8, 8], strides = [1, 1, 1, 1]} : vector<8x2x8x8xbf16> to vector<8x1x8x8xbf16>
    %142 = vector.shape_cast %141 : vector<8x1x8x8xbf16> to vector<8x8x8xbf16>
    %143 = vector.extract_strided_slice %142 {offsets = [0, 0, 0], sizes = [8, 8, 4], strides = [1, 1, 1]} : vector<8x8x8xbf16> to vector<8x8x4xbf16>
    %144 = vector.shape_cast %143 : vector<8x8x4xbf16> to vector<64x4xbf16>
    %c0_126 = arith.constant 0 : index
    %c0_127 = arith.constant 0 : index
    %145 = vector.load %arg4[%c0_126, %c0_127] : memref<4x8xbf16, #tpu.memory_space<vmem>>, vector<4x8xbf16>
    %cst_128 = arith.constant dense<0.000000e+00> : vector<64x8xf32>
    %146 = tpu.matmul %144, %145, %cst_128 {dimension_numbers = #tpu.dot_dimension_numbers<[1], [0], [0], [1], [0, 0, 1, 1], [], []>} : vector<64x4xbf16>, vector<4x8xbf16>, vector<64x8xf32> -> vector<64x8xf32>
    %147 = arith.addf %139, %146 : vector<64x8xf32>
    %148 = vector.extract_strided_slice %4 {offsets = [0, 0], sizes = [1, 8], strides = [1, 1]} : vector<1x16xf32> to vector<1x8xf32>
    %149 = vector.broadcast %148 : vector<1x8xf32> to vector<64x8xf32>
    %150 = arith.addf %147, %149 : vector<64x8xf32>
    %151 = vector.shape_cast %150 : vector<64x8xf32> to vector<8x8x8xf32>
    %c0_129 = arith.constant 0 : index
    %c0_130 = arith.constant 0 : index
    %c0_131 = arith.constant 0 : index
    %c0_132 = arith.constant 0 : index
    %152 = vector.load %arg7[%c0_129, %c0_130, %c0_131, %c0_132] : memref<1x8x8x8xf32, #tpu.memory_space<vmem>>, vector<1x8x8x8xf32>
    %153 = vector.shape_cast %152 : vector<1x8x8x8xf32> to vector<8x8x8xf32>
    %154 = vector.shape_cast %151 : vector<8x8x8xf32> to vector<1x8x8x8xf32>
    tpu.vector_store %arg7[%c0_129, %c0_130, %c0_131, %c0_132], %154 {strides = array<i32>} : memref<1x8x8x8xf32, #tpu.memory_space<vmem>>, vector<1x8x8x8xf32>,
    return
  }
  func.func @transform_0(%arg0: i32) -> (i32, i32, i32, i32) {
    %c0_i32 = arith.constant 0 : i32
    %c0_i32_0 = arith.constant 0 : i32
    %c0_i32_1 = arith.constant 0 : i32
    %c0_i32_2 = arith.constant 0 : i32
    return %arg0, %c0_i32, %c0_i32_0, %c0_i32_1 : i32, i32, i32, i32
  }
  func.func @transform_1(%arg0: i32) -> (i32, i32, i32) {
    %c0_i32 = arith.constant 0 : i32
    %c0_i32_0 = arith.constant 0 : i32
    %c0_i32_1 = arith.constant 0 : i32
    %c0_i32_2 = arith.constant 0 : i32
    return %c0_i32, %c0_i32_0, %c0_i32_1 : i32, i32, i32
  }
  func.func @transform_2(%arg0: i32) -> (i32, i32, i32) {
    %c0_i32 = arith.constant 0 : i32
    %c0_i32_0 = arith.constant 0 : i32
    %c0_i32_1 = arith.constant 0 : i32
    %c0_i32_2 = arith.constant 0 : i32
    return %c0_i32, %c0_i32_0, %c0_i32_1 : i32, i32, i32
  }
  func.func @transform_3(%arg0: i32) -> (i32, i32) {
    %c0_i32 = arith.constant 0 : i32
    %c0_i32_0 = arith.constant 0 : i32
    %c0_i32_1 = arith.constant 0 : i32
    return %c0_i32, %c0_i32_0 : i32, i32
  }
  func.func @transform_4(%arg0: i32) -> (i32, i32) {
    %c0_i32 = arith.constant 0 : i32
    %c0_i32_0 = arith.constant 0 : i32
    %c0_i32_1 = arith.constant 0 : i32
    return %c0_i32, %c0_i32_0 : i32, i32
  }
  func.func @transform_5(%arg0: i32) -> (i32, i32) {
    %c0_i32 = arith.constant 0 : i32
    %c0_i32_0 = arith.constant 0 : i32
    %c0_i32_1 = arith.constant 0 : i32
    return %c0_i32, %c0_i32_0 : i32, i32
  }
  func.func @transform_6(%arg0: i32) -> (i32, i32, i32, i32) {
    %c0_i32 = arith.constant 0 : i32
    %c0_i32_0 = arith.constant 0 : i32
    %c0_i32_1 = arith.constant 0 : i32
    %c0_i32_2 = arith.constant 0 : i32
    return %arg0, %c0_i32, %c0_i32_0, %c0_i32_1 : i32, i32, i32, i32
  }
}

</mosaic_0001>

<bundles_post_ra>
// kernel: tpu_custom_call.1
= control target key start
LH: loop header
LB: loop body
LE: loop exit
PB: predicated region body
PF: predicated region fallthrough
CT: control target
= control target key end

     0   :  { %11 = vsyncpa [#allocation5], 0  ;;  %s6329_s0 = inlined_call_operand.vmem [shape: bf16[2,16,8,8], index: 0, kind: input, shape index: {}]   ;;  %s6330_s1 = inlined_call_operand.vmem [shape: bf16[9,8,16], index: 1, kind: input, shape index: {}]   ;;  %s6331_s2 = inlined_call_operand.vmem [shape: bf16[6,16,8], index: 2, kind: input, shape index: {}]   ;;  %s6332_s3 = inlined_call_operand.vmem [shape: bf16[4,8], index: 3, kind: input, shape index: {}]   ;;  %s6333_s4 = inlined_call_operand.vmem [shape: f32[2,8], index: 4, kind: input, shape index: {}]   ;;  %s6334_s5 = inlined_call_operand.vmem [shape: f32[3,16], index: 5, kind: input, shape index: {}]   ;;  %s6335_s6 = inlined_call_operand.hbm [shape: f32[2,8,8,8], index: 6, kind: output, shape index: {}]  }
   0x1   :  { %13 = vsyncpa [#allocation5 + $0x1], 0  ;;  %s4826_s21 = smov 0   ;;  %s4828_s22 = smov 0  }
   0x2   :  { %s4830_s23 = smov 0   ;;  %s4832_s24 = smov 0  }
   0x3 LB: > { %s4847_s25 = sadd.s32 4294967295, %s4786_s24   ;;  %s4241_s26 = sadd.s32 4294967294, %s4786_s24   ;;  %s4786_s24 = sphi %s4832_s24, %s6353_s24   ;;  %s4782_s23 = sphi %s4830_s23, %s6352_s23   ;;  %s4778_s22 = sphi %s4828_s22, %s6351_s22   ;;  %s4774_s21 = sphi %s4826_s21, %s6350_s21  }
   0x4   : > { %s4851_s27 = sadd.s32 1, %s4786_s24   ;;  %s157_s28 = sadd.s32 1, %s4782_s23 }
   0x5   : > { %s154_s29 = ssub.s32 %s4786_s24, %s4851_s27  ;;  %p167_p0 = scmp.ne.s32.totalorder %s4782_s23, %s4778_s22 }
   0x6   : > { %p155_p1 = scmp.eq.s32.totalorder %s154_s29, 0  ;;  %p168_p2 = scmp.eq.s32.totalorder %s4847_s25, 1 }
   0x7   : > { %p173_p3 = scmp.ne.s32.totalorder %s4778_s22, %s4774_s21  ;;  %p174_p4 = scmp.eq.s32.totalorder %s4241_s26, 1 }
   0x8   : > { %s4862_s30 = scalar_select %p155_p1, %s4782_s23, %s157_s28  }
   0x9   : > { %p4864_p5 = por %p168_p2, %p167_p0  ;;  %p4868_p6 = por %p174_p4, %p173_p3 }
   0xa   : > { %p4244_p7 = scmp.ge.s32.totalorder %s4786_s24, 1  ;;  %p215_p8 = scmp.lt.s32.totalorder %s4786_s24, 3 }
   0xc   : > { %p216_p9 = pnand %p4244_p7, %p215_p8 }
   0xd   : > { %p245_p10 = scmp.lt.s32.totalorder (!%p216_p9), %s4847_s25, 1  ;;  %s4650_s20 = sshll.u32 (!%p216_p9), %s4847_s25, 6 }
   0xe   : > { %219 = sbr.rel (%p216_p9) target bundleno = 773 (0x305), region = 44  ;;  %s4175_s29 = scalar_lea.hbm (!%p216_p9), %s6335_s6, %s4650_s20 }
   0xf   : > { %s4178_s10 = sshll.u32 (!%p216_p9), %s4175_s29, 4  ;;  %s4179_s10 = int_to_ptr.hbm [resolvable:$true] %s4178_s10 }
  0x13   : > { %v4248_v0 = vld [vmem:[%s6330_s1 + $0x4] sm:$0xf]  ;;  %vm950_vm0 = vcmask 1043456   ;;  %s246_s11 = scalar_select %p245_p10, %s4847_s25, 1  ;;  %vm322_vm1 = vcmask 60416   ;;  %v4788_v2 = vmov 0  }
  0x14   : > { %v952_v1 = vsel %vm950_vm0, %v4248_v0, 0  ;;  %323 = vst.msk [vmem:[#allocation2] sm:$0xf] %vm322_vm1, %v4788_v2  ;;  %vm324_vm2 = vcmask 57344   ;;  %v4892_v3 = vld [vmem:[%s6333_s4] ss:$0 sm:$0xff] }
  0x15   : > { %961 = vmatpush.bf16.msra.mxu0 %v952_v1  ;;  %4671 = vmatpush.bf16.msra.mxu1 %v952_v1  ;;  %s4603_s12 = sshll.u32 %s246_s11, 6  ;;  %325 = vst.msk [vmem:[#allocation2 + $0x4] sm:$0x1] %vm324_vm2, %v4788_v2  ;;  %v4903_v7 = vld [vmem:[%s6333_s4 + $0x1] ss:$0 sm:$0xff]  ;;  %vm925_vm10 = vcmask 64512  }
  0x16   : > { %4672 = vmatpush.bf16.msra.mxu2 %v952_v1  ;;  %4673 = vmatpush.bf16.msra.mxu3 %v952_v1  ;;  %s4887_s15 = scalar_lea.vmem %s6329_s0, %s4603_s12  ;;  %326 = vst.msk [vmem:[#allocation2 + $0x8] sm:$0xf] %vm322_vm1, %v4788_v2  ;;  %vm538_vm3 = vsmask.f32 7938  ;;  %vm544_vm4 = vsmask.f32 256 }
  0x17   : > { %v256_v4 = vld [vmem:[%s4887_s15] sm:$0xf]  ;;  %327 = vst.msk [vmem:[#allocation2 + $0xc] sm:$0x1] %vm324_vm2, %v4788_v2  ;;  %v265_v5 = vld [vmem:[%s4887_s15 + $0x24] sm:$0xf]  ;;  %vm4940_vm5 = vmand %vm322_vm1, %vm538_vm3 }
  0x18   : > { %v272_v6 = vunpack.c.l.bf16 %v256_v4  ;;  %328 = vst.msk [vmem:[#allocation2 + $0x10] sm:$0xf] %vm322_vm1, %v4788_v2  ;;  %v4669_v8 = vld [vmem:[%s4887_s15 + $0x28] sm:$0xff]   ;;  %v281_v9 = vunpack.c.l.bf16 %v265_v5  ;;  %v268_v10 = vld [vmem:[%s4887_s15 + $0x30] sm:$0xff]   ;;  %v4670_v19 = vld [vmem:[%s4887_s15 + $0x38] sm:$0xff]   ;;  %vm1167_vm11 = vcmask 1042432  }
  0x19   : > { %329 = vst.msk [vmem:[#allocation2 + $0x14] sm:$0x1] %vm324_vm2, %v4788_v2  ;;  %v4661_v11 = vunpack.c.l.bf16 %v4669_v8  ;;  %v4662_v15 = vunpack.c.h.bf16 %v4669_v8  ;;  %v284_v18 = vunpack.c.l.bf16 %v268_v10  ;;  %v4665_v25 = vunpack.c.l.bf16 %v4670_v19  ;;  %vm4948_vm6 = vmand %vm324_vm2, %vm544_vm4  ;;  %v257_v46 = vld [vmem:[%s4887_s15 + $0x4] sm:$0xf]  ;;  %v4965_v47 = vld [vmem:[%s4887_s15 + $0x8] sm:$0xff]   ;;  %s4738_s11 = sshra.s32 %s4179_s10, 4  ;;  %s4739_s11 = int_to_ptr.hbm [resolvable:$true] %s4738_s11 }
  0x1a   : > { %v289_v12 = vmul.f32 %v4892_v3, %v272_v6  ;;  %330 = vst.msk [vmem:[#allocation2 + $0x18] sm:$0xf] %vm322_vm1, %v4788_v2  ;;  %v298_v14 = vmul.f32 %v4892_v3, %v281_v9  ;;  %v285_v40 = vunpack.c.h.bf16 %v268_v10  ;;  %v273_v55 = vunpack.c.l.bf16 %v257_v46  ;;  %s4740_s12 = scalar_lea.hbm %s4739_s11, 64  ;;  %p4745_p0 = scmp.lt.s32.totalorder %s4739_s11, %s6335_s6 }
  0x1b   : > { %v639_v13 = vld [vmem:[#allocation2] sm:$0xf]  ;;  %331 = vst.msk [vmem:[#allocation2 + $0x1c] sm:$0x1] %vm324_vm2, %v4788_v2  ;;  %v299_v17 = vmul.f32 %v4892_v3, %v4661_v11  ;;  %v300_v24 = vmul.f32 %v4892_v3, %v4662_v15  ;;  %v301_v29 = vmul.f32 %v4892_v3, %v284_v18  ;;  %v303_v41 = vmul.f32 %v4892_v3, %v4665_v25  ;;  %p4741_p11 = scmp.ne.s32.totalorder %s4739_s11, %s4740_s12 }
  0x1c   : > { %v306_v16 = vadd.f32 %v4903_v7, %v289_v12  ;;  %332 = vst.msk [vmem:[#allocation2 + $0x20] sm:$0xf] %vm322_vm1, %v4788_v2  ;;  %v676_v21 = vshrl.u32 %v639_v13, 16  ;;  %v679_v22 = vshll.u32 %v639_v13, 16  ;;  %v315_v23 = vadd.f32 %v4903_v7, %v298_v14  ;;  %v4934_v30 = vld [vmem:[#allocation2 + $0x4] sm:$0x1] }
  0x1d   : > { %333 = vst.msk [vmem:[#allocation2 + $0x24] sm:$0x1] %vm324_vm2, %v4788_v2  ;;  %v316_v28 = vadd.f32 %v4903_v7, %v299_v17  ;;  %v540_v35 = vld [vmem:[#allocation2 + $0x8] sm:$0xf]  ;;  %v317_v39 = vadd.f32 %v4903_v7, %v300_v24  ;;  %v318_v45 = vadd.f32 %v4903_v7, %v301_v29  ;;  %v685_v51 = vshll.u32 %v4934_v30, 16  ;;  %p4742_p12 = pnand %p4741_p11, %p4864_p5 }
  0x1e   : > { %v360_v20 = vpack.c.bf16 %v306_v16, %v306_v16  ;;  %334 = vst.msk [vmem:[#allocation2 + $0x28] sm:$0xf] %vm322_vm1, %v4788_v2  ;;  %v678_v33 = vrot.slane %v676_v21, 4  ;;  %v681_v34 = vrot.slane %v679_v22, 5  ;;  %v546_v37 = vld [vmem:[#allocation2 + $0xc] sm:$0x1]  ;;  %v369_v38 = vpack.c.bf16 %v315_v23, %v315_v23 }
  0x1f   : > { %335 = vst.msk [vmem:[#allocation2 + $0x2c] sm:$0x1] %vm324_vm2, %v4788_v2  ;;  %v4958_v44 = vpack.c.bf16 %v316_v28, %v316_v28  ;;  %v302_v53 = vmul.f32 %v4892_v3, %v285_v40  ;;  %v320_v54 = vadd.f32 %v4903_v7, %v303_v41  ;;  %v4977_v57 = vpack.c.bf16 %v317_v39, %v317_v39  ;;  %p4743_p13 = pneg %p4742_p12 }
  0x20   : > { %v377_v26 = vshrl.u32 %v360_v20, 16  ;;  %v380_v27 = vshll.u32 %v360_v20, 16  ;;  %336 = vst.msk [vmem:[#allocation2 + $0x30] sm:$0xf] %vm322_vm1, %v4788_v2  ;;  %v682_v50 = vor.u32 %v681_v34, %v678_v33  ;;  %v449_v52 = vshrl.u32 %v369_v38, 16 }
  0x21   : > { %337 = vst.msk [vmem:[#allocation2 + $0x34] sm:$0x1] %vm324_vm2, %v4788_v2  ;;  %v457_v56 = vshrl.u32 %v4958_v44, 16  ;;  %v4979_v58 = vpack.c.bf16 %v318_v45, %v318_v45  ;;  %v4653_v59 = vunpack.c.l.bf16 %v4965_v47  ;;  %vm672_vm7 = vsmask.f32 3328 }
  0x22   : > { %v379_v31 = vrot.slane %v377_v26, 7  ;;  %338 = vst.msk [vmem:[#allocation2 + $0x38] sm:$0xf] %vm322_vm1, %v4788_v2  ;;  %vm673_vm8 = vsmask.f32 7440  ;;  %v319_v60 = vadd.f32 %v4903_v7, %v302_v53  ;;  %v290_v61 = vmul.f32 %v4892_v3, %v273_v55 }
  0x23   : > { %339 = vst.msk [vmem:[#allocation2 + $0x3c] sm:$0x1] %vm324_vm2, %v4788_v2  ;;  %v4986_v62 = vrot.slane %v685_v51, 5  ;;  %v1172_v63 = vrot.slane %v4934_v30, 5  ;;  %v452_v0 = vshll.u32 %v369_v38, 16  ;;  %v4991_v1 = vpack.c.bf16 %v320_v54, %v320_v54  ;;  %vm5024_vm9 = vmor %vm672_vm7, %vm673_vm8 }
  0x24   : > { %v382_v42 = vor.u32 %v380_v27, %v379_v31  ;;  %v383_v43 = vrot.slane %v379_v31, 4  ;;  %340 = vst.msk [vmem:[#allocation2 + $0x40] sm:$0xf] %vm322_vm1, %v4788_v2  ;;  %v683_v4 = vrot.slane %v682_v50, 4  ;;  %v4995_v5 = vrot.slane %v449_v52, 7 }
  0x25   : > { %341 = vst.msk [vmem:[#allocation2 + $0x44] sm:$0x1] %vm324_vm2, %v4788_v2  ;;  %v460_v6 = vshll.u32 %v4958_v44, 16  ;;  %v4998_v8 = vpack.c.bf16 %v319_v60, %v319_v60  ;;  %v5002_v9 = vrot.slane %v457_v56, 7  ;;  %v465_v10 = vshrl.u32 %v4977_v57, 16 }
  0x26   : > { %v541_v48 = vsel %vm4940_vm5, %v382_v42, %v540_v35  ;;  %v547_v49 = vsel %vm4948_vm6, %v383_v43, %v546_v37  ;;  %342 = vst.msk [vmem:[#allocation2 + $0x48] sm:$0xf] %vm322_vm1, %v4788_v2  ;;  %v473_v11 = vshrl.u32 %v4979_v58, 16  ;;  %v291_v12 = vmul.f32 %v4892_v3, %v4653_v59  ;;  %v4363_v60 = vld [vmem:[%s6330_s1 + $0x10] sm:$0xf] }
  0x27   : > { %542 = vst [vmem:[#allocation2 + $0x8] sm:$0xf] %v541_v48  ;;  %v455_v13 = vrot.slane %v4995_v5, 4  ;;  %v468_v14 = vshll.u32 %v4977_v57, 16  ;;  %v476_v15 = vshll.u32 %v4979_v58, 16  ;;  %v307_v16 = vadd.f32 %v4903_v7, %v290_v61 }
  0x28   : > { %548 = vst [vmem:[#allocation2 + $0xc] sm:$0x1] %v547_v49  ;;  %v481_v18 = vshrl.u32 %v4998_v8, 16  ;;  %v489_v19 = vshrl.u32 %v4991_v1, 16  ;;  %v454_v23 = vor.u32 %v452_v0, %v4995_v5  ;;  %v5031_v26 = vrot.slane %v465_v10, 7 }
  0x29   : > { %343 = vst.msk [vmem:[#allocation2 + $0x4c] sm:$0x1] %vm324_vm2, %v4788_v2  ;;  %v5033_v27 = vrot.slane %v473_v11, 7  ;;  %v308_v28 = vadd.f32 %v4903_v7, %v291_v12  ;;  %v463_v33 = vrot.slane %v5002_v9, 4  ;;  %v5039_v34 = vpack.c.bf16 %v307_v16, %v307_v16  ;;  %v5088_v11 = vld [vmem:[%s4887_s15 + $0x10] sm:$0xff]  }
  0x2a   : > { %344 = vst.msk [vmem:[#allocation2 + $0x50] sm:$0xf] %vm322_vm1, %v4788_v2  ;;  %v471_v35 = vrot.slane %v5031_v26, 4  ;;  %v5045_v38 = vrot.slane %v489_v19, 7  ;;  %v492_v39 = vshll.u32 %v4991_v1, 16  ;;  %v688_v40 = vsel %vm5024_vm9, %v683_v4, %v4986_v62 }
  0x2b   : > { %345 = vst.msk [vmem:[#allocation2 + $0x54] sm:$0x1] %vm324_vm2, %v4788_v2  ;;  %v479_v37 = vrot.slane %v5033_v27, 4  ;;  %v5053_v44 = vrot.slane %v481_v18, 7  ;;  %v462_v46 = vor.u32 %v460_v6, %v5002_v9  ;;  %v484_v49 = vshll.u32 %v4998_v8, 16 }
  0x2c   : > { %346 = vst.msk [vmem:[#allocation2 + $0x58] sm:$0xf] %vm322_vm1, %v4788_v2  ;;  %v5060_v50 = vpack.c.bf16 %v308_v28, %v308_v28  ;;  %v495_v53 = vrot.slane %v5045_v38, 4  ;;  %v385_v54 = vshrl.u32 %v5039_v34, 16  ;;  %v901_v55 = vunpack.c.l.b16 %v688_v40 }
  0x2d   : > { %347 = vst.msk [vmem:[#allocation2 + $0x5c] sm:$0x1] %vm324_vm2, %v4788_v2  ;;  %v487_v52 = vrot.slane %v5053_v44, 4  ;;  %v470_v59 = vor.u32 %v468_v14, %v5031_v26  ;;  %v1809_v0 = vsel %vm950_vm0, %v4363_v60, 0  ;;  %v388_v4 = vshll.u32 %v5039_v34, 16 }
  0x2e   : > { %v640_v17 = vld [vmem:[#allocation2 + $0x8] sm:$0xf]  ;;  %348 = vst.msk [vmem:[#allocation2 + $0x60] sm:$0xf] %vm322_vm1, %v4788_v2  ;;  %v4654_v5 = vunpack.c.h.bf16 %v4965_v47  ;;  %1818 = vmatpush.bf16.msrb.mxu0 %v1809_v0  ;;  %v393_v10 = vshrl.u32 %v5060_v50, 16  ;;  %v478_v47 = vor.u32 %v476_v15, %v5033_v27  ;;  %v5097_v16 = vrot.slane %v385_v54, 7 }
  0x2f   : > { %v5017_v20 = vld [vmem:[#allocation2 + $0xc] sm:$0x1]  ;;  %v690_v21 = vshrl.u32 %v640_v17, 16  ;;  %v693_v22 = vshll.u32 %v640_v17, 16  ;;  %349 = vst.msk [vmem:[#allocation2 + $0x64] sm:$0x1] %vm324_vm2, %v4788_v2  ;;  %v494_v40 = vor.u32 %v492_v39, %v5045_v38 }
  0x30   : > { %v699_v25 = vshll.u32 %v5017_v20, 16  ;;  %350 = vst.msk [vmem:[#allocation2 + $0x68] sm:$0xf] %vm322_vm1, %v4788_v2  ;;  %v1176_v45 = vrot.slane %v5017_v20, 5  ;;  %v655_v15 = vld [vmem:[%s6330_s1] sm:$0xf]  ;;  %v292_v26 = vmul.f32 %v4892_v3, %v4654_v5 }
  0x31   : > { %v692_v29 = vrot.slane %v690_v21, 4  ;;  %v695_v31 = vrot.slane %v693_v22, 5  ;;  %351 = vst.msk [vmem:[#allocation2 + $0x6c] sm:$0x1] %vm324_vm2, %v4788_v2  ;;  %v597_v43 = vld [vmem:[#allocation2 + $0x50] sm:$0xf]  ;;  %v486_v22 = vor.u32 %v484_v49, %v5053_v44 }
  0x32   : > { %352 = vst.msk [vmem:[#allocation2 + $0x70] sm:$0xf] %vm322_vm1, %v4788_v2  ;;  %v701_v42 = vrot.slane %v699_v25, 5  ;;  %v600_v48 = vld [vmem:[#allocation2 + $0x54] sm:$0x1]  ;;  %v598_v56 = vsel %vm4940_vm5, %v454_v23, %v597_v43  ;;  %v276_v25 = vunpack.c.l.bf16 %v5088_v11  ;;  %vm1168_vm12 = vcmask 1046532  }
  0x33   : > { %v696_v41 = vor.u32 %v695_v31, %v692_v29  ;;  %353 = vst.msk [vmem:[#allocation2 + $0x74] sm:$0x1] %vm324_vm2, %v4788_v2  ;;  %v603_v57 = vld [vmem:[#allocation2 + $0x58] sm:$0xf]  ;;  %v601_v8 = vsel %vm4948_vm6, %v455_v13, %v600_v48  ;;  %v396_v13 = vshll.u32 %v5060_v50, 16  ;;  %v1068_v31 = vsel %vm950_vm0, %v655_v15, 0  ;;  %vm5214_vm13 = vmor %vm1167_vm11, %vm1168_vm12 }
  0x34   : > { %354 = vst.msk [vmem:[#allocation2 + $0x78] sm:$0xf] %vm322_vm1, %v4788_v2  ;;  %v606_v62 = vld [vmem:[#allocation2 + $0x5c] sm:$0x1]  ;;  %v604_v12 = vsel %vm4940_vm5, %v462_v46, %v603_v57  ;;  %1077 = vmatpush.bf16.msrb.mxu1 %v1068_v31  ;;  %v5138_v48 = vld [vmem:[#allocation2 + $0x10] sm:$0xf] }
  0x35   : > { %v697_v51 = vrot.slane %v696_v41, 4  ;;  %355 = vst.msk [vmem:[#allocation2 + $0x7c] sm:$0x1] %vm324_vm2, %v4788_v2  ;;  %v609_v9 = vld [vmem:[#allocation2 + $0x60] sm:$0xf]  ;;  %v607_v18 = vsel %vm4948_vm6, %v463_v33, %v606_v62  ;;  %v5114_v33 = vrot.slane %v393_v10, 7 }
  0x36   : > { %356 = vst.msk [vmem:[#allocation2 + $0x80] sm:$0xf] %vm322_vm1, %v4788_v2  ;;  %v612_v14 = vld [vmem:[#allocation2 + $0x64] sm:$0x1]  ;;  %v610_v23 = vsel %vm4940_vm5, %v470_v59, %v609_v9  ;;  %v4313_v41 = vld [vmem:[%s6330_s1 + $0x8] sm:$0xf] }
  0x37   : > { %v702_v61 = vsel %vm5024_vm9, %v697_v51, %v701_v42  ;;  %357 = vst.msk [vmem:[#allocation2 + $0x84] sm:$0x1] %vm324_vm2, %v4788_v2  ;;  %v615_v19 = vld [vmem:[#allocation2 + $0x68] sm:$0xf]  ;;  %v613_v28 = vsel %vm4948_vm6, %v471_v35, %v612_v14  ;;  %v4322_v35 = vld [vmem:[%s6330_s1 + $0xc] sm:$0xf]  ;;  %v5128_v42 = vor.u32 %v388_v4, %v5097_v16  ;;  %v293_v51 = vmul.f32 %v4892_v3, %v276_v25 }
  0x38   : > { %v902_v6 = vunpack.c.l.b16 %v702_v61  ;;  %358 = vst.msk [vmem:[#allocation2 + $0x88] sm:$0xf] %vm322_vm1, %v4788_v2  ;;  %v618_v21 = vld [vmem:[#allocation2 + $0x6c] sm:$0x1]  ;;  %v616_v34 = vsel %vm4940_vm5, %v478_v47, %v615_v19  ;;  %v1285_v39 = vsel %vm950_vm0, %v4313_v41, 0  ;;  %v1435_v46 = vsel %vm950_vm0, %v4322_v35, 0 }
  0x39   : > { %359 = vst.msk [vmem:[#allocation2 + $0x8c] sm:$0x1] %vm324_vm2, %v4788_v2  ;;  %v621_v58 = vld [vmem:[#allocation2 + $0x70] sm:$0xf]  ;;  %v619_v43 = vsel %vm4948_vm6, %v479_v37, %v618_v21  ;;  %1294 = vmatpush.bf16.msrb.mxu2 %v1285_v39  ;;  %1444 = vmatpush.bf16.msrb.mxu3 %v1435_v46  ;;  %v391_v50 = vrot.slane %v5097_v16, 4  ;;  %v399_v27 = vrot.slane %v5114_v33, 4  ;;  %v309_v37 = vadd.f32 %v4903_v7, %v292_v26 }
  0x3a   : > { %v917_v17 = vpack.c.b16 %v902_v6, %v901_v55  ;;  %599 = vst [vmem:[#allocation2 + $0x50] sm:$0xf] %v598_v56  ;;  %v624_v29 = vld [vmem:[#allocation2 + $0x74] sm:$0x1]  ;;  %v622_v1 = vsel %vm4940_vm5, %v486_v22, %v621_v58  ;;  %v5149_v59 = vor.u32 %v396_v13, %v5114_v33  ;;  %v5151_v60 = vld [vmem:[#allocation2 + $0x18] sm:$0xf] }
  0x3b   : > { %602 = vst [vmem:[#allocation2 + $0x54] sm:$0x1] %v601_v8  ;;  %v627_v49 = vld [vmem:[#allocation2 + $0x78] sm:$0xf]  ;;  %v625_v54 = vsel %vm4948_vm6, %v487_v52, %v624_v29  ;;  %v552_v56 = vld [vmem:[#allocation2 + $0x14] sm:$0x1]  ;;  %v550_v52 = vsel %vm4940_vm5, %v5128_v42, %v5138_v48  ;;  %v5167_v8 = vadd.f32 %v4903_v7, %v293_v51  ;;  %v5169_v9 = vpack.c.bf16 %v309_v37, %v309_v37 }
  0x3c   : > { %4249 = vmatmul.msk.bf16.vlgmr.msra.gmra.mxu0 %vm925_vm10, %v917_v17  ;;  %605 = vst [vmem:[#allocation2 + $0x58] sm:$0xf] %v604_v12  ;;  %v630_v55 = vld [vmem:[#allocation2 + $0x7c] sm:$0x1]  ;;  %v628_v44 = vsel %vm4940_vm5, %v494_v40, %v627_v49  ;;  %v553_v38 = vsel %vm4948_vm6, %v391_v50, %v552_v56  ;;  %vm2927_vm14 = vcmask 125952   ;;  %vm2929_vm15 = vcmask 122880  }
  0x3d   : > { %608 = vst [vmem:[#allocation2 + $0x5c] sm:$0x1] %v607_v18  ;;  %v631_v6 = vsel %vm4948_vm6, %v495_v53, %v630_v55  ;;  %v556_v53 = vsel %vm4940_vm5, %v5149_v59, %v5151_v60  ;;  %v558_v19 = vld [vmem:[#allocation2 + $0x1c] sm:$0x1]  ;;  %v401_v31 = vshrl.u32 %v5169_v9, 16  ;;  %vm5954_vm1 = vmand %vm2927_vm14, %vm538_vm3  ;;  %vm4105_vm3 = vcmask 1041408  }
  0x3e   : > { %611 = vst [vmem:[#allocation2 + $0x60] sm:$0xf] %v610_v23  ;;  %v559_v37 = vsel %vm4948_vm6, %v399_v27, %v558_v19  ;;  %v1119_v19 = vld [vmem:[#allocation2] sm:$0xe]  ;;  %vm5960_vm2 = vmand %vm2929_vm15, %vm544_vm4  ;;  %vm3393_vm7 = vcmask 130048  }
  0x3f   : > { %614 = vst [vmem:[#allocation2 + $0x64] sm:$0x1] %v613_v28 }
  0x40   : > { %617 = vst [vmem:[#allocation2 + $0x68] sm:$0xf] %v616_v34 }
  0x41   : > { %v649_v57 = vld [vmem:[#allocation2 + $0x50] sm:$0xf]  ;;  %620 = vst [vmem:[#allocation2 + $0x6c] sm:$0x1] %v619_v43 }
  0x42   : > { %v5153_v61 = vld [vmem:[#allocation2 + $0x54] sm:$0x1]  ;;  %v816_v62 = vshrl.u32 %v649_v57, 16  ;;  %v819_v0 = vshll.u32 %v649_v57, 16  ;;  %623 = vst [vmem:[#allocation2 + $0x70] sm:$0xf] %v622_v1 }
  0x43   : > { %v650_v4 = vld [vmem:[#allocation2 + $0x58] sm:$0xf]  ;;  %v825_v5 = vshll.u32 %v5153_v61, 16  ;;  %626 = vst [vmem:[#allocation2 + $0x74] sm:$0x1] %v625_v54 }
  0x44   : > { %v5171_v10 = vld [vmem:[#allocation2 + $0x5c] sm:$0x1]  ;;  %v818_v12 = vrot.slane %v816_v62, 4  ;;  %v821_v47 = vrot.slane %v819_v0, 5  ;;  %v830_v14 = vshrl.u32 %v650_v4, 16  ;;  %v833_v16 = vshll.u32 %v650_v4, 16 }
  0x45   : > { %v827_v13 = vrot.slane %v825_v5, 5  ;;  %v839_v17 = vshll.u32 %v5171_v10, 16  ;;  %v651_v18 = vld [vmem:[#allocation2 + $0x60] sm:$0xf]  ;;  %629 = vst [vmem:[#allocation2 + $0x78] sm:$0xf] %v628_v44 }
  0x46   : > { %v822_v21 = vor.u32 %v821_v47, %v818_v12  ;;  %v832_v22 = vrot.slane %v830_v14, 4  ;;  %v835_v23 = vrot.slane %v833_v16, 5  ;;  %v5180_v58 = vld [vmem:[#allocation2 + $0x64] sm:$0x1]  ;;  %v844_v15 = vshrl.u32 %v651_v18, 16 }
  0x47   : > { %v841_v25 = vrot.slane %v839_v17, 5  ;;  %v652_v26 = vld [vmem:[#allocation2 + $0x68] sm:$0xf]  ;;  %v847_v28 = vshll.u32 %v651_v18, 16  ;;  %v853_v29 = vshll.u32 %v5180_v58, 16  ;;  %v404_v16 = vshll.u32 %v5169_v9, 16 }
  0x48   : > { %v823_v33 = vrot.slane %v822_v21, 4  ;;  %v836_v34 = vor.u32 %v835_v23, %v832_v22  ;;  %v5184_v40 = vld [vmem:[#allocation2 + $0x6c] sm:$0x1]  ;;  %v846_v41 = vrot.slane %v844_v15, 4  ;;  %v858_v35 = vshrl.u32 %v652_v26, 16 }
  0x49   : > { %v849_v42 = vrot.slane %v847_v28, 5  ;;  %v855_v43 = vrot.slane %v853_v29, 5  ;;  %v861_v1 = vshll.u32 %v652_v26, 16  ;;  %v867_v39 = vshll.u32 %v5184_v40, 16  ;;  %632 = vst [vmem:[#allocation2 + $0x7c] sm:$0x1] %v631_v6 }
  0x4a   : > { %v828_v46 = vsel %vm5024_vm9, %v823_v33, %v827_v13  ;;  %v837_v48 = vrot.slane %v836_v34, 4  ;;  %v860_v49 = vrot.slane %v858_v35, 4  ;;  %v653_v50 = vld [vmem:[#allocation2 + $0x70] sm:$0xf]  ;;  %v5189_v51 = vld [vmem:[#allocation2 + $0x74] sm:$0x1] }
  0x4b   : > { %v911_v54 = vunpack.c.l.b16 %v828_v46  ;;  %v850_v55 = vor.u32 %v849_v42, %v846_v41  ;;  %v863_v56 = vrot.slane %v861_v1, 5  ;;  %v869_v57 = vrot.slane %v867_v39, 5  ;;  %551 = vst [vmem:[#allocation2 + $0x10] sm:$0xf] %v550_v52 }
  0x4c   : > { %v842_v59 = vsel %vm5024_vm9, %v837_v48, %v841_v25  ;;  %v654_v60 = vld [vmem:[#allocation2 + $0x78] sm:$0xf]  ;;  %v872_v62 = vshrl.u32 %v653_v50, 16  ;;  %v875_v0 = vshll.u32 %v653_v50, 16  ;;  %v881_v44 = vshll.u32 %v5189_v51, 16 }
  0x4d   : > { %v912_v4 = vunpack.c.l.b16 %v842_v59  ;;  %v851_v5 = vrot.slane %v850_v55, 4  ;;  %v864_v6 = vor.u32 %v863_v56, %v860_v49  ;;  %v886_v12 = vshrl.u32 %v654_v60, 16  ;;  %554 = vst [vmem:[#allocation2 + $0x14] sm:$0x1] %v553_v38  ;;  %v1120_v25 = vld [vmem:[#allocation2 + $0x8] sm:$0xe] }
  0x4e   : > { %v874_v47 = vrot.slane %v872_v62, 4  ;;  %v877_v27 = vrot.slane %v875_v0, 5  ;;  %v889_v14 = vshll.u32 %v654_v60, 16  ;;  %557 = vst [vmem:[#allocation2 + $0x18] sm:$0xf] %v556_v53  ;;  %v883_v15 = vrot.slane %v881_v44, 5 }
  0x4f   : > { %v922_v52 = vpack.c.b16 %v912_v4, %v911_v54  ;;  %v856_v13 = vsel %vm5024_vm9, %v851_v5, %v855_v43  ;;  %v865_v17 = vrot.slane %v864_v6, 4  ;;  %v888_v18 = vrot.slane %v886_v12, 4  ;;  %560 = vst [vmem:[#allocation2 + $0x1c] sm:$0x1] %v559_v37 }
  0x50   : > { %v913_v21 = vunpack.c.l.b16 %v856_v13  ;;  %v5199_v22 = vld [vmem:[#allocation2 + $0x7c] sm:$0x1]  ;;  %v878_v23 = vor.u32 %v877_v27, %v874_v47  ;;  %v891_v38 = vrot.slane %v889_v14, 5  ;;  %v4297_v41 = vrot.slane %v1119_v19, 9  ;;  %v561_v14 = vld [vmem:[#allocation2 + $0x20] sm:$0xf] }
  0x51   : > { %4254 = vmatmul.msk.bf16.vlgmr.msra.gmra.mxu1 %vm925_vm10, %v922_v52  ;;  %v870_v53 = vsel %vm5024_vm9, %v865_v17, %v869_v57  ;;  %v895_v26 = vshll.u32 %v5199_v22, 16  ;;  %v4298_v1 = vrot.slane %v1120_v25, 9  ;;  %v403_v50 = vrot.slane %v401_v31, 7  ;;  %v5231_v52 = vld [vmem:[%s4887_s15 + $0x18] sm:$0xff]   ;;  %2931 = vst.msk [vmem:[#allocation3 + $0x8] sm:$0xf] %vm2927_vm14, %v4788_v2 }
  0x52   : > { %v914_v28 = vunpack.c.l.b16 %v870_v53  ;;  %v879_v29 = vrot.slane %v878_v23, 4  ;;  %v892_v33 = vor.u32 %v891_v38, %v888_v18  ;;  %v641_v34 = vld [vmem:[#allocation2 + $0x10] sm:$0xf]  ;;  %v364_v0 = vpack.c.bf16 %v5167_v8, %v5167_v8  ;;  %v4259_v8 = vld [vmem:[#allocation2] sm:$0xf] }
  0x53   : > { %v897_v35 = vrot.slane %v895_v26, 5  ;;  %v704_v42 = vshrl.u32 %v641_v34, 16  ;;  %v707_v43 = vshll.u32 %v641_v34, 16  ;;  %v1173_v27 = vsel %vm5214_vm13, %v4297_v41, %v1172_v63  ;;  %v564_v23 = vld [vmem:[#allocation2 + $0x24] sm:$0x1] }
  0x54   : > { %v923_v39 = vpack.c.b16 %v914_v28, %v913_v21  ;;  %v884_v46 = vsel %vm5024_vm9, %v879_v29, %v883_v15  ;;  %v893_v48 = vrot.slane %v892_v33, 4  ;;  %v5207_v49 = vld [vmem:[#allocation2 + $0x14] sm:$0x1]  ;;  %v277_v13 = vunpack.c.h.bf16 %v5088_v11  ;;  %v4608_v38 = vld [vmem:[#allocation2 + $0x4] sm:$0xf0] }
  0x55   : > { %v915_v37 = vunpack.c.l.b16 %v884_v46  ;;  %v642_v54 = vld [vmem:[#allocation2 + $0x18] sm:$0xf]  ;;  %v706_v55 = vrot.slane %v704_v42, 4  ;;  %v709_v56 = vrot.slane %v707_v43, 5  ;;  %v713_v57 = vshll.u32 %v5207_v49, 16 }
  0x56   : > { %4255 = vmatmul.msk.bf16.vlgmr.msra.gmra.mxu2 %vm925_vm10, %v923_v39  ;;  %v898_v60 = vsel %vm5024_vm9, %v893_v48, %v897_v35  ;;  %v5221_v9 = vld [vmem:[#allocation2 + $0x1c] sm:$0x1]  ;;  %v718_v31 = vshrl.u32 %v642_v54, 16  ;;  %v721_v62 = vshll.u32 %v642_v54, 16  ;;  %v1177_v19 = vsel %vm5214_vm13, %v4298_v1, %v1176_v45  ;;  %v567_v35 = vld [vmem:[#allocation2 + $0x28] sm:$0xf] }
  0x57   : > { %v916_v44 = vunpack.c.l.b16 %v898_v60  ;;  %v710_v4 = vor.u32 %v709_v56, %v706_v55  ;;  %v715_v5 = vrot.slane %v713_v57, 5  ;;  %v727_v6 = vshll.u32 %v5221_v9, 16  ;;  %v570_v42 = vld [vmem:[#allocation2 + $0x2c] sm:$0x1]  ;;  %v1122_v56 = vld [vmem:[#allocation2 + $0x18] sm:$0xe] }
  0x58   : > { %v720_v12 = vrot.slane %v718_v31, 4  ;;  %v723_v47 = vrot.slane %v721_v62, 5  ;;  %v406_v21 = vor.u32 %v404_v16, %v403_v50  ;;  %v407_v25 = vrot.slane %v403_v50, 4  ;;  %v1121_v50 = vld [vmem:[#allocation2 + $0x10] sm:$0xe] }
  0x59   : > { %v924_v17 = vpack.c.b16 %v916_v44, %v915_v37  ;;  %v711_v18 = vrot.slane %v710_v4, 4  ;;  %v729_v30 = vrot.slane %v727_v6, 5  ;;  %v409_v63 = vshrl.u32 %v364_v0, 16  ;;  %v4325_v4 = vld [vmem:[#allocation2 + $0x8] sm:$0xf] }
  0x5a   : > { %v724_v15 = vor.u32 %v723_v47, %v720_v12  ;;  %v412_v53 = vshll.u32 %v364_v0, 16  ;;  %v562_v26 = vsel %vm4940_vm5, %v406_v21, %v561_v14  ;;  %v4657_v20 = vunpack.c.l.bf16 %v5231_v52  ;;  %v264_v0 = vld [vmem:[%s4887_s15 + $0x20] sm:$0xf]  ;;  %v4616_v12 = vld [vmem:[#allocation2 + $0xc] sm:$0xf0] }
  0x5b   : > { %4256 = vmatmul.msk.bf16.vlgmr.msra.gmra.mxu3 %vm925_vm10, %v924_v17  ;;  %v716_v11 = vsel %vm5024_vm9, %v711_v18, %v715_v5  ;;  %v411_v45 = vrot.slane %v409_v63, 7  ;;  %563 = vst [vmem:[#allocation2 + $0x20] sm:$0xf] %v562_v26  ;;  %v565_v16 = vsel %vm4948_vm6, %v407_v25, %v564_v23  ;;  %v4260_v33 = vor.u32 %v4608_v38, %v4259_v8  ;;  %v4609_v26 = vld [vmem:[#allocation2 + $0x14] sm:$0xf0] }
  0x5c   : > { %v725_v28 = vrot.slane %v724_v15, 4  ;;  %v903_v29 = vunpack.c.l.b16 %v716_v11  ;;  %v1236_v34 = vunpack.c.l.b16 %v1173_v27  ;;  %v1237_v41 = vunpack.c.l.b16 %v1177_v19  ;;  %566 = vst [vmem:[#allocation2 + $0x24] sm:$0x1] %v565_v16  ;;  %v573_v11 = vld [vmem:[#allocation2 + $0x30] sm:$0xf] }
  0x5d   : > { %v414_v1 = vor.u32 %v412_v53, %v411_v45  ;;  %v415_v39 = vrot.slane %v411_v45, 4  ;;  %v294_v46 = vmul.f32 %v4892_v3, %v277_v13  ;;  %v295_v37 = vmul.f32 %v4892_v3, %v4657_v20  ;;  %v4263_v53 = vld [vmem:[#allocation2 + $0x10] sm:$0xf]  ;;  %2932 = vst.msk [vmem:[#allocation3 + $0xc] sm:$0x1] %vm2929_vm15, %v4788_v2 }
  0x5e   : > { %v730_v43 = vsel %vm5024_vm9, %v725_v28, %v729_v30  ;;  %v4658_v62 = vunpack.c.h.bf16 %v5231_v52  ;;  %v1252_v44 = vpack.c.b16 %v1237_v41, %v1236_v34  ;;  %v4299_v5 = vrot.slane %v1121_v50, 9  ;;  %2928 = vst.msk [vmem:[#allocation3] sm:$0xf] %vm2927_vm14, %v4788_v2 }
  0x5f   : > { %v904_v48 = vunpack.c.l.b16 %v730_v43  ;;  %v568_v54 = vsel %vm4940_vm5, %v414_v1, %v567_v35  ;;  %v571_v55 = vsel %vm4948_vm6, %v415_v39, %v570_v42  ;;  %v311_v60 = vadd.f32 %v4903_v7, %v294_v46  ;;  %v582_v42 = vld [vmem:[#allocation2 + $0x3c] sm:$0x1]  ;;  %2930 = vst.msk [vmem:[#allocation3 + $0x4] sm:$0x1] %vm2929_vm15, %v4788_v2 }
  0x60   : > { %569 = vst [vmem:[#allocation2 + $0x28] sm:$0xf] %v568_v54  ;;  %v312_v31 = vadd.f32 %v4903_v7, %v295_v37  ;;  %v1180_v6 = vrot.slane %v5207_v49, 5  ;;  %v4300_v27 = vrot.slane %v1122_v56, 9  ;;  %v1184_v14 = vrot.slane %v5221_v9, 5 }
  0x61   : > { %v918_v57 = vpack.c.b16 %v904_v48, %v903_v29  ;;  %4289 = vmatmul.msk.bf16.vlgmr.msrb.gmra.mxu1 %vm925_vm10, %v4260_v33  ;;  %572 = vst [vmem:[#allocation2 + $0x2c] sm:$0x1] %v571_v55  ;;  %v365_v13 = vpack.c.bf16 %v311_v60, %v311_v60  ;;  %v280_v19 = vunpack.c.l.bf16 %v264_v0  ;;  %v296_v21 = vmul.f32 %v4892_v3, %v4658_v62  ;;  %v576_v29 = vld [vmem:[#allocation2 + $0x34] sm:$0x1]  ;;  %v579_v33 = vld [vmem:[#allocation2 + $0x38] sm:$0xf] }
  0x62   : > { %v643_v47 = vld [vmem:[#allocation2 + $0x20] sm:$0xf]  ;;  %v366_v17 = vpack.c.bf16 %v312_v31, %v312_v31  ;;  %v4326_v38 = vor.u32 %v4616_v12, %v4325_v4  ;;  %v1181_v20 = vsel %vm5214_vm13, %v4299_v5, %v1180_v6  ;;  %v1185_v28 = vsel %vm5214_vm13, %v4300_v27, %v1184_v14  ;;  %v5287_v14 = vld [vmem:[#allocation2 + $0x18] sm:$0xf]  ;;  %2933 = vst.msk [vmem:[#allocation3 + $0x10] sm:$0xf] %vm2927_vm14, %v4788_v2 }
  0x63   : > { %4250 = vmatmul.msk.bf16.gmra.mxu0 %vm925_vm10, %v918_v57  ;;  %v5262_v18 = vld [vmem:[#allocation2 + $0x24] sm:$0x1]  ;;  %v732_v8 = vshrl.u32 %v643_v47, 16  ;;  %v735_v52 = vshll.u32 %v643_v47, 16  ;;  %v417_v15 = vshrl.u32 %v365_v13, 16  ;;  %v420_v49 = vshll.u32 %v365_v13, 16 }
  0x64   : > { %v741_v23 = vshll.u32 %v5262_v18, 16  ;;  %v425_v30 = vshrl.u32 %v366_v17, 16  ;;  %v428_v9 = vshll.u32 %v366_v17, 16  ;;  %v297_v43 = vmul.f32 %v4892_v3, %v280_v19  ;;  %2934 = vst.msk [vmem:[#allocation3 + $0x14] sm:$0x1] %vm2929_vm15, %v4788_v2 }
  0x65   : > { %v734_v25 = vrot.slane %v732_v8, 4  ;;  %v737_v63 = vrot.slane %v735_v52, 5  ;;  %v419_v45 = vrot.slane %v417_v15, 7  ;;  %v313_v1 = vadd.f32 %v4903_v7, %v296_v21  ;;  %v4617_v52 = vld [vmem:[#allocation2 + $0x1c] sm:$0xf0] }
  0x66   : > { %4314 = vmatmul.msk.bf16.vlgmr.msrb.gmra.mxu2 %vm925_vm10, %v1252_v44  ;;  %v427_v16 = vrot.slane %v425_v30, 7  ;;  %v743_v35 = vrot.slane %v741_v23, 5  ;;  %v4264_v0 = vor.u32 %v4609_v26, %v4263_v53  ;;  %v1238_v44 = vunpack.c.l.b16 %v1181_v20  ;;  %v1123_v21 = vld [vmem:[#allocation2 + $0x20] sm:$0xe]  ;;  %2935 = vst.msk [vmem:[#allocation3 + $0x18] sm:$0xf] %vm2927_vm14, %v4788_v2 }
  0x67   : > { %v644_v34 = vld [vmem:[#allocation2 + $0x28] sm:$0xf]  ;;  %v738_v41 = vor.u32 %v737_v63, %v734_v25  ;;  %v422_v50 = vor.u32 %v420_v49, %v419_v45  ;;  %v423_v37 = vrot.slane %v419_v45, 4  ;;  %v1239_v27 = vunpack.c.l.b16 %v1185_v28  ;;  %2936 = vst.msk [vmem:[#allocation3 + $0x1c] sm:$0x1] %vm2929_vm15, %v4788_v2 }
  0x68   : > { %v5273_v39 = vld [vmem:[#allocation2 + $0x2c] sm:$0x1]  ;;  %v746_v46 = vshrl.u32 %v644_v34, 16  ;;  %v749_v48 = vshll.u32 %v644_v34, 16  ;;  %v430_v56 = vor.u32 %v428_v9, %v427_v16  ;;  %v431_v57 = vrot.slane %v427_v16, 4 }
  0x69   : > { %v739_v54 = vrot.slane %v738_v41, 4  ;;  %v755_v55 = vshll.u32 %v5273_v39, 16  ;;  %v574_v3 = vsel %vm4940_vm5, %v422_v50, %v573_v11  ;;  %v577_v62 = vsel %vm4948_vm6, %v423_v37, %v576_v29  ;;  %v1124_v23 = vld [vmem:[#allocation2 + $0x28] sm:$0xe]  ;;  %v585_v16 = vld [vmem:[#allocation2 + $0x40] sm:$0xf] }
  0x6a   : > { %v748_v60 = vrot.slane %v746_v46, 4  ;;  %v751_v31 = vrot.slane %v749_v48, 5  ;;  %575 = vst [vmem:[#allocation2 + $0x30] sm:$0xf] %v574_v3  ;;  %v580_v4 = vsel %vm4940_vm5, %v430_v56, %v579_v33  ;;  %v583_v5 = vsel %vm4948_vm6, %v431_v57, %v582_v42  ;;  %v588_v42 = vld [vmem:[#allocation2 + $0x44] sm:$0x1] }
  0x6b   : > { %4355 = vmatmul.msk.bf16.vlgmr.msrb.gmra.mxu3 %vm925_vm10, %v4326_v38  ;;  %v744_v6 = vsel %vm5024_vm9, %v739_v54, %v743_v35  ;;  %v757_v47 = vrot.slane %v755_v55, 5  ;;  %578 = vst [vmem:[#allocation2 + $0x34] sm:$0x1] %v577_v62  ;;  %v314_v13 = vadd.f32 %v4903_v7, %v297_v43  ;;  %v367_v17 = vpack.c.bf16 %v313_v1, %v313_v1  ;;  %v591_v43 = vld [vmem:[#allocation2 + $0x48] sm:$0xf] }
  0x6c   : > { %v752_v12 = vor.u32 %v751_v31, %v748_v60  ;;  %581 = vst [vmem:[#allocation2 + $0x38] sm:$0xf] %v580_v4  ;;  %v905_v19 = vunpack.c.l.b16 %v744_v6  ;;  %v1253_v38 = vpack.c.b16 %v1239_v27, %v1238_v44  ;;  %v4330_v9 = vor.u32 %v4617_v52, %v5287_v14  ;;  %v594_v1 = vld [vmem:[#allocation2 + $0x4c] sm:$0x1]  ;;  %v4267_v6 = vld [vmem:[#allocation2 + $0x20] sm:$0xf] }
  0x6d   : > { %584 = vst [vmem:[#allocation2 + $0x3c] sm:$0x1] %v583_v5  ;;  %v368_v15 = vpack.c.bf16 %v314_v13, %v314_v13  ;;  %v433_v49 = vshrl.u32 %v367_v17, 16  ;;  %v436_v25 = vshll.u32 %v367_v17, 16  ;;  %v4301_v26 = vrot.slane %v1123_v21, 9 }
  0x6e   : > { %v753_v8 = vrot.slane %v752_v12, 4  ;;  %v1188_v20 = vrot.slane %v5262_v18, 5  ;;  %v4302_v28 = vrot.slane %v1124_v23, 9  ;;  %v1192_v35 = vrot.slane %v5273_v39, 5  ;;  %v1880_v36 = vld [vmem:[#allocation2 + $0x28] sm:$0xe] }
  0x6f   : > { %v435_v7 = vrot.slane %v433_v49, 7  ;;  %v441_v11 = vshrl.u32 %v368_v15, 16  ;;  %v444_v45 = vshll.u32 %v368_v15, 16  ;;  %v4397_v15 = vld [vmem:[%s6330_s1 + $0x18] sm:$0xf] }
  0x70   : > { %v758_v30 = vsel %vm5024_vm9, %v753_v8, %v757_v47  ;;  %v4610_v8 = vld [vmem:[#allocation2 + $0x24] sm:$0xf0]  ;;  %v1189_v52 = vsel %vm5214_vm13, %v4301_v26, %v1188_v20  ;;  %2937 = vst.msk [vmem:[#allocation3 + $0x20] sm:$0xf] %vm2927_vm14, %v4788_v2 }
  0x71   : > { %4290 = vmatmul.msk.bf16.gmra.mxu1 %vm925_vm10, %v4264_v0  ;;  %v906_v63 = vunpack.c.l.b16 %v758_v30  ;;  %v645_v53 = vld [vmem:[#allocation2 + $0x30] sm:$0xf]  ;;  %v438_v50 = vor.u32 %v436_v25, %v435_v7  ;;  %v439_v37 = vrot.slane %v435_v7, 4  ;;  %v443_v54 = vrot.slane %v441_v11, 7  ;;  %v4438_v25 = vld [vmem:[%s6330_s1 + $0x1c] sm:$0xf] }
  0x72   : > { %v5295_v33 = vld [vmem:[#allocation2 + $0x34] sm:$0x1]  ;;  %v760_v34 = vshrl.u32 %v645_v53, 16  ;;  %v763_v41 = vshll.u32 %v645_v53, 16  ;;  %v4268_v49 = vor.u32 %v4610_v8, %v4267_v6  ;;  %v1240_v30 = vunpack.c.l.b16 %v1189_v52  ;;  %2938 = vst.msk [vmem:[#allocation3 + $0x24] sm:$0x1] %vm2929_vm15, %v4788_v2 }
  0x73   : > { %v919_v29 = vpack.c.b16 %v906_v63, %v905_v19  ;;  %v646_v46 = vld [vmem:[#allocation2 + $0x38] sm:$0xf]  ;;  %v769_v48 = vshll.u32 %v5295_v33, 16  ;;  %v446_v3 = vor.u32 %v444_v45, %v443_v54  ;;  %v447_v62 = vrot.slane %v443_v54, 4  ;;  %v4388_v63 = vld [vmem:[%s6330_s1 + $0x14] sm:$0xf] }
  0x74   : > { %v5301_v18 = vld [vmem:[#allocation2 + $0x3c] sm:$0x1]  ;;  %v762_v55 = vrot.slane %v760_v34, 4  ;;  %v765_v56 = vrot.slane %v763_v41, 5  ;;  %v774_v57 = vshrl.u32 %v646_v46, 16  ;;  %v777_v60 = vshll.u32 %v646_v46, 16 }
  0x75   : > { %4251 = vmatmul.msk.bf16.gmra.mxu0 %vm925_vm10, %v919_v29  ;;  %v771_v39 = vrot.slane %v769_v48, 5  ;;  %v783_v31 = vshll.u32 %v5301_v18, 16  ;;  %v586_v5 = vsel %vm4940_vm5, %v438_v50, %v585_v16  ;;  %v589_v12 = vsel %vm4948_vm6, %v439_v37, %v588_v42  ;;  %v4618_v45 = vld [vmem:[#allocation2 + $0x2c] sm:$0xf0]  ;;  %v1126_v48 = vld [vmem:[#allocation2 + $0x38] sm:$0xe] }
  0x76   : > { %4315 = vmatmul.msk.bf16.gmra.mxu2 %vm925_vm10, %v1253_v38  ;;  %v766_v0 = vor.u32 %v765_v56, %v762_v55  ;;  %v776_v44 = vrot.slane %v774_v57, 4  ;;  %v779_v4 = vrot.slane %v777_v60, 5  ;;  %587 = vst [vmem:[#allocation2 + $0x40] sm:$0xf] %v586_v5  ;;  %v592_v47 = vsel %vm4940_vm5, %v446_v3, %v591_v43  ;;  %v4611_v8 = vld [vmem:[#allocation2 + $0x34] sm:$0xf0] }
  0x77   : > { %v595_v27 = vsel %vm4948_vm6, %v447_v62, %v594_v1  ;;  %v785_v17 = vrot.slane %v783_v31, 5  ;;  %590 = vst [vmem:[#allocation2 + $0x44] sm:$0x1] %v589_v12  ;;  %v1193_v19 = vsel %vm5214_vm13, %v4302_v28, %v1192_v35  ;;  %v2190_v38 = vsel %vm950_vm0, %v4397_v15, 0  ;;  %v4333_v28 = vld [vmem:[#allocation2 + $0x28] sm:$0xf] }
  0x78   : > { %v767_v14 = vrot.slane %v766_v0, 4  ;;  %v780_v13 = vor.u32 %v779_v4, %v776_v44  ;;  %593 = vst [vmem:[#allocation2 + $0x48] sm:$0xf] %v592_v47  ;;  %v1241_v11 = vunpack.c.l.b16 %v1193_v19  ;;  %2199 = vmatpush.bf16.msra.mxu2 %v2190_v38  ;;  %v2564_v53 = vsel %vm950_vm0, %v4438_v25, 0  ;;  %v1125_v35 = vld [vmem:[#allocation2 + $0x30] sm:$0xe] }
  0x79   : > { %596 = vst [vmem:[#allocation2 + $0x4c] sm:$0x1] %v595_v27  ;;  %2573 = vmatpush.bf16.msra.mxu3 %v2564_v53  ;;  %v2039_v20 = vsel %vm950_vm0, %v4388_v63, 0  ;;  %v4334_v60 = vor.u32 %v4618_v45, %v4333_v28  ;;  %v4303_v62 = vrot.slane %v1125_v35, 9  ;;  %v1196_v0 = vrot.slane %v5295_v33, 5 }
  0x7a   : > { %v772_v21 = vsel %vm5024_vm9, %v767_v14, %v771_v39  ;;  %v781_v23 = vrot.slane %v780_v13, 4  ;;  %2048 = vmatpush.bf16.msra.mxu1 %v2039_v20  ;;  %v1254_v43 = vpack.c.b16 %v1241_v11, %v1240_v30  ;;  %v4304_v44 = vrot.slane %v1126_v48, 9  ;;  %v1502_v27 = vld [vmem:[#allocation2 + $0x8] sm:$0xf]  ;;  %v1504_v14 = vld [vmem:[#allocation2 + $0x10] sm:$0xf] }
  0x7b   : > { %4356 = vmatmul.msk.bf16.gmra.mxu3 %vm925_vm10, %v4330_v9  ;;  %v907_v7 = vunpack.c.l.b16 %v772_v21  ;;  %v1200_v4 = vrot.slane %v5301_v18, 5  ;;  %v1197_v52 = vsel %vm5214_vm13, %v4303_v62, %v1196_v0  ;;  %v1535_v21 = vshrl.u32 %v1502_v27, 16  ;;  %v4463_v18 = vld [vmem:[%s6330_s1 + $0x20] sm:$0xf]  ;;  %v5357_v20 = vld [vmem:[#allocation2 + $0xc] sm:$0x1] }
  0x7c   : > { %v786_v9 = vsel %vm5024_vm9, %v781_v23, %v785_v17  ;;  %v4271_v17 = vld [vmem:[#allocation2 + $0x30] sm:$0xf]  ;;  %v1538_v33 = vshll.u32 %v1502_v27, 16  ;;  %v1552_v30 = vshll.u32 %v1504_v14, 16  ;;  %v1242_v25 = vunpack.c.l.b16 %v1197_v52  ;;  %2939 = vst.msk [vmem:[#allocation3 + $0x28] sm:$0xf] %vm2927_vm14, %v4788_v2 }
  0x7d   : > { %v908_v26 = vunpack.c.l.b16 %v786_v9  ;;  %v647_v16 = vld [vmem:[#allocation2 + $0x40] sm:$0xf]  ;;  %v1201_v19 = vsel %vm5214_vm13, %v4304_v44, %v1200_v4  ;;  %v4272_v38 = vor.u32 %v4611_v8, %v4271_v17  ;;  %v2794_v9 = vsel %vm950_vm0, %v4463_v18, 0  ;;  %v1506_v44 = vld [vmem:[#allocation2 + $0x18] sm:$0xf] }
  0x7e   : > { %v5334_v29 = vld [vmem:[#allocation2 + $0x44] sm:$0x1]  ;;  %v788_v34 = vshrl.u32 %v647_v16, 16  ;;  %v791_v41 = vshll.u32 %v647_v16, 16  ;;  %v1243_v63 = vunpack.c.l.b16 %v1201_v19  ;;  %v1537_v53 = vrot.slane %v1535_v21, 4  ;;  %2803 = vmatpush.bf16.msra.mxu0 %v2794_v9 }
  0x7f   : > { %v920_v42 = vpack.c.b16 %v908_v26, %v907_v7  ;;  %v648_v1 = vld [vmem:[#allocation2 + $0x48] sm:$0xf]  ;;  %v797_v46 = vshll.u32 %v5334_v29, 16  ;;  %v1540_v26 = vrot.slane %v1538_v33, 5  ;;  %v1554_v45 = vrot.slane %v1552_v30, 5 }
  0x80   : > { %v5337_v50 = vld [vmem:[#allocation2 + $0x4c] sm:$0x1]  ;;  %v790_v37 = vrot.slane %v788_v34, 4  ;;  %v793_v54 = vrot.slane %v791_v41, 5  ;;  %v802_v55 = vshrl.u32 %v648_v1, 16  ;;  %v805_v56 = vshll.u32 %v648_v1, 16 }
  0x81   : > { %4291 = vmatmul.msk.bf16.gmra.mxu1 %vm925_vm10, %v4268_v49  ;;  %v811_v57 = vshll.u32 %v5337_v50, 16  ;;  %v799_v6 = vrot.slane %v797_v46, 5  ;;  %v1549_v49 = vshrl.u32 %v1504_v14, 16  ;;  %v5359_v16 = vld [vmem:[#allocation2 + $0x14] sm:$0x1]  ;;  %v1255_v41 = vpack.c.b16 %v1243_v63, %v1242_v25 }
  0x82   : > { %v794_v39 = vor.u32 %v793_v54, %v790_v37  ;;  %v804_v31 = vrot.slane %v802_v55, 4  ;;  %v807_v3 = vrot.slane %v805_v56, 5  ;;  %v1127_v35 = vld [vmem:[#allocation2 + $0x40] sm:$0xe]  ;;  %v1128_v1 = vld [vmem:[#allocation2 + $0x48] sm:$0xe] }
  0x83   : > { %v813_v47 = vrot.slane %v811_v57, 5  ;;  %v1551_v28 = vrot.slane %v1549_v49, 4  ;;  %v1558_v48 = vshll.u32 %v5359_v16, 16  ;;  %v4337_v37 = vld [vmem:[#allocation2 + $0x38] sm:$0xf]  ;;  %v4305_v55 = vrot.slane %v1127_v35, 9 }
  0x84   : > { %v795_v5 = vrot.slane %v794_v39, 4  ;;  %v808_v12 = vor.u32 %v807_v3, %v804_v31  ;;  %v4619_v54 = vld [vmem:[#allocation2 + $0x3c] sm:$0xf0]  ;;  %v1204_v56 = vrot.slane %v5334_v29, 5  ;;  %v4306_v57 = vrot.slane %v1128_v1, 9 }
  0x85   : > { %4252 = vmatmul.msk.bf16.gmra.mxu0 %vm925_vm10, %v920_v42  ;;  %v1541_v42 = vor.u32 %v1540_v26, %v1537_v53  ;;  %v1555_v46 = vor.u32 %v1554_v45, %v1551_v28  ;;  %v4338_v3 = vor.u32 %v4619_v54, %v4337_v37  ;;  %v1560_v0 = vrot.slane %v1558_v48, 5  ;;  %v1508_v4 = vld [vmem:[#allocation2 + $0x20] sm:$0xf]  ;;  %v5377_v18 = vld [vmem:[#allocation2 + $0x1c] sm:$0x1] }
  0x86   : > { %4316 = vmatmul.msk.bf16.gmra.mxu2 %vm925_vm10, %v1254_v43  ;;  %v809_v13 = vrot.slane %v808_v12, 4  ;;  %v800_v23 = vsel %vm5024_vm9, %v795_v5, %v799_v6  ;;  %v1544_v43 = vshll.u32 %v5357_v20, 16  ;;  %v4275_v5 = vld [vmem:[#allocation2 + $0x40] sm:$0xf]  ;;  %v4612_v6 = vld [vmem:[#allocation2 + $0x44] sm:$0xf0]  ;;  %v1205_v12 = vsel %vm5214_vm13, %v4305_v55, %v1204_v56 }
  0x87   : > { %v909_v7 = vunpack.c.l.b16 %v800_v23  ;;  %v1542_v39 = vrot.slane %v1541_v42, 4  ;;  %v1556_v62 = vrot.slane %v1555_v46, 4  ;;  %v1563_v27 = vshrl.u32 %v1506_v44, 16  ;;  %v4341_v9 = vld [vmem:[#allocation2 + $0x48] sm:$0xf] }
  0x88   : > { %v814_v15 = vsel %vm5024_vm9, %v809_v13, %v813_v47  ;;  %v1546_v31 = vrot.slane %v1544_v43, 5  ;;  %v1566_v14 = vshll.u32 %v1506_v44, 16  ;;  %v1577_v13 = vshrl.u32 %v1508_v4, 16  ;;  %v1129_v53 = vld [vmem:[#allocation2 + $0x50] sm:$0xe] }
  0x89   : > { %v910_v11 = vunpack.c.l.b16 %v814_v15  ;;  %v1580_v17 = vshll.u32 %v1508_v4, 16  ;;  %v4276_v8 = vor.u32 %v4612_v6, %v4275_v5  ;;  %v1244_v52 = vunpack.c.l.b16 %v1205_v12  ;;  %v1130_v26 = vld [vmem:[#allocation2 + $0x58] sm:$0xe]  ;;  %v1510_v1 = vld [vmem:[#allocation2 + $0x28] sm:$0xf] }
  0x8a   : > { %v1547_v47 = vsel %vm5024_vm9, %v1542_v39, %v1546_v31  ;;  %v1565_v23 = vrot.slane %v1563_v27, 4  ;;  %v1568_v15 = vrot.slane %v1566_v14, 5  ;;  %v1579_v49 = vrot.slane %v1577_v13, 4  ;;  %v1512_v54 = vld [vmem:[#allocation2 + $0x30] sm:$0xf] }
  0x8b   : > { %4357 = vmatmul.msk.bf16.gmra.mxu3 %vm925_vm10, %v4334_v60  ;;  %v921_v34 = vpack.c.b16 %v910_v11, %v909_v7  ;;  %v1208_v60 = vrot.slane %v5337_v50, 5  ;;  %v1561_v50 = vsel %vm5024_vm9, %v1556_v62, %v1560_v0  ;;  %v1760_v21 = vunpack.c.l.b16 %v1547_v47  ;;  %v4620_v7 = vld [vmem:[#allocation2 + $0x4c] sm:$0xf0]  ;;  %v4722_v55 = vld [vmem:[%s6333_s4] ss:$0 sm:$0xff] }
  0x8c   : > { %v1761_v33 = vunpack.c.l.b16 %v1561_v50  ;;  %v1582_v30 = vrot.slane %v1580_v17, 5  ;;  %v1572_v11 = vshll.u32 %v5377_v18, 16  ;;  %v1569_v28 = vor.u32 %v1568_v15, %v1565_v23  ;;  %v4723_v62 = vld [vmem:[%s6333_s4 + $0x1] ss:$0 sm:$0xff]  ;;  %v4613_v44 = vld [vmem:[#allocation2 + $0x54] sm:$0xf0] }
  0x8d   : > { %v1209_v29 = vsel %vm5214_vm13, %v4306_v57, %v1208_v60  ;;  %v4342_v42 = vor.u32 %v4620_v7, %v4341_v9  ;;  %v1212_v43 = vrot.slane %v5153_v61, 5  ;;  %v4307_v46 = vrot.slane %v1129_v53, 9  ;;  %v4279_v61 = vld [vmem:[#allocation2 + $0x50] sm:$0xf]  ;;  %v5404_v15 = vld [vmem:[#allocation2 + $0x2c] sm:$0x1] }
  0x8e   : > { %v1245_v19 = vunpack.c.l.b16 %v1209_v29  ;;  %v1776_v63 = vpack.c.b16 %v1761_v33, %v1760_v21  ;;  %v1583_v45 = vor.u32 %v1582_v30, %v1579_v49  ;;  %v4308_v48 = vrot.slane %v1130_v26, 9  ;;  %v5406_v49 = vld [vmem:[#allocation2 + $0x34] sm:$0x1]  ;;  %v1132_v9 = vld [vmem:[#allocation2 + $0x68] sm:$0xe] }
  0x8f   : > { %v1216_v37 = vrot.slane %v5171_v10, 5  ;;  %v1570_v57 = vrot.slane %v1569_v28, 4  ;;  %v1574_v60 = vrot.slane %v1572_v11, 5  ;;  %v1594_v4 = vshll.u32 %v1510_v1, 16  ;;  %2940 = vst.msk [vmem:[#allocation3 + $0x2c] sm:$0x1] %vm2929_vm15, %v4788_v2 }
  0x90   : > { %v1256_v25 = vpack.c.b16 %v1245_v19, %v1244_v52  ;;  %v1584_v39 = vrot.slane %v1583_v45, 4  ;;  %v1605_v10 = vshrl.u32 %v1512_v54, 16  ;;  %v1608_v5 = vshll.u32 %v1512_v54, 16  ;;  %2941 = vst.msk [vmem:[#allocation3 + $0x30] sm:$0xf] %vm2927_vm14, %v4788_v2 }
  0x91   : > { %4292 = vmatmul.msk.bf16.gmra.mxu1 %vm925_vm10, %v4272_v38  ;;  %v5379_v38 = vld [vmem:[#allocation2 + $0x24] sm:$0x1]  ;;  %v1213_v12 = vsel %vm5214_vm13, %v4307_v46, %v1212_v43  ;;  %v1217_v29 = vsel %vm5214_vm13, %v4308_v48, %v1216_v37  ;;  %v1575_v47 = vsel %vm5024_vm9, %v1570_v57, %v1574_v60  ;;  %v4280_v50 = vor.u32 %v4613_v44, %v4279_v61  ;;  %v633_v48 = vld [vmem:[#allocation2 + $0x80] sm:$0xf]  ;;  %v1514_v60 = vld [vmem:[#allocation2 + $0x38] sm:$0xf] }
  0x92   : > { %v1596_v13 = vrot.slane %v1594_v4, 5  ;;  %v1607_v17 = vrot.slane %v1605_v10, 4  ;;  %v1246_v19 = vunpack.c.l.b16 %v1213_v12  ;;  %v1247_v21 = vunpack.c.l.b16 %v1217_v29  ;;  %v4614_v61 = vld [vmem:[#allocation2 + $0x64] sm:$0xf0]  ;;  %2942 = vst.msk [vmem:[#allocation3 + $0x34] sm:$0x1] %vm2929_vm15, %v4788_v2 }
  0x93   : > { %v1762_v33 = vunpack.c.l.b16 %v1575_v47  ;;  %v1600_v11 = vshll.u32 %v5404_v15, 16  ;;  %v1614_v26 = vshll.u32 %v5406_v49, 16  ;;  %v1220_v43 = vrot.slane %v5180_v58, 5  ;;  %v4283_v58 = vld [vmem:[#allocation2 + $0x60] sm:$0xf] }
  0x94   : > { %v1257_v28 = vpack.c.b16 %v1247_v21, %v1246_v19  ;;  %v1224_v46 = vrot.slane %v5184_v40, 5  ;;  %v1619_v44 = vshrl.u32 %v1514_v60, 16  ;;  %v1622_v4 = vshll.u32 %v1514_v60, 16  ;;  %v1133_v21 = vld [vmem:[#allocation2 + $0x70] sm:$0xe] }
  0x95   : > { %4253 = vmatmul.msk.bf16.gmra.mxu0 %vm925_vm10, %v921_v34  ;;  %v1586_v34 = vshll.u32 %v5379_v38, 16  ;;  %v1602_v54 = vrot.slane %v1600_v11, 5  ;;  %v4622_v11 = vld [vmem:[#allocation2 + $0x6c] sm:$0xf0]  ;;  %2943 = vst.msk [vmem:[#allocation3 + $0x38] sm:$0xf] %vm2927_vm14, %v4788_v2 }
  0x96   : > { %4317 = vmatmul.msk.bf16.gmra.mxu2 %vm925_vm10, %v1255_v41  ;;  %v4721_v41 = vld [vmem:[%s4887_s15 + $0x38] sm:$0xff]   ;;  %2944 = vst.msk [vmem:[#allocation3 + $0x3c] sm:$0x1] %vm2929_vm15, %v4788_v2 }
  0x97   : > { %v4666_v35 = vunpack.c.h.bf16 %v4721_v41  ;;  %v1588_v31 = vrot.slane %v1586_v34, 5  ;;  %v4345_v34 = vld [vmem:[#allocation2 + $0x58] sm:$0xf]  ;;  %v4621_v41 = vld [vmem:[#allocation2 + $0x5c] sm:$0xf0] }
  0x98   : > { %v4346_v57 = vor.u32 %v4621_v41, %v4345_v34  ;;  %v1232_v34 = vrot.slane %v5199_v22, 5  ;;  %2945 = vst.msk [vmem:[#allocation3 + $0x40] sm:$0xf] %vm2927_vm14, %v4788_v2 }
  0x99   : > { %v304_v56 = vmul.f32 %v4722_v55, %v4666_v35  ;;  %v1589_v27 = vsel %vm5024_vm9, %v1584_v39, %v1588_v31  ;;  %v1516_v39 = vld [vmem:[#allocation2 + $0x40] sm:$0xf]  ;;  %2946 = vst.msk [vmem:[#allocation3 + $0x44] sm:$0x1] %vm2929_vm15, %v4788_v2 }
  0x9a   : > { %v1763_v23 = vunpack.c.l.b16 %v1589_v27  ;;  %v1633_v10 = vshrl.u32 %v1516_v39, 16  ;;  %v1636_v32 = vshll.u32 %v1516_v39, 16  ;;  %v1621_v27 = vrot.slane %v1619_v44, 4  ;;  %2947 = vst.msk [vmem:[#allocation3 + $0x48] sm:$0xf] %vm2927_vm14, %v4788_v2 }
  0x9b   : > { %4358 = vmatmul.msk.bf16.gmra.mxu3 %vm925_vm10, %v4338_v3  ;;  %v1591_v3 = vshrl.u32 %v1510_v1, 16  ;;  %v321_v0 = vadd.f32 %v4723_v62, %v304_v56  ;;  %v4310_v1 = vrot.slane %v1132_v9, 9  ;;  %v1616_v56 = vrot.slane %v1614_v26, 5  ;;  %2948 = vst.msk [vmem:[#allocation3 + $0x4c] sm:$0x1] %vm2929_vm15, %v4788_v2 }
  0x9c   : > { %v1777_v45 = vpack.c.b16 %v1763_v23, %v1762_v33  ;;  %v1134_v33 = vld [vmem:[#allocation2 + $0x78] sm:$0xe]  ;;  %v4311_v26 = vrot.slane %v1133_v21, 9  ;;  %2949 = vst.msk [vmem:[#allocation3 + $0x50] sm:$0xf] %vm2927_vm14, %v4788_v2 }
  0x9d   : > { %v375_v6 = vpack.c.bf16 %v321_v0, %v321_v0  ;;  %v1593_v14 = vrot.slane %v1591_v3, 4  ;;  %v1225_v3 = vsel %vm5214_vm13, %v4310_v1, %v1224_v46  ;;  %v1520_v1 = vld [vmem:[#allocation2 + $0x50] sm:$0xf]  ;;  %2950 = vst.msk [vmem:[#allocation3 + $0x54] sm:$0x1] %vm2929_vm15, %v4788_v2 }
  0x9e   : > { %v1249_v12 = vunpack.c.l.b16 %v1225_v3  ;;  %2951 = vst.msk [vmem:[#allocation3 + $0x58] sm:$0xf] %vm2927_vm14, %v4788_v2 }
  0x9f   : > { %v497_v52 = vshrl.u32 %v375_v6, 16  ;;  %v500_v30 = vshll.u32 %v375_v6, 16  ;;  %v1597_v7 = vor.u32 %v1596_v13, %v1593_v14  ;;  %v1635_v14 = vrot.slane %v1633_v10, 4  ;;  %2952 = vst.msk [vmem:[#allocation3 + $0x5c] sm:$0x1] %vm2929_vm15, %v4788_v2 }
  0xa0   : > { %v1638_v13 = vrot.slane %v1636_v32, 5  ;;  %2953 = vst.msk [vmem:[#allocation3 + $0x60] sm:$0xf] %vm2927_vm14, %v4788_v2 }
  0xa1   : > { %4293 = vmatmul.msk.bf16.gmra.mxu1 %vm925_vm10, %v4276_v8  ;;  %v1610_v8 = vrot.slane %v1608_v5, 5  ;;  %v1598_v37 = vrot.slane %v1597_v7, 4  ;;  %v4284_v5 = vor.u32 %v4614_v61, %v4283_v58  ;;  %v4349_v7 = vld [vmem:[#allocation2 + $0x68] sm:$0xf]  ;;  %2954 = vst.msk [vmem:[#allocation3 + $0x64] sm:$0x1] %vm2929_vm15, %v4788_v2 }
  0xa2   : > { %v4350_v46 = vor.u32 %v4622_v11, %v4349_v7  ;;  %2955 = vst.msk [vmem:[#allocation3 + $0x68] sm:$0xf] %vm2927_vm14, %v4788_v2 }
  0xa3   : > { %v1611_v53 = vor.u32 %v1610_v8, %v1607_v17  ;;  %v1603_v62 = vsel %vm5024_vm9, %v1598_v37, %v1602_v54  ;;  %v5429_v17 = vld [vmem:[#allocation2 + $0x3c] sm:$0x1]  ;;  %v5431_v8 = vld [vmem:[#allocation2 + $0x44] sm:$0x1]  ;;  %v4287_v54 = vld [vmem:[#allocation2 + $0x70] sm:$0xf] }
  0xa4   : > { %v1764_v29 = vunpack.c.l.b16 %v1603_v62  ;;  %v1642_v9 = vshll.u32 %v5431_v8, 16  ;;  %2956 = vst.msk [vmem:[#allocation3 + $0x6c] sm:$0x1] %vm2929_vm15, %v4788_v2 }
  0xa5   : > { %4364 = vmatmul.msk.bf16.vlgmr.msrb.gmra.mxu0 %vm925_vm10, %v1776_v63  ;;  %v1131_v63 = vld [vmem:[#allocation2 + $0x60] sm:$0xe]  ;;  %v1612_v55 = vrot.slane %v1611_v53, 4  ;;  %v1518_v53 = vld [vmem:[#allocation2 + $0x48] sm:$0xf] }
  0xa6   : > { %4318 = vmatmul.msk.bf16.gmra.mxu2 %vm925_vm10, %v1256_v25  ;;  %v5408_v25 = vrot.slane %v497_v52, 7  ;;  %v1650_v37 = vshll.u32 %v1518_v53, 16  ;;  %2957 = vst.msk [vmem:[#allocation3 + $0x70] sm:$0xf] %vm2927_vm14, %v4788_v2 }
  0xa7   : > { %v1617_v0 = vsel %vm5024_vm9, %v1612_v55, %v1616_v56  ;;  %v4615_v55 = vld [vmem:[#allocation2 + $0x74] sm:$0xf0]  ;;  %v1661_v56 = vshrl.u32 %v1520_v1, 16  ;;  %2958 = vst.msk [vmem:[#allocation3 + $0x74] sm:$0x1] %vm2929_vm15, %v4788_v2 }
  0xa8   : > { %v502_v35 = vor.u32 %v500_v30, %v5408_v25  ;;  %v1765_v47 = vunpack.c.l.b16 %v1617_v0  ;;  %v1628_v30 = vshll.u32 %v5429_v17, 16  ;;  %v1652_v61 = vrot.slane %v1650_v37, 5  ;;  %v1524_v37 = vld [vmem:[#allocation2 + $0x60] sm:$0xf]  ;;  %2959 = vst.msk [vmem:[#allocation3 + $0x78] sm:$0xf] %vm2927_vm14, %v4788_v2 }
  0xa9   : > { %v4288_v62 = vor.u32 %v4615_v55, %v4287_v54  ;;  %2960 = vst.msk [vmem:[#allocation3 + $0x7c] sm:$0x1] %vm2929_vm15, %v4788_v2 }
  0xaa   : > { %v634_v31 = vsel %vm4940_vm5, %v502_v35, %v633_v48  ;;  %v1778_v19 = vpack.c.b16 %v1765_v47, %v1764_v29  ;;  %v1630_v35 = vrot.slane %v1628_v30, 5  ;;  %v1647_v48 = vshrl.u32 %v1518_v53, 16  ;;  %v5455_v29 = vld [vmem:[#allocation2 + $0x54] sm:$0x1]  ;;  %2961 = vst.msk [vmem:[#allocation3 + $0x80] sm:$0xf] %vm2927_vm14, %v4788_v2 }
  0xab   : > { %4359 = vmatmul.msk.bf16.gmra.mxu3 %vm925_vm10, %v4342_v42  ;;  %v4309_v42 = vrot.slane %v1131_v63, 9  ;;  %635 = vst [vmem:[#allocation2 + $0x80] sm:$0xf] %v634_v31  ;;  %v1639_v63 = vor.u32 %v1638_v13, %v1635_v14  ;;  %v5449_v31 = vld [vmem:[#allocation2 + $0x4c] sm:$0x1]  ;;  %v1670_v7 = vshll.u32 %v5455_v29, 16 }
  0xac   : > { %v1649_v58 = vrot.slane %v1647_v48, 4  ;;  %v1656_v47 = vshll.u32 %v5449_v31, 16  ;;  %v1876_v13 = vld [vmem:[#allocation2 + $0x8] sm:$0xe]  ;;  %v1522_v48 = vld [vmem:[#allocation2 + $0x58] sm:$0xf] }
  0xad   : > { %v1221_v40 = vsel %vm5214_vm13, %v4309_v42, %v1220_v43  ;;  %v1640_v42 = vrot.slane %v1639_v63, 4  ;;  %v1644_v43 = vrot.slane %v1642_v9, 5  ;;  %v4372_v11 = vrot.slane %v1876_v13, 9  ;;  %2962 = vst.msk [vmem:[#allocation3 + $0x84] sm:$0x1] %vm2929_vm15, %v4788_v2 }
  0xae   : > { %v1248_v6 = vunpack.c.l.b16 %v1221_v40  ;;  %v2257_v40 = vld [vmem:[#allocation2 + $0x10] sm:$0xf]  ;;  %v1653_v14 = vor.u32 %v1652_v61, %v1649_v58 }
  0xaf   : > { %v1645_v39 = vsel %vm5024_vm9, %v1640_v42, %v1644_v43 }
  0xb0   : > { %v1258_v52 = vpack.c.b16 %v1249_v12, %v1248_v6  ;;  %v1767_v32 = vunpack.c.l.b16 %v1645_v39 }
  0xb1   : > { %4294 = vmatmul.msk.bf16.gmra.mxu1 %vm925_vm10, %v4280_v50  ;;  %v1624_v50 = vrot.slane %v1622_v4, 5  ;;  %v2259_v4 = vld [vmem:[#allocation2 + $0x18] sm:$0xf] }
  0xb2   : > { %v2307_v21 = vshll.u32 %v2259_v4, 16  ;;  %v4623_v43 = vld [vmem:[#allocation2 + $0x7c] sm:$0xf0] }
  0xb3   : > { %v1625_v23 = vor.u32 %v1624_v50, %v1621_v27  ;;  %v2290_v27 = vshrl.u32 %v2257_v40, 16  ;;  %v2293_v50 = vshll.u32 %v2257_v40, 16  ;;  %v1675_v40 = vshrl.u32 %v1522_v48, 16 }
  0xb4   : > { %v2309_v42 = vrot.slane %v2307_v21, 5 }
  0xb5   : > { %4365 = vmatmul.msk.bf16.gmra.mxu0 %vm925_vm10, %v1777_v45  ;;  %v4312_v45 = vrot.slane %v1134_v33, 9  ;;  %v1626_v41 = vrot.slane %v1625_v23, 4  ;;  %v1926_v33 = vrot.slane %v5357_v20, 5  ;;  %v1930_v23 = vrot.slane %v5359_v16, 5  ;;  %v4353_v20 = vld [vmem:[#allocation2 + $0x78] sm:$0xf] }
  0xb6   : > { %4319 = vmatmul.msk.bf16.gmra.mxu2 %vm925_vm10, %v1257_v28  ;;  %v1228_v28 = vrot.slane %v5189_v51, 5  ;;  %v5464_v16 = vld [vmem:[#allocation2 + $0x1c] sm:$0x1] }
  0xb7   : > { %v1233_v22 = vsel %vm5214_vm13, %v4312_v45, %v1232_v34  ;;  %v1631_v60 = vsel %vm5024_vm9, %v1626_v41, %v1630_v35  ;;  %v1654_v45 = vrot.slane %v1653_v14, 4  ;;  %v1658_v34 = vrot.slane %v1656_v47, 5  ;;  %v5462_v41 = vld [vmem:[#allocation2 + $0x14] sm:$0x1] }
  0xb8   : > { %v1229_v51 = vsel %vm5214_vm13, %v4311_v26, %v1228_v28  ;;  %v1251_v44 = vunpack.c.l.b16 %v1233_v22  ;;  %v1766_v10 = vunpack.c.l.b16 %v1631_v60  ;;  %v2292_v26 = vrot.slane %v2290_v27, 4  ;;  %v2261_v27 = vld [vmem:[#allocation2 + $0x20] sm:$0xf] }
  0xb9   : > { %v5451_v3 = vpop.f32.mrf.mxu0  ;;  %v1250_v0 = vunpack.c.l.b16 %v1229_v51  ;;  %v2295_v28 = vrot.slane %v2293_v50, 5  ;;  %v1927_v51 = vsel %vm5214_vm13, %v4372_v11, %v1926_v33  ;;  %v4354_v60 = vor.u32 %v4623_v43, %v4353_v20  ;;  %v1878_v43 = vld [vmem:[#allocation2 + $0x18] sm:$0xe] }
  0xba   : > { %v1779_v63 = vpack.c.b16 %v1767_v32, %v1766_v10  ;;  %v1659_v39 = vsel %vm5024_vm9, %v1654_v45, %v1658_v34  ;;  %v2313_v61 = vshll.u32 %v5464_v16, 16  ;;  %v1990_v10 = vunpack.c.l.b16 %v1927_v51  ;;  %v4400_v45 = vld [vmem:[#allocation2 + $0x10] sm:$0xf]  ;;  %v4624_v34 = vld [vmem:[#allocation2 + $0x14] sm:$0xf0] }
  0xbb   : > { %4360 = vmatmul.msk.bf16.gmra.mxu3 %vm925_vm10, %v4346_v57  ;;  %v1664_v57 = vshll.u32 %v1520_v1, 16  ;;  %v1259_v30 = vpack.c.b16 %v1251_v44, %v1250_v0  ;;  %v1689_v0 = vshrl.u32 %v1524_v37, 16  ;;  %v1692_v44 = vshll.u32 %v1524_v37, 16 }
  0xbc   : > { %v1768_v50 = vunpack.c.l.b16 %v1659_v39  ;;  %v2315_v13 = vrot.slane %v2313_v61, 5  ;;  %v2318_v11 = vshrl.u32 %v2261_v27, 16 }
  0xbd   : > { %v1666_v6 = vrot.slane %v1664_v57, 5  ;;  %v2299_v57 = vshll.u32 %v5462_v41, 16  ;;  %v1691_v21 = vrot.slane %v1689_v0, 4  ;;  %v1694_v33 = vrot.slane %v1692_v44, 5 }
  0xbe   : > { %v1938_v44 = vrot.slane %v5379_v38, 5 }
  0xbf   : > { %v2301_v47 = vrot.slane %v2299_v57, 5 }
  0xc1   : > { %4295 = vmatmul.msk.bf16.gmra.mxu1 %vm925_vm10, %v4284_v5  ;;  %v1663_v5 = vrot.slane %v1661_v56, 4  ;;  %v5468_v54 = vpop.f32.mrf.mxu0  ;;  %v2296_v56 = vor.u32 %v2295_v28, %v2292_v26 }
  0xc3   : > { %v1667_v9 = vor.u32 %v1666_v6, %v1663_v5  ;;  %v2297_v6 = vrot.slane %v2296_v56, 4  ;;  %v1695_v56 = vor.u32 %v1694_v33, %v1691_v21  ;;  %v503_v21 = vrot.slane %v5408_v25, 4 }
  0xc5   : > { %4366 = vmatmul.msk.bf16.gmra.mxu0 %vm925_vm10, %v1778_v19  ;;  %v2304_v19 = vshrl.u32 %v2259_v4, 16  ;;  %v1668_v1 = vrot.slane %v1667_v9, 4  ;;  %v5485_v9 = vld [vmem:[#allocation2 + $0x5c] sm:$0x1] }
  0xc6   : > { %4320 = vmatmul.msk.bf16.gmra.mxu2 %vm925_vm10, %v1258_v52  ;;  %v1877_v52 = vld [vmem:[#allocation2 + $0x10] sm:$0xe] }
  0xc7   : > { %v4373_v53 = vrot.slane %v1877_v52, 9  ;;  %v2306_v35 = vrot.slane %v2304_v19, 4  ;;  %v1677_v52 = vrot.slane %v1675_v40, 4  ;;  %v4374_v40 = vrot.slane %v1878_v43, 9 }
  0xc9   : > { %v1931_v22 = vsel %vm5214_vm13, %v4373_v53, %v1930_v23  ;;  %v2310_v58 = vor.u32 %v2309_v42, %v2306_v35  ;;  %v2263_v23 = vld [vmem:[#allocation2 + $0x28] sm:$0xf]  ;;  %v2321_v53 = vshll.u32 %v2261_v27, 16  ;;  %v2302_v35 = vsel %vm5024_vm9, %v2297_v6, %v2301_v47 }
  0xca   : > { %v1991_v32 = vunpack.c.l.b16 %v1931_v22  ;;  %v1684_v22 = vshll.u32 %v5485_v9, 16  ;;  %v1526_v27 = vld [vmem:[#allocation2 + $0x68] sm:$0xf] }
  0xcb   : > { %4361 = vmatmul.msk.bf16.gmra.mxu3 %vm925_vm10, %v4350_v46  ;;  %v1672_v46 = vrot.slane %v1670_v7, 5  ;;  %v2311_v14 = vrot.slane %v2310_v58, 4  ;;  %v5487_v7 = vld [vmem:[#allocation2 + $0x64] sm:$0x1]  ;;  %v2320_v58 = vrot.slane %v2318_v11, 4  ;;  %v2323_v61 = vrot.slane %v2321_v53, 5 }
  0xcc   : > { %v1698_v57 = vshll.u32 %v5487_v7, 16  ;;  %v1703_v53 = vshrl.u32 %v1526_v27, 16 }
  0xcd   : > { %v1673_v5 = vsel %vm5024_vm9, %v1668_v1, %v1672_v46  ;;  %v2316_v20 = vsel %vm5024_vm9, %v2311_v14, %v2315_v13  ;;  %v1879_v1 = vld [vmem:[#allocation2 + $0x20] sm:$0xe]  ;;  %v2332_v46 = vshrl.u32 %v2263_v23, 16  ;;  %v1696_v13 = vrot.slane %v1695_v56, 4 }
  0xce   : > { %v5453_v12 = vpop.f32.mrf.mxu1  ;;  %v4375_v0 = vrot.slane %v1879_v1, 9  ;;  %v2324_v33 = vor.u32 %v2323_v61, %v2320_v58  ;;  %v5529_v61 = vld [vmem:[#allocation2 + $0x24] sm:$0xf0] }
  0xcf   : > { %v2334_v6 = vrot.slane %v2332_v46, 4 }
  0xd0   : > { %v1939_v11 = vsel %vm5214_vm13, %v4375_v0, %v1938_v44  ;;  %v2265_v0 = vld [vmem:[#allocation2 + $0x30] sm:$0xf] }
  0xd1   : > { %4296 = vmatmul.msk.bf16.gmra.mxu1 %vm925_vm10, %v4288_v62  ;;  %v1678_v62 = vshll.u32 %v1522_v48, 16  ;;  %v2335_v48 = vshll.u32 %v2263_v23, 16  ;;  %v1528_v23 = vld [vmem:[#allocation2 + $0x70] sm:$0xf] }
  0xd2   : > { %v1717_v46 = vshrl.u32 %v1528_v23, 16 }
  0xd3   : > { %v1680_v19 = vrot.slane %v1678_v62, 5  ;;  %v1934_v62 = vrot.slane %v5377_v18, 5  ;;  %v2337_v47 = vrot.slane %v2335_v48, 5  ;;  %v1720_v48 = vshll.u32 %v1528_v23, 16 }
  0xd5   : > { %4367 = vmatmul.msk.bf16.gmra.mxu0 %vm925_vm10, %v1779_v63  ;;  %v2006_v63 = vpack.c.b16 %v1991_v32, %v1990_v10  ;;  %v1681_v51 = vor.u32 %v1680_v19, %v1677_v52  ;;  %v5505_v10 = vld [vmem:[#allocation2 + $0x24] sm:$0x1]  ;;  %v2515_v32 = vunpack.c.l.b16 %v2302_v35  ;;  %v1700_v52 = vrot.slane %v1698_v57, 5  ;;  %v5507_v19 = vld [vmem:[#allocation2 + $0x2c] sm:$0x1] }
  0xd6   : > { %4321 = vmatmul.msk.bf16.gmra.mxu2 %vm925_vm10, %v1259_v30  ;;  %v5470_v55 = vpop.f32.mrf.mxu1  ;;  %v1769_v30 = vunpack.c.l.b16 %v1673_v5  ;;  %v2516_v5 = vunpack.c.l.b16 %v2316_v20  ;;  %v2327_v18 = vshll.u32 %v5505_v10, 16  ;;  %v2341_v35 = vshll.u32 %v5507_v19, 16  ;;  %v636_v20 = vld [vmem:[#allocation2 + $0x84] sm:$0x1] }
  0xd7   : > { %v1682_v14 = vrot.slane %v1681_v51, 4  ;;  %v1701_v1 = vsel %vm5024_vm9, %v1696_v13, %v1700_v52  ;;  %v1993_v57 = vunpack.c.l.b16 %v1939_v11  ;;  %v637_v44 = vsel %vm4948_vm6, %v503_v21, %v636_v20 }
  0xd8   : > { %v1780_v39 = vpack.c.b16 %v1769_v30, %v1768_v50  ;;  %v1686_v50 = vrot.slane %v1684_v22, 5  ;;  %v2531_v25 = vpack.c.b16 %v2516_v5, %v2515_v32  ;;  %v2343_v5 = vrot.slane %v2341_v35, 5  ;;  %638 = vst [vmem:[#allocation2 + $0x84] sm:$0x1] %v637_v44 }
  0xd9   : > { %v5480_v4 = vpop.f32.mrf.mxu2  ;;  %v1722_v13 = vrot.slane %v1720_v48, 5  ;;  %v2346_v21 = vshrl.u32 %v2265_v0, 16  ;;  %v4376_v48 = vrot.slane %v1880_v36, 9 }
  0xda   : > { %v1687_v43 = vsel %vm5024_vm9, %v1682_v14, %v1686_v50  ;;  %v5534_v14 = vld [vmem:[#allocation2 + $0x6c] sm:$0x1]  ;;  %v5536_v50 = vld [vmem:[#allocation2 + $0x74] sm:$0x1] }
  0xdb   : > { %4362 = vmatmul.msk.bf16.gmra.mxu3 %vm925_vm10, %v4354_v60  ;;  %v1712_v20 = vshll.u32 %v5534_v14, 16 }
  0xde   : > { %v5489_v26 = vpop.f32.mrf.mxu3  ;;  %v1079_v28 = vpop.f32.mrf.mxu1 }
  0xdf   : > { %v1080_v42 = vadd.f32 %v1079_v28, %v5451_v3  ;;  %v4401_v3 = vor.u32 %v4624_v34, %v4400_v45  ;;  %v1706_v28 = vshll.u32 %v1526_v27, 16  ;;  %v2338_v34 = vor.u32 %v2337_v47, %v2334_v6  ;;  %v2267_v6 = vld [vmem:[#allocation2 + $0x38] sm:$0xf] }
  0xe0   : > { %v5496_v37 = vpop.f32.mrf.mxu0  ;;  %v1770_v47 = vunpack.c.l.b16 %v1687_v43  ;;  %v1771_v27 = vunpack.c.l.b16 %v1701_v1  ;;  %v1726_v43 = vshll.u32 %v5536_v50, 16 }
  0xe1   : > { %v5500_v60 = vpop.f32.mrf.mxu2  ;;  %4389 = vmatmul.msk.bf16.vlgmr.msra.gmra.mxu1 %vm925_vm10, %v2006_v63  ;;  %v1935_v63 = vsel %vm5214_vm13, %v4374_v40, %v1934_v62  ;;  %v1705_v40 = vrot.slane %v1703_v53, 4  ;;  %v1708_v62 = vrot.slane %v1706_v28, 5  ;;  %v2339_v32 = vrot.slane %v2338_v34, 4  ;;  %v1881_v53 = vld [vmem:[#allocation2 + $0x30] sm:$0xe] }
  0xe2   : > { %v1992_v56 = vunpack.c.l.b16 %v1935_v63  ;;  %v2360_v28 = vshrl.u32 %v2267_v6, 16 }
  0xe3   : > { %v1709_v11 = vor.u32 %v1708_v62, %v1705_v40  ;;  %v2344_v1 = vsel %vm5024_vm9, %v2339_v32, %v2343_v5  ;;  %v5554_v40 = vld [vmem:[#allocation2 + $0x3c] sm:$0x1] }
  0xe4   : > { %v2007_v52 = vpack.c.b16 %v1993_v57, %v1992_v56  ;;  %v4377_v57 = vrot.slane %v1881_v53, 9  ;;  %v2362_v62 = vrot.slane %v2360_v28, 4  ;;  %v2518_v5 = vunpack.c.l.b16 %v2344_v1  ;;  %v1532_v28 = vld [vmem:[#allocation2 + $0x80] sm:$0xf] }
  0xe5   : > { %4368 = vmatmul.msk.bf16.gmra.mxu0 %vm925_vm10, %v1780_v39  ;;  %v5527_v39 = vld [vmem:[#allocation2 + $0x20] sm:$0xf] }
  0xe6   : > { %v5511_v38 = vpop.f32.mrf.mxu3  ;;  %4430 = vmatmul.msk.bf16.vlgmr.msra.gmra.mxu2 %vm925_vm10, %v4401_v3  ;;  %v1081_v30 = vpop.f32.mrf.mxu1  ;;  %v2329_v3 = vrot.slane %v2327_v18, 5  ;;  %v2349_v18 = vshll.u32 %v2265_v0, 16 }
  0xe7   : > { %v1082_v45 = vadd.f32 %v1081_v30, %v5468_v54  ;;  %v2325_v54 = vrot.slane %v2324_v33, 4  ;;  %v4405_v33 = vor.u32 %v5529_v61, %v5527_v39  ;;  %v1946_v39 = vrot.slane %v5406_v49, 5 }
  0xe8   : > { %v5525_v22 = vpop.f32.mrf.mxu0  ;;  %v1781_v61 = vpack.c.b16 %v1771_v27, %v1770_v47  ;;  %v2369_v27 = vshll.u32 %v5554_v40, 16 }
  0xe9   : > { %v1296_v51 = vpop.f32.mrf.mxu2  ;;  %v2330_v63 = vsel %vm5024_vm9, %v2325_v54, %v2329_v3  ;;  %v5552_v54 = vld [vmem:[#allocation2 + $0x34] sm:$0x1]  ;;  %v2351_v3 = vrot.slane %v2349_v18, 5 }
  0xea   : > { %v1336_v58 = vadd.f32 %v1296_v51, %v1080_v42  ;;  %v1719_v42 = vrot.slane %v1717_v46, 4  ;;  %v1942_v51 = vrot.slane %v5404_v15, 5  ;;  %v2517_v32 = vunpack.c.l.b16 %v2330_v63 }
  0xeb   : > { %4439 = vmatmul.msk.bf16.vlgmr.msra.gmra.mxu3 %vm925_vm10, %v2531_v25  ;;  %v2363_v25 = vshll.u32 %v2267_v6, 16  ;;  %v1710_v15 = vrot.slane %v1709_v11, 4  ;;  %v1714_v6 = vrot.slane %v1712_v20, 5 }
  0xec   : > { %v1723_v46 = vor.u32 %v1722_v13, %v1719_v42  ;;  %v1728_v13 = vrot.slane %v1726_v43, 5  ;;  %v1943_v49 = vsel %vm5214_vm13, %v4376_v48, %v1942_v51  ;;  %v2532_v63 = vpack.c.b16 %v2518_v5, %v2517_v32 }
  0xed   : > { %v2365_v0 = vrot.slane %v2363_v25, 5  ;;  %v1715_v53 = vsel %vm5024_vm9, %v1710_v15, %v1714_v6  ;;  %v1994_v20 = vunpack.c.l.b16 %v1943_v49  ;;  %v2371_v51 = vrot.slane %v2369_v27, 5  ;;  %v2269_v15 = vld [vmem:[#allocation2 + $0x40] sm:$0xf]  ;;  %v2271_v6 = vld [vmem:[#allocation2 + $0x48] sm:$0xf] }
  0xee   : > { %v1446_v23 = vpop.f32.mrf.mxu3  ;;  %v1084_v30 = vpop.f32.mrf.mxu1  ;;  %v1724_v42 = vrot.slane %v1723_v46, 4  ;;  %v1772_v32 = vunpack.c.l.b16 %v1715_v53  ;;  %v1882_v49 = vld [vmem:[#allocation2 + $0x38] sm:$0xe]  ;;  %v5585_v53 = vld [vmem:[#allocation2 + $0x84] sm:$0x1] }
  0xef   : > { %v5542_v34 = vadd.f32 %v1446_v23, %v1336_v58  ;;  %v1085_v35 = vadd.f32 %v1084_v30, %v5496_v37  ;;  %v2348_v37 = vrot.slane %v2346_v21, 4  ;;  %v2366_v18 = vor.u32 %v2365_v0, %v2362_v62  ;;  %v1530_v23 = vld [vmem:[#allocation2 + $0x78] sm:$0xf] }
  0xf0   : > { %v1729_v25 = vsel %vm5024_vm9, %v1724_v42, %v1728_v13  ;;  %v1950_v62 = vrot.slane %v5429_v17, 5  ;;  %v1954_v0 = vrot.slane %v5431_v8, 5 }
  0xf1   : > { %v1298_v56 = vpop.f32.mrf.mxu2  ;;  %4390 = vmatmul.msk.bf16.gmra.mxu1 %vm925_vm10, %v2007_v52  ;;  %v2355_v52 = vshll.u32 %v5552_v54, 16  ;;  %v2352_v47 = vor.u32 %v2351_v3, %v2348_v37  ;;  %v4626_v37 = vld [vmem:[#allocation2 + $0x34] sm:$0xf0]  ;;  %v1745_v3 = vshrl.u32 %v1532_v28, 16  ;;  %v1773_v5 = vunpack.c.l.b16 %v1729_v25 }
  0xf2   : > { %v1337_v58 = vadd.f32 %v1298_v56, %v1082_v45  ;;  %v973_v44 = vpop.f32.mrf.mxu0  ;;  %v1947_v45 = vsel %vm5214_vm13, %v4377_v57, %v1946_v39  ;;  %v1731_v56 = vshrl.u32 %v1530_v23, 16  ;;  %v1734_v57 = vshll.u32 %v1530_v23, 16 }
  0xf3   : > { %v1995_v43 = vunpack.c.l.b16 %v1947_v45  ;;  %v2357_v1 = vrot.slane %v2355_v52, 5  ;;  %v2353_v48 = vrot.slane %v2352_v47, 4  ;;  %v1883_v45 = vld [vmem:[#allocation2 + $0x40] sm:$0xe]  ;;  %v2377_v25 = vshll.u32 %v2269_v15, 16 }
  0xf4   : > { %v1733_v52 = vrot.slane %v1731_v56, 4  ;;  %v1736_v8 = vrot.slane %v1734_v57, 5 }
  0xf5   : > { %4369 = vmatmul.msk.bf16.gmra.mxu0 %vm925_vm10, %v1781_v61  ;;  %v2008_v42 = vpack.c.b16 %v1995_v43, %v1994_v20  ;;  %v4378_v20 = vrot.slane %v1882_v49, 9  ;;  %v4379_v43 = vrot.slane %v1883_v45, 9  ;;  %v5596_v45 = vld [vmem:[#allocation2 + $0x4c] sm:$0x1] }
  0xf6   : > { %v1448_v36 = vpop.f32.mrf.mxu3  ;;  %4431 = vmatmul.msk.bf16.gmra.mxu2 %vm925_vm10, %v4405_v33  ;;  %v1086_v21 = vpop.f32.mrf.mxu1  ;;  %v5571_v33 = vld [vmem:[#allocation2 + $0x30] sm:$0xf] }
  0xf7   : > { %v5564_v30 = vadd.f32 %v1448_v36, %v1337_v58  ;;  %v1087_v11 = vadd.f32 %v1086_v21, %v5525_v22  ;;  %v2367_v22 = vrot.slane %v2366_v18, 4  ;;  %v1748_v58 = vshll.u32 %v1532_v28, 16  ;;  %v5581_v36 = vld [vmem:[#allocation2 + $0x7c] sm:$0x1] }
  0xf8   : > { %v4409_v13 = vor.u32 %v4626_v37, %v5571_v33  ;;  %v1747_v21 = vrot.slane %v1745_v3, 4  ;;  %v2374_v28 = vshrl.u32 %v2269_v15, 16  ;;  %v1740_v57 = vshll.u32 %v5581_v36, 16 }
  0xf9   : > { %v1301_v46 = vpop.f32.mrf.mxu2  ;;  %v2372_v17 = vsel %vm5024_vm9, %v2367_v22, %v2371_v51  ;;  %v1750_v18 = vrot.slane %v1748_v58, 5  ;;  %v2379_v15 = vrot.slane %v2377_v25, 5  ;;  %v1951_v49 = vsel %vm5214_vm13, %v4378_v20, %v1950_v62 }
  0xfa   : > { %v1338_v39 = vadd.f32 %v1301_v46, %v1085_v35  ;;  %v975_v61 = vpop.f32.mrf.mxu0  ;;  %v2358_v35 = vsel %vm5024_vm9, %v2353_v48, %v2357_v1  ;;  %v2388_v1 = vshrl.u32 %v2271_v6, 16  ;;  %v2391_v46 = vshll.u32 %v2271_v6, 16 }
  0xfb   : > { %4440 = vmatmul.msk.bf16.gmra.mxu3 %vm925_vm10, %v2532_v63  ;;  %v1782_v48 = vpack.c.b16 %v1773_v5, %v1772_v32  ;;  %v2519_v51 = vunpack.c.l.b16 %v2358_v35  ;;  %v2520_v56 = vunpack.c.l.b16 %v2372_v17  ;;  %v1751_v22 = vor.u32 %v1750_v18, %v1747_v21  ;;  %v5594_v35 = vld [vmem:[#allocation2 + $0x44] sm:$0x1] }
  0xfc   : > { %v2376_v58 = vrot.slane %v2374_v28, 4  ;;  %v1955_v32 = vsel %vm5214_vm13, %v4379_v43, %v1954_v0  ;;  %v2390_v5 = vrot.slane %v2388_v1, 4  ;;  %v2393_v6 = vrot.slane %v2391_v46, 5 }
  0xfd   : > { %v1752_v17 = vrot.slane %v1751_v22, 4  ;;  %v1996_v21 = vunpack.c.l.b16 %v1951_v49  ;;  %v1997_v18 = vunpack.c.l.b16 %v1955_v32  ;;  %v2383_v25 = vshll.u32 %v5594_v35, 16 }
  0xfe   : > { %v1451_v47 = vpop.f32.mrf.mxu3  ;;  %v1089_v27 = vpop.f32.mrf.mxu1  ;;  %v2380_v28 = vor.u32 %v2379_v15, %v2376_v58  ;;  %v2394_v20 = vor.u32 %v2393_v6, %v2390_v5  ;;  %v2397_v43 = vshll.u32 %v5596_v45, 16  ;;  %v4627_v58 = vld [vmem:[#allocation2 + $0x44] sm:$0xf0] }
  0xff   : > { %v5583_v23 = vadd.f32 %v1451_v47, %v1338_v39  ;;  %v1090_v63 = vadd.f32 %v1089_v27, %v973_v44  ;;  %v1737_v39 = vor.u32 %v1736_v8, %v1733_v52  ;;  %v1754_v44 = vshll.u32 %v5585_v53, 16 }
 0x100   : > { %v2533_v52 = vpack.c.b16 %v2520_v56, %v2519_v51  ;;  %v2009_v56 = vpack.c.b16 %v1997_v18, %v1996_v21  ;;  %v2395_v22 = vrot.slane %v2394_v20, 4  ;;  %v1962_v21 = vrot.slane %v5455_v29, 5  ;;  %v5618_v29 = vld [vmem:[#allocation2 + $0x54] sm:$0x1] }
 0x101   : > { %v1303_v33 = vpop.f32.mrf.mxu2  ;;  %4391 = vmatmul.msk.bf16.gmra.mxu1 %vm925_vm10, %v2008_v42  ;;  %v1742_v42 = vrot.slane %v1740_v57, 5  ;;  %v1738_v27 = vrot.slane %v1737_v39, 4  ;;  %v1756_v62 = vrot.slane %v1754_v44, 5  ;;  %v4412_v57 = vld [vmem:[#allocation2 + $0x40] sm:$0xf]  ;;  %v2385_v39 = vrot.slane %v2383_v25, 5 }
 0x102   : > { %v1339_v37 = vadd.f32 %v1303_v33, %v1087_v11  ;;  %v978_v3 = vpop.f32.mrf.mxu0  ;;  %v2273_v33 = vld [vmem:[#allocation2 + $0x50] sm:$0xf]  ;;  %v2399_v44 = vrot.slane %v2397_v43, 5  ;;  %v4413_v18 = vor.u32 %v4627_v58, %v4412_v57 }
 0x103   : > { %v1743_v51 = vsel %vm5024_vm9, %v1738_v27, %v1742_v42  ;;  %v2402_v15 = vshrl.u32 %v2273_v33, 16  ;;  %v1958_v42 = vrot.slane %v5449_v31, 5 }
 0x104   : > { %v2400_v25 = vsel %vm5024_vm9, %v2395_v22, %v2399_v44  ;;  %v2681_v22 = vrot.slane %v5462_v41, 5  ;;  %v2632_v44 = vld [vmem:[#allocation2 + $0x18] sm:$0xe] }
 0x105   : > { %4370 = vmatmul.msk.bf16.gmra.mxu0 %vm925_vm10, %v1782_v48  ;;  %v2404_v43 = vrot.slane %v2402_v15, 4 }
 0x106   : > { %v1453_v11 = vpop.f32.mrf.mxu3  ;;  %4432 = vmatmul.msk.bf16.gmra.mxu2 %vm925_vm10, %v4409_v13  ;;  %v1091_v47 = vpop.f32.mrf.mxu1  ;;  %v2275_v13 = vld [vmem:[#allocation2 + $0x58] sm:$0xf] }
 0x107   : > { %v5600_v8 = vadd.f32 %v1453_v11, %v1339_v37  ;;  %v1092_v0 = vadd.f32 %v1091_v47, %v975_v61  ;;  %v1757_v61 = vsel %vm5024_vm9, %v1752_v17, %v1756_v62  ;;  %v2381_v37 = vrot.slane %v2380_v28, 4  ;;  %v1884_v17 = vld [vmem:[#allocation2 + $0x48] sm:$0xe]  ;;  %v1885_v62 = vld [vmem:[#allocation2 + $0x50] sm:$0xe] }
 0x108   : > { %v2416_v49 = vshrl.u32 %v2275_v13, 16  ;;  %v2419_v32 = vshll.u32 %v2275_v13, 16  ;;  %v1774_v11 = vunpack.c.l.b16 %v1743_v51  ;;  %v4380_v13 = vrot.slane %v1884_v17, 9 }
 0x109   : > { %v1306_v1 = vpop.f32.mrf.mxu2  ;;  %v2386_v28 = vsel %vm5024_vm9, %v2381_v37, %v2385_v39  ;;  %v4381_v51 = vrot.slane %v1885_v62, 9  ;;  %v2522_v37 = vunpack.c.l.b16 %v2400_v25  ;;  %v5620_v39 = vld [vmem:[#allocation2 + $0x5c] sm:$0x1]  ;;  %v4448_v62 = vrot.slane %v2632_v44, 9 }
 0x10a   : > { %v1340_v46 = vadd.f32 %v1306_v1, %v1090_v63  ;;  %v980_v48 = vpop.f32.mrf.mxu0  ;;  %v2405_v63 = vshll.u32 %v2273_v33, 16  ;;  %v2418_v31 = vrot.slane %v2416_v49, 4  ;;  %v2521_v58 = vunpack.c.l.b16 %v2386_v28 }
 0x10b   : > { %4441 = vmatmul.msk.bf16.gmra.mxu3 %vm925_vm10, %v2533_v52  ;;  %v1775_v52 = vunpack.c.l.b16 %v1757_v61  ;;  %v2631_v61 = vld [vmem:[#allocation2 + $0x10] sm:$0xe] }
 0x10c   : > { %v2407_v1 = vrot.slane %v2405_v63, 5  ;;  %v4447_v15 = vrot.slane %v2631_v61, 9 }
 0x10e   : > { %v1456_v5 = vpop.f32.mrf.mxu3  ;;  %v1094_v6 = vpop.f32.mrf.mxu1  ;;  %v2408_v63 = vor.u32 %v2407_v1, %v2404_v43 }
 0x10f   : > { %v5610_v47 = vadd.f32 %v1456_v5, %v1340_v46  ;;  %v1095_v27 = vadd.f32 %v1094_v6, %v978_v3  ;;  %v2421_v46 = vrot.slane %v2419_v32, 5  ;;  %v1783_v3 = vpack.c.b16 %v1775_v52, %v1774_v11 }
 0x110   : > { %v1959_v5 = vsel %vm5214_vm13, %v4380_v13, %v1958_v42  ;;  %v1963_v6 = vsel %vm5214_vm13, %v4381_v51, %v1962_v21  ;;  %v2425_v11 = vshll.u32 %v5620_v39, 16  ;;  %v2534_v52 = vpack.c.b16 %v2522_v37, %v2521_v58  ;;  %v2279_v13 = vld [vmem:[#allocation2 + $0x68] sm:$0xf] }
 0x111   : > { %v1308_v20 = vpop.f32.mrf.mxu2  ;;  %4392 = vmatmul.msk.bf16.gmra.mxu1 %vm925_vm10, %v2009_v56  ;;  %v2685_v56 = vrot.slane %v5464_v16, 5  ;;  %v2422_v41 = vor.u32 %v2421_v46, %v2418_v31  ;;  %v1998_v25 = vunpack.c.l.b16 %v1959_v5  ;;  %v2409_v43 = vrot.slane %v2408_v63, 4 }
 0x112   : > { %v1341_v33 = vadd.f32 %v1308_v20, %v1092_v0  ;;  %v983_v57 = vpop.f32.mrf.mxu0  ;;  %v2411_v0 = vshll.u32 %v5618_v29, 16  ;;  %v1999_v20 = vunpack.c.l.b16 %v1963_v6  ;;  %v2427_v61 = vrot.slane %v2425_v11, 5 }
 0x113   : > { %v2682_v21 = vsel %vm5214_vm13, %v4447_v15, %v2681_v22  ;;  %v2686_v31 = vsel %vm5214_vm13, %v4448_v62, %v2685_v56  ;;  %v1887_v22 = vld [vmem:[#allocation2 + $0x60] sm:$0xe]  ;;  %v1966_v6 = vrot.slane %v5485_v9, 5  ;;  %v2447_v11 = vshll.u32 %v2279_v13, 16 }
 0x114   : > { %v2413_v1 = vrot.slane %v2411_v0, 5  ;;  %v2010_v46 = vpack.c.b16 %v1999_v20, %v1998_v25  ;;  %v2745_v37 = vunpack.c.l.b16 %v2682_v21  ;;  %v2746_v44 = vunpack.c.l.b16 %v2686_v31 }
 0x115   : > { %4371 = vmatmul.msk.bf16.gmra.mxu0 %vm925_vm10, %v1783_v3  ;;  %v2423_v3 = vrot.slane %v2422_v41, 4  ;;  %v2444_v41 = vshrl.u32 %v2279_v13, 16  ;;  %v4383_v20 = vrot.slane %v1887_v22, 9  ;;  %v5653_v13 = vld [vmem:[#allocation2 + $0x64] sm:$0x1] }
 0x116   : > { %v1458_v49 = vpop.f32.mrf.mxu3  ;;  %4433 = vmatmul.msk.bf16.gmra.mxu2 %vm925_vm10, %v4413_v18  ;;  %v1096_v32 = vpop.f32.mrf.mxu1  ;;  %v2414_v63 = vsel %vm5024_vm9, %v2409_v43, %v2413_v1  ;;  %v2761_v1 = vpack.c.b16 %v2746_v44, %v2745_v37 }
 0x117   : > { %v5632_v16 = vadd.f32 %v1458_v49, %v1341_v33  ;;  %v1097_v17 = vadd.f32 %v1096_v32, %v980_v48  ;;  %v2277_v48 = vld [vmem:[#allocation2 + $0x60] sm:$0xf]  ;;  %v4416_v33 = vld [vmem:[#allocation2 + $0x50] sm:$0xf]  ;;  %v2428_v0 = vsel %vm5024_vm9, %v2423_v3, %v2427_v61  ;;  %v1886_v49 = vld [vmem:[#allocation2 + $0x58] sm:$0xe]  ;;  %v2523_v3 = vunpack.c.l.b16 %v2414_v63 }
 0x118   : > { %v2430_v32 = vshrl.u32 %v2277_v48, 16  ;;  %v2433_v5 = vshll.u32 %v2277_v48, 16  ;;  %v4382_v25 = vrot.slane %v1886_v49, 9  ;;  %v2634_v48 = vld [vmem:[#allocation2 + $0x28] sm:$0xe] }
 0x119   : > { %v1311_v28 = vpop.f32.mrf.mxu2  ;;  %v4450_v49 = vrot.slane %v2634_v48, 9 }
 0x11a   : > { %v1342_v18 = vadd.f32 %v1311_v28, %v1095_v27  ;;  %v5635_v42 = vpop.f32.mrf.mxu0  ;;  %v4628_v27 = vld [vmem:[#allocation2 + $0x54] sm:$0xf0]  ;;  %v2432_v21 = vrot.slane %v2430_v32, 4  ;;  %v2435_v31 = vrot.slane %v2433_v5, 5  ;;  %v2439_v32 = vshll.u32 %v5653_v13, 16 }
 0x11b   : > { %4442 = vmatmul.msk.bf16.gmra.mxu3 %vm925_vm10, %v2534_v52  ;;  %v1970_v52 = vrot.slane %v5487_v7, 5  ;;  %v4417_v28 = vor.u32 %v4628_v27, %v4416_v33  ;;  %v2446_v7 = vrot.slane %v2444_v41, 4  ;;  %v5659_v33 = vld [vmem:[#allocation2 + $0x6c] sm:$0x1]  ;;  %v2693_v27 = vrot.slane %v5507_v19, 5 }
 0x11c   : > { %v2436_v22 = vor.u32 %v2435_v31, %v2432_v21  ;;  %v2453_v19 = vshll.u32 %v5659_v33, 16 }
 0x11e   : > { %v1461_v51 = vpop.f32.mrf.mxu3  ;;  %v1099_v58 = vpop.f32.mrf.mxu1 }
 0x11f   : > { %v5645_v15 = vadd.f32 %v1461_v51, %v1342_v18  ;;  %v1100_v56 = vadd.f32 %v1099_v58, %v983_v57  ;;  %v2524_v18 = vunpack.c.l.b16 %v2428_v0  ;;  %v2633_v57 = vld [vmem:[#allocation2 + $0x20] sm:$0xe]  ;;  %v2449_v51 = vrot.slane %v2447_v11, 5 }
 0x120   : > { %v2689_v58 = vrot.slane %v5505_v10, 5  ;;  %v4449_v63 = vrot.slane %v2633_v57, 9  ;;  %v2455_v57 = vrot.slane %v2453_v19, 5 }
 0x121   : > { %v1313_v62 = vpop.f32.mrf.mxu2  ;;  %4393 = vmatmul.msk.bf16.gmra.mxu1 %vm925_vm10, %v2010_v46  ;;  %v1967_v46 = vsel %vm5214_vm13, %v4382_v25, %v1966_v6  ;;  %v2450_v10 = vor.u32 %v2449_v51, %v2446_v7 }
 0x122   : > { %v1343_v43 = vadd.f32 %v1313_v62, %v1097_v17  ;;  %v1820_v61 = vpop.f32.mrf.mxu0  ;;  %v1971_v17 = vsel %vm5214_vm13, %v4383_v20, %v1970_v52  ;;  %v2000_v5 = vunpack.c.l.b16 %v1967_v46  ;;  %v2281_v52 = vld [vmem:[#allocation2 + $0x70] sm:$0xf]  ;;  %v2283_v62 = vld [vmem:[#allocation2 + $0x78] sm:$0xf]  ;;  %v2690_v25 = vsel %vm5214_vm13, %v4449_v63, %v2689_v58  ;;  %v4420_v46 = vld [vmem:[#allocation2 + $0x60] sm:$0xf] }
 0x123   : > { %v5651_v9 = vadd.f32 %v1820_v61, %v5542_v34  ;;  %v2535_v34 = vpack.c.b16 %v2524_v18, %v2523_v3  ;;  %v2001_v6 = vunpack.c.l.b16 %v1971_v17  ;;  %v2694_v20 = vsel %vm5214_vm13, %v4450_v49, %v2693_v27  ;;  %v4629_v27 = vld [vmem:[#allocation2 + $0x64] sm:$0xf0]  ;;  %v1889_v63 = vld [vmem:[#allocation2 + $0x70] sm:$0xe] }
 0x124   : > { %v2451_v61 = vrot.slane %v2450_v10, 4  ;;  %v2461_v21 = vshll.u32 %v2281_v52, 16  ;;  %v2472_v31 = vshrl.u32 %v2283_v62, 16  ;;  %v2475_v48 = vshll.u32 %v2283_v62, 16 }
 0x125   : > { %4464 = vmatmul.msk.bf16.vlgmr.msra.gmra.mxu0 %vm925_vm10, %v2761_v1  ;;  %v2441_v1 = vrot.slane %v2439_v32, 5  ;;  %v2011_v18 = vpack.c.b16 %v2001_v6, %v2000_v5  ;;  %v2747_v17 = vunpack.c.l.b16 %v2690_v25  ;;  %v2748_v58 = vunpack.c.l.b16 %v2694_v20  ;;  %v2635_v6 = vld [vmem:[#allocation2 + $0x30] sm:$0xe] }
 0x126   : > { %v1463_v37 = vpop.f32.mrf.mxu3  ;;  %4434 = vmatmul.msk.bf16.gmra.mxu2 %vm925_vm10, %v4417_v28  ;;  %v5665_v44 = vpop.f32.mrf.mxu1  ;;  %v1978_v49 = vrot.slane %v5536_v50, 5  ;;  %v2456_v32 = vsel %vm5024_vm9, %v2451_v61, %v2455_v57  ;;  %v2463_v19 = vrot.slane %v2461_v21, 5  ;;  %v2636_v50 = vld [vmem:[#allocation2 + $0x38] sm:$0xe]  ;;  %v5692_v61 = vld [vmem:[#allocation2 + $0x7c] sm:$0x1] }
 0x127   : > { %v5667_v0 = vadd.f32 %v1463_v37, %v1343_v43  ;;  %v2437_v43 = vrot.slane %v2436_v22, 4  ;;  %v2762_v62 = vpack.c.b16 %v2748_v58, %v2747_v17  ;;  %v2697_v57 = vrot.slane %v5552_v54, 5 }
 0x128   : > { %v2701_v21 = vrot.slane %v5554_v40, 5  ;;  %v2481_v58 = vshll.u32 %v5692_v61, 16 }
 0x129   : > { %v1316_v41 = vpop.f32.mrf.mxu2  ;;  %v2442_v22 = vsel %vm5024_vm9, %v2437_v43, %v2441_v1  ;;  %v2526_v43 = vunpack.c.l.b16 %v2456_v32  ;;  %v5690_v1 = vld [vmem:[#allocation2 + $0x74] sm:$0x1] }
 0x12a   : > { %v1344_v11 = vadd.f32 %v1316_v41, %v1100_v56  ;;  %v1822_v28 = vpop.f32.mrf.mxu0  ;;  %v2458_v56 = vshrl.u32 %v2281_v52, 16  ;;  %v2474_v41 = vrot.slane %v2472_v31, 4  ;;  %v4421_v52 = vor.u32 %v4629_v27, %v4420_v46 }
 0x12b   : > { %4443 = vmatmul.msk.bf16.gmra.mxu3 %vm925_vm10, %v2535_v34  ;;  %v5677_v3 = vadd.f32 %v1822_v28, %v5564_v30  ;;  %v1888_v34 = vld [vmem:[#allocation2 + $0x68] sm:$0xe]  ;;  %v1974_v30 = vrot.slane %v5534_v14, 5  ;;  %v4385_v28 = vrot.slane %v1889_v63, 9  ;;  %v2525_v20 = vunpack.c.l.b16 %v2442_v22 }
 0x12c   : > { %v2460_v10 = vrot.slane %v2458_v56, 4  ;;  %v4384_v14 = vrot.slane %v1888_v34, 9  ;;  %v4451_v56 = vrot.slane %v2635_v6, 9  ;;  %v4452_v31 = vrot.slane %v2636_v50, 9 }
 0x12d   : > { %v1979_v54 = vsel %vm5214_vm13, %v4385_v28, %v1978_v49  ;;  %v2536_v40 = vpack.c.b16 %v2526_v43, %v2525_v20  ;;  %v4424_v20 = vld [vmem:[#allocation2 + $0x70] sm:$0xf]  ;;  %v4630_v43 = vld [vmem:[#allocation2 + $0x74] sm:$0xf0] }
 0x12e   : > { %v1466_v7 = vpop.f32.mrf.mxu3  ;;  %v1104_v51 = vpop.f32.mrf.mxu1  ;;  %v1975_v17 = vsel %vm5214_vm13, %v4384_v14, %v1974_v30  ;;  %v2698_v63 = vsel %vm5214_vm13, %v4451_v56, %v2697_v57  ;;  %v2003_v6 = vunpack.c.l.b16 %v1979_v54  ;;  %v2702_v30 = vsel %vm5214_vm13, %v4452_v31, %v2701_v21 }
 0x12f   : > { %v5679_v37 = vadd.f32 %v1466_v7, %v1344_v11  ;;  %v2477_v11 = vrot.slane %v2475_v48, 5  ;;  %v2464_v48 = vor.u32 %v2463_v19, %v2460_v10  ;;  %v1105_v34 = vadd.f32 %v1104_v51, %v5453_v12  ;;  %v2287_v51 = vld [vmem:[#allocation2 + $0x88] sm:$0xf] }
 0x130   : > { %v2002_v32 = vunpack.c.l.b16 %v1975_v17  ;;  %v2749_v28 = vunpack.c.l.b16 %v2698_v63  ;;  %v2750_v50 = vunpack.c.l.b16 %v2702_v30  ;;  %v2500_v17 = vshrl.u32 %v2287_v51, 16 }
 0x131   : > { %v5687_v5 = vpop.f32.mrf.mxu2  ;;  %4394 = vmatmul.msk.bf16.gmra.mxu1 %vm925_vm10, %v2011_v18  ;;  %v2478_v7 = vor.u32 %v2477_v11, %v2474_v41  ;;  %v2465_v10 = vrot.slane %v2464_v48, 4  ;;  %v2483_v11 = vrot.slane %v2481_v58, 5  ;;  %v2503_v54 = vshll.u32 %v2287_v51, 16 }
 0x132   : > { %v1825_v25 = vpop.f32.mrf.mxu0  ;;  %v2012_v14 = vpack.c.b16 %v2003_v6, %v2002_v32  ;;  %v1982_v6 = vrot.slane %v5581_v36, 5  ;;  %v2705_v36 = vrot.slane %v5594_v35, 5 }
 0x133   : > { %v5696_v18 = vadd.f32 %v1825_v25, %v5583_v23  ;;  %v2467_v23 = vshll.u32 %v5690_v1, 16  ;;  %v2479_v41 = vrot.slane %v2478_v7, 4  ;;  %v1890_v7 = vld [vmem:[#allocation2 + $0x78] sm:$0xe]  ;;  %v2505_v51 = vrot.slane %v2503_v54, 5 }
 0x134   : > { %v4386_v32 = vrot.slane %v1890_v7, 9 }
 0x135   : > { %4465 = vmatmul.msk.bf16.gmra.mxu0 %vm925_vm10, %v2762_v62  ;;  %v2469_v19 = vrot.slane %v2467_v23, 5  ;;  %v2285_v62 = vld [vmem:[#allocation2 + $0x80] sm:$0xf]  ;;  %v2484_v56 = vsel %vm5024_vm9, %v2479_v41, %v2483_v11  ;;  %v2638_v41 = vld [vmem:[#allocation2 + $0x48] sm:$0xe] }
 0x136   : > { %v5699_v46 = vpop.f32.mrf.mxu3  ;;  %4435 = vmatmul.msk.bf16.gmra.mxu2 %vm925_vm10, %v4421_v52  ;;  %v5709_v27 = vpop.f32.mrf.mxu1  ;;  %v2486_v21 = vshrl.u32 %v2285_v62, 16  ;;  %v2489_v31 = vshll.u32 %v2285_v62, 16  ;;  %v2502_v62 = vrot.slane %v2500_v17, 4 }
 0x137   : > { %v2470_v57 = vsel %vm5024_vm9, %v2465_v10, %v2469_v19  ;;  %v1986_v10 = vrot.slane %v5585_v53, 5  ;;  %v1983_v53 = vsel %vm5214_vm13, %v4386_v32, %v1982_v6 }
 0x138   : > { %v2527_v63 = vunpack.c.l.b16 %v2470_v57  ;;  %v2488_v11 = vrot.slane %v2486_v21, 4  ;;  %v4454_v57 = vrot.slane %v2638_v41, 9  ;;  %v2506_v7 = vor.u32 %v2505_v51, %v2502_v62  ;;  %v4428_v62 = vld [vmem:[#allocation2 + $0x80] sm:$0xf]  ;;  %v4631_v51 = vld [vmem:[#allocation2 + $0x84] sm:$0xf0] }
 0x139   : > { %v1321_v22 = vpop.f32.mrf.mxu2  ;;  %v2004_v54 = vunpack.c.l.b16 %v1983_v53 }
 0x13a   : > { %v1346_v49 = vadd.f32 %v1321_v22, %v1105_v34  ;;  %v1827_v52 = vpop.f32.mrf.mxu0  ;;  %v2763_v34 = vpack.c.b16 %v2750_v50, %v2749_v28  ;;  %v2528_v22 = vunpack.c.l.b16 %v2484_v56  ;;  %v5736_v28 = vld [vmem:[#allocation2 + $0x8c] sm:$0x1]  ;;  %v2709_v56 = vrot.slane %v5596_v45, 5 }
 0x13b   : > { %4444 = vmatmul.msk.bf16.gmra.mxu3 %vm925_vm10, %v2536_v40  ;;  %v5718_v12 = vadd.f32 %v1827_v52, %v5600_v8  ;;  %v1891_v8 = vld [vmem:[#allocation2 + $0x80] sm:$0xe]  ;;  %v4425_v40 = vor.u32 %v4630_v43, %v4424_v20  ;;  %v2491_v52 = vrot.slane %v2489_v31, 5  ;;  %v2509_v35 = vshll.u32 %v5736_v28, 16 }
 0x13c   : > { %v4387_v30 = vrot.slane %v1891_v8, 9  ;;  %v2537_v50 = vpack.c.b16 %v2528_v22, %v2527_v63  ;;  %v2710_v22 = vsel %vm5214_vm13, %v4454_v57, %v2709_v56 }
 0x13d   : > { %v2492_v21 = vor.u32 %v2491_v52, %v2488_v11  ;;  %v2752_v11 = vunpack.c.l.b16 %v2710_v22 }
 0x13e   : > { %v1471_v25 = vpop.f32.mrf.mxu3  ;;  %v1109_v58 = vpop.f32.mrf.mxu1 }
 0x13f   : > { %v5724_v48 = vadd.f32 %v1471_v25, %v1346_v49  ;;  %v2637_v49 = vld [vmem:[#allocation2 + $0x40] sm:$0xe]  ;;  %v1110_v8 = vadd.f32 %v1109_v58, %v5480_v4  ;;  %v2493_v6 = vrot.slane %v2492_v21, 4 }
 0x140   : > { %v4453_v20 = vrot.slane %v2637_v49, 9  ;;  %v2511_v49 = vrot.slane %v2509_v35, 5 }
 0x141   : > { %v5726_v23 = vpop.f32.mrf.mxu2  ;;  %4395 = vmatmul.msk.bf16.gmra.mxu1 %vm925_vm10, %v2012_v14  ;;  %v5734_v14 = vld [vmem:[#allocation2 + $0x84] sm:$0x1] }
 0x142   : > { %v1830_v19 = vpop.f32.mrf.mxu0  ;;  %v2495_v31 = vshll.u32 %v5734_v14, 16  ;;  %v2706_v63 = vsel %vm5214_vm13, %v4453_v20, %v2705_v36 }
 0x143   : > { %v5732_v25 = vadd.f32 %v1830_v19, %v5610_v47  ;;  %v1987_v47 = vsel %vm5214_vm13, %v4387_v30, %v1986_v10  ;;  %v2507_v10 = vrot.slane %v2506_v7, 4  ;;  %v2751_v41 = vunpack.c.l.b16 %v2706_v63  ;;  %v2640_v7 = vld [vmem:[#allocation2 + $0x58] sm:$0xe] }
 0x144   : > { %v2497_v30 = vrot.slane %v2495_v31, 5  ;;  %v2639_v31 = vld [vmem:[#allocation2 + $0x50] sm:$0xe]  ;;  %v2717_v63 = vrot.slane %v5620_v39, 5 }
 0x145   : > { %4466 = vmatmul.msk.bf16.gmra.mxu0 %vm925_vm10, %v2763_v34  ;;  %v2512_v20 = vsel %vm5024_vm9, %v2507_v10, %v2511_v49  ;;  %v2764_v53 = vpack.c.b16 %v2752_v11, %v2751_v41  ;;  %v4642_v41 = vld [vmem:[%s6331_s2 + $0x10] sm:$0xff] }
 0x146   : > { %v5739_v43 = vpop.f32.mrf.mxu3  ;;  %4436 = vmatmul.msk.bf16.gmra.mxu2 %vm925_vm10, %v4425_v40  ;;  %v2005_v40 = vunpack.c.l.b16 %v1987_v47  ;;  %v5756_v45 = vpop.f32.mrf.mxu1  ;;  %v2530_v57 = vunpack.c.l.b16 %v2512_v20  ;;  %3558 = vmatpush.bf16.msrb.mxu3 %v4642_v41  ;;  %v2642_v20 = vld [vmem:[#allocation2 + $0x68] sm:$0xe] }
 0x148   : > { %v2013_v58 = vpack.c.b16 %v2005_v40, %v2004_v54  ;;  %v4455_v54 = vrot.slane %v2639_v31, 9  ;;  %v2713_v40 = vrot.slane %v5618_v29, 5 }
 0x149   : > { %v1326_v17 = vpop.f32.mrf.mxu2 }
 0x14a   : > { %v1348_v34 = vadd.f32 %v1326_v17, %v1110_v8  ;;  %v1832_v32 = vpop.f32.mrf.mxu0 }
 0x14b   : > { %4445 = vmatmul.msk.bf16.gmra.mxu3 %vm925_vm10, %v2537_v50  ;;  %v5759_v4 = vadd.f32 %v1832_v32, %v5632_v16  ;;  %v2498_v50 = vsel %vm5024_vm9, %v2493_v6, %v2497_v30  ;;  %v4429_v16 = vor.u32 %v4631_v51, %v4428_v62  ;;  %v2714_v30 = vsel %vm5214_vm13, %v4455_v54, %v2713_v40 }
 0x14c   : > { %v2529_v47 = vunpack.c.l.b16 %v2498_v50  ;;  %v2641_v50 = vld [vmem:[#allocation2 + $0x60] sm:$0xe] }
 0x14e   : > { %v1476_v19 = vpop.f32.mrf.mxu3  ;;  %v1114_v35 = vpop.f32.mrf.mxu1  ;;  %v2538_v17 = vpack.c.b16 %v2530_v57, %v2529_v47  ;;  %v4458_v47 = vrot.slane %v2642_v20, 9  ;;  %v2725_v57 = vrot.slane %v5659_v33, 5  ;;  %v2643_v33 = vld [vmem:[#allocation2 + $0x70] sm:$0xe] }
 0x14f   : > { %v5761_v52 = vadd.f32 %v1476_v19, %v1348_v34  ;;  %v4456_v34 = vrot.slane %v2640_v7, 9  ;;  %v1115_v22 = vadd.f32 %v1114_v35, %v5489_v26  ;;  %v4636_v26 = vld [vmem:[%s6331_s2] sm:$0xff] }
 0x150   : > { %3480 = vmatpush.bf16.msrb.mxu2 %v4636_v26 }
 0x151   : > { %v5767_v36 = vpop.f32.mrf.mxu2  ;;  %4396 = vmatmul.msk.bf16.gmra.mxu1 %vm925_vm10, %v2013_v58  ;;  %v2718_v10 = vsel %vm5214_vm13, %v4456_v34, %v2717_v63  ;;  %v2753_v58 = vunpack.c.l.b16 %v2714_v30  ;;  %v2644_v63 = vld [vmem:[#allocation2 + $0x78] sm:$0xe]  ;;  %v2733_v30 = vrot.slane %v5692_v61, 5  ;;  %v2646_v61 = vld [vmem:[#allocation2 + $0x88] sm:$0xe] }
 0x152   : > { %v1835_v56 = vpop.f32.mrf.mxu0  ;;  %v2754_v19 = vunpack.c.l.b16 %v2718_v10 }
 0x153   : > { %v5771_v21 = vadd.f32 %v1835_v56, %v5645_v15 }
 0x154   : > { %v2765_v11 = vpack.c.b16 %v2754_v19, %v2753_v58 }
 0x155   : > { %4467 = vmatmul.msk.bf16.gmra.mxu0 %vm925_vm10, %v2764_v53  ;;  %v2721_v53 = vrot.slane %v5653_v13, 5 }
 0x156   : > { %v5773_v8 = vpop.f32.mrf.mxu3  ;;  %4437 = vmatmul.msk.bf16.gmra.mxu2 %vm925_vm10, %v4429_v16  ;;  %v4457_v16 = vrot.slane %v2641_v50, 9  ;;  %v2645_v50 = vld [vmem:[#allocation2 + $0x80] sm:$0xe] }
 0x158   : > { %v2722_v31 = vsel %vm5214_vm13, %v4457_v16, %v2721_v53  ;;  %v4461_v53 = vrot.slane %v2645_v50, 9 }
 0x159   : > { %v1331_v15 = vpop.f32.mrf.mxu2  ;;  %v2755_v7 = vunpack.c.l.b16 %v2722_v31  ;;  %v2741_v31 = vrot.slane %v5736_v28, 5 }
 0x15a   : > { %v1350_v32 = vadd.f32 %v1331_v15, %v1115_v22  ;;  %v1837_v6 = vpop.f32.mrf.mxu0  ;;  %v4459_v15 = vrot.slane %v2643_v33, 9 }
 0x15b   : > { %4446 = vmatmul.msk.bf16.gmra.mxu3 %vm925_vm10, %v2538_v17  ;;  %v5786_v49 = vadd.f32 %v1837_v6, %v5667_v0  ;;  %v4637_v0 = vld [vmem:[%s6331_s2 + $0x8] sm:$0xff]  ;;  %v5811_v17 = vpop.f32.mrf.mxu1  ;;  %v4460_v6 = vrot.slane %v2644_v63, 9 }
 0x15c   : > { %3413 = vmatpush.bf16.msrb.mxu1 %v4637_v0 }
 0x15e   : > { %v1481_v29 = vpop.f32.mrf.mxu3 }
 0x15f   : > { %v5788_v39 = vadd.f32 %v1481_v29, %v1350_v32  ;;  %v2729_v32 = vrot.slane %v5690_v1, 5 }
 0x161   : > { %v5813_v40 = vpop.f32.mrf.mxu2  ;;  %v2730_v58 = vsel %vm5214_vm13, %v4459_v15, %v2729_v32 }
 0x162   : > { %v1840_v62 = vpop.f32.mrf.mxu0  ;;  %v2757_v26 = vunpack.c.l.b16 %v2730_v58 }
 0x163   : > { %v5800_v51 = vadd.f32 %v1840_v62, %v5679_v37  ;;  %v2726_v37 = vsel %vm5214_vm13, %v4458_v47, %v2725_v57  ;;  %v2050_v10 = vpop.f32.mrf.mxu1  ;;  %v2737_v47 = vrot.slane %v5734_v14, 5  ;;  %v4462_v57 = vrot.slane %v2646_v61, 9 }
 0x164   : > { %v2756_v35 = vunpack.c.l.b16 %v2726_v37 }
 0x165   : > { %4468 = vmatmul.msk.bf16.gmra.mxu0 %vm925_vm10, %v2765_v11 }
 0x166   : > { %v2766_v54 = vpack.c.b16 %v2756_v35, %v2755_v7  ;;  %v5819_v22 = vpop.f32.mrf.mxu3  ;;  %v2742_v35 = vsel %vm5214_vm13, %v4462_v57, %v2741_v31 }
 0x167   : > { %v2760_v28 = vunpack.c.l.b16 %v2742_v35 }
 0x169   : > { %v2201_v19 = vpop.f32.mrf.mxu2 }
 0x16a   : > { %v5805_v56 = vpop.f32.mrf.mxu0 }
 0x16b   : > { %v2052_v20 = vpop.f32.mrf.mxu1 }
 0x16e   : > { %v2575_v11 = vpop.f32.mrf.mxu3 }
 0x171   : > { %v2203_v16 = vpop.f32.mrf.mxu2 }
 0x172   : > { %v1845_v34 = vpop.f32.mrf.mxu0 }
 0x173   : > { %v5816_v13 = vadd.f32 %v1845_v34, %v5724_v48  ;;  %v2734_v48 = vsel %vm5214_vm13, %v4460_v6, %v2733_v30  ;;  %v2090_v30 = vadd.f32 %v2050_v10, %v5651_v9  ;;  %v5907_v10 = vld [vmem:[%s6334_s5] ss:$0 sm:$0xff] }
 0x174   : > { %v2758_v41 = vunpack.c.l.b16 %v2734_v48 }
 0x175   : > { %4469 = vmatmul.msk.bf16.gmra.mxu0 %vm925_vm10, %v2766_v54  ;;  %v2055_v54 = vpop.f32.mrf.mxu1  ;;  %v2241_v58 = vadd.f32 %v2201_v19, %v2090_v30 }
 0x176   : > { %v2767_v0 = vpack.c.b16 %v2758_v41, %v2757_v26  ;;  %v5835_v37 = vpop.f32.mrf.mxu3  ;;  %v2091_v41 = vadd.f32 %v2052_v20, %v5677_v3  ;;  %v2092_v31 = vadd.f32 %v2055_v54, %v5696_v18  ;;  %v3144_v18 = vld [vmem:[#allocation3 + $0x8] sm:$0xf]  ;;  %v3149_v54 = vld [vmem:[#allocation3 + $0xc] sm:$0x1] }
 0x177   : > { %v2615_v9 = vadd.f32 %v2575_v11, %v2241_v58  ;;  %v5919_v11 = vld [vmem:[%s6334_s5 + $0x1] ss:$0 sm:$0xff] }
 0x178   : > { %v2242_v50 = vadd.f32 %v2203_v16, %v2091_v41 }
 0x179   : > { %v2206_v59 = vpop.f32.mrf.mxu2 }
 0x17a   : > { %v5823_v29 = vpop.f32.mrf.mxu0  ;;  %v2616_v16 = vadd.f32 %v5835_v37, %v2242_v50 }
 0x17e   : > { %v5866_v15 = vpop.f32.mrf.mxu3 }
 0x181   : > { %v5883_v32 = vpop.f32.mrf.mxu2 }
 0x182   : > { %v1850_v62 = vpop.f32.mrf.mxu0 }
 0x183   : > { %v5830_v1 = vadd.f32 %v1850_v62, %v5761_v52  ;;  %v2738_v52 = vsel %vm5214_vm13, %v4461_v53, %v2737_v47 }
 0x184   : > { %v2759_v14 = vunpack.c.l.b16 %v2738_v52 }
 0x185   : > { %4470 = vmatmul.msk.bf16.gmra.mxu0 %vm925_vm10, %v2767_v0 }
 0x186   : > { %v2768_v34 = vpack.c.b16 %v2760_v28, %v2759_v14  ;;  %v5896_v48 = vpop.f32.mrf.mxu3  ;;  %v2243_v28 = vadd.f32 %v2206_v59, %v2092_v31 }
 0x188   : > { %v2617_v41 = vadd.f32 %v5866_v15, %v2243_v28 }
 0x189   : > { %v5923_v62 = vpop.f32.mrf.mxu2 }
 0x18a   : > { %v5837_v7 = vpop.f32.mrf.mxu0 }
 0x18e   : > { %v5935_v20 = vpop.f32.mrf.mxu3 }
 0x192   : > { %v1855_v33 = vpop.f32.mrf.mxu0 }
 0x193   : > { %v5862_v63 = vadd.f32 %v1855_v33, %v5788_v39  ;;  %v5877_v39 = vpop.f32.mrf.mxu1 }
 0x194   : > { %v2093_v50 = vadd.f32 %v5877_v39, %v5718_v12  ;;  %v4071_v12 = vld [vmem:[%s6332_s3] sm:$0x3] }
 0x195   : > { %4471 = vmatmul.msk.bf16.gmra.mxu0 %vm925_vm10, %v2768_v34  ;;  %v5950_v34 = vpop.f32.mrf.mxu2 }
 0x19a   : > { %v5885_v6 = vpop.f32.mrf.mxu0 }
 0x19b   : > { %v5911_v19 = vpop.f32.mrf.mxu1 }
 0x1a2   : > { %v2805_v26 = vpop.f32.mrf.mxu0 }
 0x1a3   : > { %v2845_v0 = vadd.f32 %v2805_v26, %v2615_v9  ;;  %v5947_v35 = vpop.f32.mrf.mxu1 }
 0x1a5   : > { %v2862_v61 = vadd.f32 %v5907_v10, %v2845_v0 }
 0x1a7   : > { %vm2878_vm0 = vcmp.gt.f32.partialorder %v2862_v61, 0.0  ;;  %v2895_v3 = vmul.f32 %v5919_v11, %v2862_v61 }
 0x1a9   : > { %v2911_v53 = vsel %vm2878_vm0, %v2862_v61, %v2895_v3  ;;  %v5968_v61 = vpop.f32.mrf.mxu3 }
 0x1aa   : > { %v2965_v47 = vpack.c.bf16 %v2911_v53, %v2911_v53  ;;  %v2807_v57 = vpop.f32.mrf.mxu0 }
 0x1ab   : > { %v2846_v52 = vadd.f32 %v2807_v57, %v2616_v16  ;;  %v3242_v57 = vld [vmem:[#allocation3] sm:$0xf] }
 0x1ac   : > { %v2982_v14 = vshrl.u32 %v2965_v47, 16  ;;  %v2985_v30 = vshll.u32 %v2965_v47, 16  ;;  %v3264_v28 = vshll.u32 %v3242_v57, 16 }
 0x1ad   : > { %v2863_v37 = vadd.f32 %v5907_v10, %v2846_v52  ;;  %v2244_v52 = vadd.f32 %v5883_v32, %v2093_v50 }
 0x1ae   : > { %v2984_v33 = vrot.slane %v2982_v14, 7  ;;  %v3261_v14 = vshrl.u32 %v3242_v57, 16 }
 0x1af   : > { %vm2879_vm5 = vcmp.gt.f32.partialorder %v2863_v37, 0.0  ;;  %v2896_v59 = vmul.f32 %v5919_v11, %v2863_v37 }
 0x1b0   : > { %v2987_v9 = vor.u32 %v2985_v30, %v2984_v33  ;;  %v2988_v26 = vrot.slane %v2984_v33, 4 }
 0x1b1   : > { %v2912_v0 = vsel %vm2879_vm5, %v2863_v37, %v2896_v59  ;;  %v5979_v37 = vpop.f32.mrf.mxu1  ;;  %v3155_v59 = vld [vmem:[#allocation3 + $0x14] sm:$0x1] }
 0x1b2   : > { %v3145_v3 = vsel %vm5954_vm1, %v2987_v9, %v3144_v18  ;;  %v3150_v16 = vsel %vm5960_vm2, %v2988_v26, %v3149_v54  ;;  %v2966_v53 = vpack.c.bf16 %v2912_v0, %v2912_v0  ;;  %v2810_v47 = vpop.f32.mrf.mxu0  ;;  %v4107_v18 = vsel %vm4105_vm3, %v4071_v12, 0  ;;  %v3152_v54 = vld [vmem:[#allocation3 + $0x10] sm:$0xf]  ;;  %v5982_v9 = vpop.f32.mrf.mxu2 }
 0x1b3   : > { %3146 = vst [vmem:[#allocation3 + $0x8] sm:$0xf] %v3145_v3  ;;  %v2847_v31 = vadd.f32 %v2810_v47, %v2617_v41  ;;  %4116 = vmatpush.bf16.msrb.mxu0 %v4107_v18  ;;  %v2618_v0 = vadd.f32 %v5896_v48, %v2244_v52  ;;  %v3263_v3 = vrot.slane %v3261_v14, 4 }
 0x1b4   : > { %3151 = vst [vmem:[#allocation3 + $0xc] sm:$0x1] %v3150_v16  ;;  %v2990_v15 = vshrl.u32 %v2966_v53, 16  ;;  %v2993_v30 = vshll.u32 %v2966_v53, 16  ;;  %v3266_v16 = vrot.slane %v3264_v28, 5 }
 0x1b5   : > { %v2864_v39 = vadd.f32 %v5907_v10, %v2847_v31 }
 0x1b6   : > { %v2992_v33 = vrot.slane %v2990_v15, 7  ;;  %v2094_v15 = vadd.f32 %v5911_v19, %v5732_v25  ;;  %v3267_v14 = vor.u32 %v3266_v16, %v3263_v3  ;;  %v2095_v19 = vadd.f32 %v5947_v35, %v5759_v4 }
 0x1b7   : > { %vm2880_vm4 = vcmp.gt.f32.partialorder %v2864_v39, 0.0  ;;  %v2897_v32 = vmul.f32 %v5919_v11, %v2864_v39 }
 0x1b8   : > { %v2995_v26 = vor.u32 %v2993_v30, %v2992_v33  ;;  %v2996_v41 = vrot.slane %v2992_v33, 4  ;;  %v3252_v30 = vld [vmem:[#allocation3 + $0x4] sm:$0x1]  ;;  %v5991_v33 = vpop.f32.mrf.mxu3  ;;  %v2245_v52 = vadd.f32 %v5923_v62, %v2094_v15  ;;  %v3268_v3 = vrot.slane %v3267_v14, 4 }
 0x1b9   : > { %v2913_v50 = vsel %vm2880_vm4, %v2864_v39, %v2897_v32  ;;  %v3161_v32 = vld [vmem:[#allocation3 + $0x1c] sm:$0x1]  ;;  %v2246_v14 = vadd.f32 %v5950_v34, %v2095_v19 }
 0x1ba   : > { %v3153_v47 = vsel %vm5954_vm1, %v2995_v26, %v3152_v54  ;;  %v3156_v53 = vsel %vm5960_vm2, %v2996_v41, %v3155_v59  ;;  %v2967_v57 = vpack.c.bf16 %v2913_v50, %v2913_v50  ;;  %v2812_v31 = vpop.f32.mrf.mxu0  ;;  %v3270_v54 = vshll.u32 %v3252_v30, 16  ;;  %v3158_v59 = vld [vmem:[#allocation3 + $0x18] sm:$0xf]  ;;  %v5998_v26 = vpop.f32.mrf.mxu1  ;;  %v4484_v50 = vld [vmem:[#allocation3] sm:$0xf] }
 0x1bb   : > { %3154 = vst [vmem:[#allocation3 + $0x10] sm:$0xf] %v3153_v47  ;;  %v2848_v12 = vadd.f32 %v2812_v31, %v2618_v0  ;;  %v2619_v62 = vadd.f32 %v5935_v20, %v2245_v52  ;;  %v6001_v16 = vpop.f32.mrf.mxu2 }
 0x1bc   : > { %3157 = vst [vmem:[#allocation3 + $0x14] sm:$0x1] %v3156_v53  ;;  %v2998_v48 = vshrl.u32 %v2967_v57, 16  ;;  %v3001_v18 = vshll.u32 %v2967_v57, 16 }
 0x1bd   : > { %v2865_v39 = vadd.f32 %v5907_v10, %v2848_v12  ;;  %v3272_v12 = vrot.slane %v3270_v54, 5 }
 0x1be   : > { %v3000_v28 = vrot.slane %v2998_v48, 7 }
 0x1bf   : > { %vm2881_vm6 = vcmp.gt.f32.partialorder %v2865_v39, 0.0  ;;  %v2898_v25 = vmul.f32 %v5919_v11, %v2865_v39  ;;  %v3273_v34 = vsel %vm5024_vm9, %v3268_v3, %v3272_v12 }
 0x1c0   : > { %v3003_v41 = vor.u32 %v3001_v18, %v3000_v28  ;;  %v3004_v0 = vrot.slane %v3000_v28, 4  ;;  %v3375_v12 = vunpack.c.l.b16 %v3273_v34 }
 0x1c1   : > { %v2914_v47 = vsel %vm2881_vm6, %v2865_v39, %v2898_v25 }
 0x1c2   : > { %v3159_v53 = vsel %vm5954_vm1, %v3003_v41, %v3158_v59  ;;  %v3162_v57 = vsel %vm5960_vm2, %v3004_v0, %v3161_v32  ;;  %v2968_v31 = vpack.c.bf16 %v2914_v47, %v2914_v47  ;;  %v2815_v4 = vpop.f32.mrf.mxu0  ;;  %v4632_v35 = vld [vmem:[#allocation3 + $0xc] sm:$0xf0]  ;;  %v6010_v41 = vpop.f32.mrf.mxu3 }
 0x1c3   : > { %v3243_v15 = vld [vmem:[#allocation3 + $0x10] sm:$0xf]  ;;  %3160 = vst [vmem:[#allocation3 + $0x18] sm:$0xf] %v3159_v53  ;;  %v2849_v30 = vadd.f32 %v2815_v4, %v2619_v62  ;;  %v4485_v48 = vor.u32 %v4632_v35, %v4484_v50  ;;  %v3253_v20 = vld [vmem:[#allocation3 + $0x14] sm:$0x1]  ;;  %v2620_v4 = vadd.f32 %v5968_v61, %v2246_v14 }
 0x1c4   : > { %v3275_v52 = vshrl.u32 %v3243_v15, 16  ;;  %v3278_v39 = vshll.u32 %v3243_v15, 16  ;;  %3163 = vst [vmem:[#allocation3 + $0x1c] sm:$0x1] %v3162_v57  ;;  %v3006_v28 = vshrl.u32 %v2968_v31, 16  ;;  %v3284_v25 = vshll.u32 %v3253_v20, 16 }
 0x1c5   : > { %v2866_v18 = vadd.f32 %v5907_v10, %v2849_v30  ;;  %4502 = vmatmul.msk.bf16.vlgmr.msrb.gmra.mxu2 %vm3393_vm7, %v4485_v48  ;;  %v3009_v0 = vshll.u32 %v2968_v31, 16  ;;  %v3164_v62 = vld [vmem:[#allocation3 + $0x20] sm:$0xf]  ;;  %v3167_v50 = vld [vmem:[#allocation3 + $0x24] sm:$0x1]  ;;  %v6016_v48 = vpop.f32.mrf.mxu1 }
 0x1c6   : > { %v3277_v59 = vrot.slane %v3275_v52, 4  ;;  %v3280_v32 = vrot.slane %v3278_v39, 5  ;;  %v3008_v54 = vrot.slane %v3006_v28, 7  ;;  %v3286_v30 = vrot.slane %v3284_v25, 5  ;;  %v4510_v28 = vld [vmem:[#allocation3 + $0x8] sm:$0xf] }
 0x1c7   : > { %vm2882_vm8 = vcmp.gt.f32.partialorder %v2866_v18, 0.0  ;;  %v2899_v47 = vmul.f32 %v5919_v11, %v2866_v18  ;;  %v3874_v2 = vld [vmem:[#allocation3 + $0x14] sm:$0x1] }
 0x1c8   : > { %v3281_v19 = vor.u32 %v3280_v32, %v3277_v59  ;;  %v3011_v53 = vor.u32 %v3009_v0, %v3008_v54  ;;  %v3012_v57 = vrot.slane %v3008_v54, 4  ;;  %v2096_v59 = vadd.f32 %v5979_v37, %v5771_v21  ;;  %v2221_v32 = vpop.f32.mrf.mxu2  ;;  %v3170_v21 = vld [vmem:[#allocation3 + $0x28] sm:$0xf]  ;;  %v3173_v37 = vld [vmem:[#allocation3 + $0x2c] sm:$0x1] }
 0x1c9   : > { %v2915_v35 = vsel %vm2882_vm8, %v2866_v18, %v2899_v47  ;;  %vm4092_vm8 = vcmask 31744  }
 0x1ca   : > { %v3282_v15 = vrot.slane %v3281_v19, 4  ;;  %v3165_v31 = vsel %vm5954_vm1, %v3011_v53, %v3164_v62  ;;  %v3168_v20 = vsel %vm5960_vm2, %v3012_v57, %v3167_v50  ;;  %v2969_v52 = vpack.c.bf16 %v2915_v35, %v2915_v35  ;;  %v2817_v39 = vpop.f32.mrf.mxu0  ;;  %v4638_v3 = vld [vmem:[#allocation3 + $0x14] sm:$0xf0]  ;;  %v6030_v53 = vpop.f32.mrf.mxu3 }
 0x1cb   : > { %3166 = vst [vmem:[#allocation3 + $0x20] sm:$0xf] %v3165_v31  ;;  %v2850_v61 = vadd.f32 %v2817_v39, %v2620_v4  ;;  %v4511_v14 = vor.u32 %v4638_v3, %v4510_v28  ;;  %v2247_v0 = vadd.f32 %v5982_v9, %v2096_v59 }
 0x1cc   : > { %v3287_v18 = vsel %vm5024_vm9, %v3282_v15, %v3286_v30  ;;  %3169 = vst [vmem:[#allocation3 + $0x24] sm:$0x1] %v3168_v20  ;;  %v3014_v25 = vshrl.u32 %v2969_v52, 16  ;;  %v3017_v47 = vshll.u32 %v2969_v52, 16  ;;  %v2097_v52 = vadd.f32 %v5998_v26, %v5786_v49 }
 0x1cd   : > { %v3376_v54 = vunpack.c.l.b16 %v3287_v18  ;;  %v2867_v62 = vadd.f32 %v5907_v10, %v2850_v61  ;;  %4528 = vmatmul.msk.bf16.vlgmr.msrb.gmra.mxu3 %vm3393_vm7, %v4511_v14  ;;  %v2621_v9 = vadd.f32 %v5991_v33, %v2247_v0  ;;  %v2072_v28 = vpop.f32.mrf.mxu1  ;;  %v3179_v0 = vld [vmem:[#allocation3 + $0x34] sm:$0x1] }
 0x1ce   : > { %v3016_v50 = vrot.slane %v3014_v25, 7  ;;  %v1102_v25 = vadd.f32 %v5665_v44, %v5635_v42 }
 0x1cf   : > { %v3383_v34 = vpack.c.b16 %v3376_v54, %v3375_v12  ;;  %vm2883_vm11 = vcmp.gt.f32.partialorder %v2867_v62, 0.0  ;;  %v2900_v19 = vmul.f32 %v5919_v11, %v2867_v62  ;;  %v2248_v12 = vadd.f32 %v6001_v16, %v2097_v52  ;;  %v3176_v54 = vld [vmem:[#allocation3 + $0x30] sm:$0xf] }
 0x1d0   : > { %v3019_v57 = vor.u32 %v3017_v47, %v3016_v50  ;;  %v3020_v4 = vrot.slane %v3016_v50, 4  ;;  %v2223_v61 = vpop.f32.mrf.mxu2  ;;  %v1345_v16 = vadd.f32 %v5687_v5, %v1102_v25 }
 0x1d1   : > { %4478 = vmatmul.msk.bf16.vlgmr.msrb.gmra.mxu1 %vm3393_vm7, %v3383_v34  ;;  %v2916_v35 = vsel %vm2883_vm11, %v2867_v62, %v2900_v19  ;;  %v2622_v34 = vadd.f32 %v6010_v41, %v2248_v12 }
 0x1d2   : > { %v3171_v15 = vsel %vm5954_vm1, %v3019_v57, %v3170_v21  ;;  %v3174_v30 = vsel %vm5960_vm2, %v3020_v4, %v3173_v37  ;;  %v2970_v31 = vpack.c.bf16 %v2916_v35, %v2916_v35  ;;  %v2820_v20 = vpop.f32.mrf.mxu0  ;;  %v3244_v59 = vld [vmem:[#allocation3 + $0x20] sm:$0xf]  ;;  %v6047_v37 = vpop.f32.mrf.mxu3  ;;  %v2098_v4 = vadd.f32 %v6016_v48, %v5800_v51 }
 0x1d3   : > { %3172 = vst [vmem:[#allocation3 + $0x28] sm:$0xf] %v3171_v15  ;;  %v2851_v39 = vadd.f32 %v2820_v20, %v2621_v9  ;;  %v3289_v50 = vshrl.u32 %v3244_v59, 16  ;;  %v3292_v47 = vshll.u32 %v3244_v59, 16  ;;  %v1495_v15 = vadd.f32 %v5699_v46, %v1345_v16  ;;  %v3254_v48 = vld [vmem:[#allocation3 + $0x24] sm:$0x1] }
 0x1d4   : > { %3175 = vst [vmem:[#allocation3 + $0x2c] sm:$0x1] %v3174_v30  ;;  %v3022_v3 = vshrl.u32 %v2970_v31, 16  ;;  %v3025_v18 = vshll.u32 %v2970_v31, 16  ;;  %v2249_v30 = vadd.f32 %v2221_v32, %v2098_v4  ;;  %v3298_v16 = vshll.u32 %v3254_v48, 16 }
 0x1d5   : > { %v2868_v33 = vadd.f32 %v5907_v10, %v2851_v39  ;;  %v3291_v35 = vrot.slane %v3289_v50, 4  ;;  %v3294_v41 = vrot.slane %v3292_v47, 5  ;;  %v6057_v20 = vpop.f32.mrf.mxu1  ;;  %v1869_v12 = vadd.f32 %v5805_v56, %v1495_v15 }
 0x1d6   : > { %v3024_v14 = vrot.slane %v3022_v3, 7  ;;  %v3182_v3 = vld [vmem:[#allocation3 + $0x38] sm:$0xf]  ;;  %v2623_v25 = vadd.f32 %v6030_v53, %v2249_v30 }
 0x1d7   : > { %vm2884_vm12 = vcmp.gt.f32.partialorder %v2868_v33, 0.0  ;;  %v2901_v49 = vmul.f32 %v5919_v11, %v2868_v33  ;;  %v3295_v46 = vor.u32 %v3294_v41, %v3291_v35  ;;  %v2099_v32 = vadd.f32 %v2072_v28, %v1869_v12 }
 0x1d8   : > { %v3027_v26 = vor.u32 %v3025_v18, %v3024_v14  ;;  %v3028_v62 = vrot.slane %v3024_v14, 4  ;;  %v6061_v59 = vpop.f32.mrf.mxu2  ;;  %v1107_v12 = vadd.f32 %v5709_v27, %v5470_v55 }
 0x1d9   : > { %v2917_v21 = vsel %vm2884_vm12, %v2868_v33, %v2901_v49  ;;  %v3185_v33 = vld [vmem:[#allocation3 + $0x3c] sm:$0x1]  ;;  %v2250_v53 = vadd.f32 %v2223_v61, %v2099_v32  ;;  %v3296_v4 = vrot.slane %v3295_v46, 4  ;;  %v3300_v61 = vrot.slane %v3298_v16, 5 }
 0x1da   : > { %v3177_v19 = vsel %vm5954_vm1, %v3027_v26, %v3176_v54  ;;  %v3180_v42 = vsel %vm5960_vm2, %v3028_v62, %v3179_v0  ;;  %v2971_v44 = vpack.c.bf16 %v2917_v21, %v2917_v21  ;;  %v2822_v57 = vpop.f32.mrf.mxu0  ;;  %v4488_v0 = vld [vmem:[#allocation3 + $0x20] sm:$0xf] }
 0x1db   : > { %3178 = vst [vmem:[#allocation3 + $0x30] sm:$0xf] %v3177_v19  ;;  %v2852_v9 = vadd.f32 %v2822_v57, %v2622_v34  ;;  %v3301_v46 = vsel %vm5024_vm9, %v3296_v4, %v3300_v61 }
 0x1dc   : > { %3181 = vst [vmem:[#allocation3 + $0x34] sm:$0x1] %v3180_v42  ;;  %v3030_v5 = vshrl.u32 %v2971_v44, 16  ;;  %v3033_v39 = vshll.u32 %v2971_v44, 16  ;;  %v6068_v44 = vpop.f32.mrf.mxu3 }
 0x1dd   : > { %v2869_v31 = vadd.f32 %v5907_v10, %v2852_v9 }
 0x1de   : > { %v3032_v52 = vrot.slane %v3030_v5, 7 }
 0x1df   : > { %vm2885_vm13 = vcmp.gt.f32.partialorder %v2869_v31, 0.0  ;;  %v2902_v51 = vmul.f32 %v5919_v11, %v2869_v31 }
 0x1e0   : > { %v3035_v14 = vor.u32 %v3033_v39, %v3032_v52  ;;  %v3036_v18 = vrot.slane %v3032_v52, 4  ;;  %v3191_v52 = vld [vmem:[#allocation3 + $0x44] sm:$0x1] }
 0x1e1   : > { %v2918_v54 = vsel %vm2885_vm13, %v2869_v31, %v2902_v51  ;;  %v3188_v31 = vld [vmem:[#allocation3 + $0x40] sm:$0xf]  ;;  %v2077_v51 = vpop.f32.mrf.mxu1 }
 0x1e2   : > { %v3183_v49 = vsel %vm5954_vm1, %v3035_v14, %v3182_v3  ;;  %v3186_v56 = vsel %vm5960_vm2, %v3036_v18, %v3185_v33  ;;  %v2972_v26 = vpack.c.bf16 %v2918_v54, %v2918_v54  ;;  %v2825_v62 = vpop.f32.mrf.mxu0  ;;  %v4633_v50 = vld [vmem:[#allocation3 + $0x2c] sm:$0xf0]  ;;  %v2624_v33 = vadd.f32 %v6047_v37, %v2250_v53 }
 0x1e3   : > { %v3245_v47 = vld [vmem:[#allocation3 + $0x30] sm:$0xf]  ;;  %3184 = vst [vmem:[#allocation3 + $0x38] sm:$0xf] %v3183_v49  ;;  %v2853_v34 = vadd.f32 %v2825_v62, %v2623_v25  ;;  %v4489_v21 = vor.u32 %v4633_v50, %v4488_v0  ;;  %v3255_v19 = vld [vmem:[#allocation3 + $0x34] sm:$0x1]  ;;  %v1347_v54 = vadd.f32 %v5726_v23, %v1107_v12  ;;  %v2228_v0 = vpop.f32.mrf.mxu2  ;;  %v2100_v62 = vadd.f32 %v6057_v20, %v5816_v13 }
 0x1e4   : > { %v3303_v28 = vshrl.u32 %v3245_v47, 16  ;;  %v3306_v42 = vshll.u32 %v3245_v47, 16  ;;  %3187 = vst [vmem:[#allocation3 + $0x3c] sm:$0x1] %v3186_v56  ;;  %v3038_v57 = vshrl.u32 %v2972_v26, 16  ;;  %v3312_v41 = vshll.u32 %v3255_v19, 16  ;;  %v2602_v53 = vpop.f32.mrf.mxu3 }
 0x1e5   : > { %v2870_v9 = vadd.f32 %v5907_v10, %v2853_v34  ;;  %4503 = vmatmul.msk.bf16.gmra.mxu2 %vm3393_vm7, %v4489_v21  ;;  %v3041_v30 = vshll.u32 %v2972_v26, 16  ;;  %v4514_v56 = vld [vmem:[#allocation3 + $0x28] sm:$0xf]  ;;  %v3377_v34 = vunpack.c.l.b16 %v3301_v46  ;;  %v4648_v19 = vld [vmem:[%s6331_s2 + $0x20] sm:$0xff]  ;;  %v2251_v13 = vadd.f32 %v6061_v59, %v2100_v62 }
 0x1e6   : > { %v3305_v5 = vrot.slane %v3303_v28, 4  ;;  %v3308_v35 = vrot.slane %v3306_v42, 5  ;;  %v3040_v15 = vrot.slane %v3038_v57, 7  ;;  %v3314_v25 = vrot.slane %v3312_v41, 5  ;;  %v4649_v28 = vld [vmem:[%s6331_s2 + $0x28] sm:$0xff]  ;;  %v4643_v42 = vld [vmem:[%s6331_s2 + $0x18] sm:$0xff]  ;;  %3843 = vmatpush.bf16.msra.mxu2 %v4648_v19 }
 0x1e7   : > { %vm2886_vm14 = vcmp.gt.f32.partialorder %v2870_v9, 0.0  ;;  %v2903_v39 = vmul.f32 %v5919_v11, %v2870_v9  ;;  %4041 = vmatpush.bf16.msra.mxu3 %v4649_v28  ;;  %v3197_v41 = vld [vmem:[#allocation3 + $0x4c] sm:$0x1]  ;;  %3756 = vmatpush.bf16.msra.mxu1 %v4643_v42 }
 0x1e8   : > { %v3309_v3 = vor.u32 %v3308_v35, %v3305_v5  ;;  %v3043_v48 = vor.u32 %v3041_v30, %v3040_v15  ;;  %v3044_v14 = vrot.slane %v3040_v15, 4  ;;  %v1497_v5 = vadd.f32 %v5739_v43, %v1347_v54  ;;  %v3194_v35 = vld [vmem:[#allocation3 + $0x48] sm:$0xf] }
 0x1e9   : > { %v2919_v18 = vsel %vm2886_vm14, %v2870_v9, %v2903_v39  ;;  %v2080_v61 = vpop.f32.mrf.mxu1 }
 0x1ea   : > { %v3310_v32 = vrot.slane %v3309_v3, 4  ;;  %v3189_v49 = vsel %vm5954_vm1, %v3043_v48, %v3188_v31  ;;  %v3192_v55 = vsel %vm5960_vm2, %v3044_v14, %v3191_v52  ;;  %v2973_v27 = vpack.c.bf16 %v2919_v18, %v2919_v18  ;;  %v2827_v37 = vpop.f32.mrf.mxu0  ;;  %v4639_v26 = vld [vmem:[#allocation3 + $0x34] sm:$0xf0] }
 0x1eb   : > { %3190 = vst [vmem:[#allocation3 + $0x40] sm:$0xf] %v3189_v49  ;;  %v2854_v50 = vadd.f32 %v2827_v37, %v2624_v33  ;;  %v4515_v47 = vor.u32 %v4639_v26, %v4514_v56  ;;  %v1871_v31 = vadd.f32 %v5823_v29, %v1497_v5  ;;  %v2625_v52 = vadd.f32 %v6068_v44, %v2251_v13  ;;  %v2231_v18 = vpop.f32.mrf.mxu2 }
 0x1ec   : > { %v3315_v23 = vsel %vm5024_vm9, %v3310_v32, %v3314_v25  ;;  %3193 = vst [vmem:[#allocation3 + $0x44] sm:$0x1] %v3192_v55  ;;  %v3046_v16 = vshrl.u32 %v2973_v27, 16  ;;  %v3049_v4 = vshll.u32 %v2973_v27, 16  ;;  %v1112_v49 = vadd.f32 %v5756_v45, %v5500_v60  ;;  %v3200_v55 = vld [vmem:[#allocation3 + $0x50] sm:$0xf] }
 0x1ed   : > { %v3378_v21 = vunpack.c.l.b16 %v3315_v23  ;;  %v2871_v20 = vadd.f32 %v5907_v10, %v2854_v50  ;;  %4529 = vmatmul.msk.bf16.gmra.mxu3 %vm3393_vm7, %v4515_v47  ;;  %v2101_v48 = vadd.f32 %v2077_v51, %v1871_v31  ;;  %v3203_v27 = vld [vmem:[#allocation3 + $0x54] sm:$0x1]  ;;  %v2605_v51 = vpop.f32.mrf.mxu3 }
 0x1ee   : > { %v3048_v57 = vrot.slane %v3046_v16, 7 }
 0x1ef   : > { %v3384_v9 = vpack.c.b16 %v3378_v21, %v3377_v34  ;;  %vm2887_vm15 = vcmp.gt.f32.partialorder %v2871_v20, 0.0  ;;  %v2904_v59 = vmul.f32 %v5919_v11, %v2871_v20  ;;  %v2252_v32 = vadd.f32 %v2228_v0, %v2101_v48 }
 0x1f0   : > { %v3051_v15 = vor.u32 %v3049_v4, %v3048_v57  ;;  %v3052_v30 = vrot.slane %v3048_v57, 4  ;;  %v1349_v0 = vadd.f32 %v5767_v36, %v1112_v49  ;;  %v2102_v21 = vadd.f32 %v2080_v61, %v5830_v1 }
 0x1f1   : > { %4479 = vmatmul.msk.bf16.gmra.mxu1 %vm3393_vm7, %v3384_v9  ;;  %v2920_v39 = vsel %vm2887_vm15, %v2871_v20, %v2904_v59  ;;  %v2626_v47 = vadd.f32 %v2602_v53, %v2252_v32  ;;  %v2082_v28 = vpop.f32.mrf.mxu1  ;;  %v3209_v59 = vld [vmem:[#allocation3 + $0x5c] sm:$0x1] }
 0x1f2   : > { %v3195_v3 = vsel %vm5954_vm1, %v3051_v15, %v3194_v35  ;;  %v3198_v43 = vsel %vm5960_vm2, %v3052_v30, %v3197_v41  ;;  %v2974_v12 = vpack.c.bf16 %v2920_v39, %v2920_v39  ;;  %v2830_v33 = vpop.f32.mrf.mxu0  ;;  %v3246_v44 = vld [vmem:[#allocation3 + $0x40] sm:$0xf]  ;;  %v1499_v36 = vadd.f32 %v5773_v8, %v1349_v0  ;;  %v3206_v35 = vld [vmem:[#allocation3 + $0x58] sm:$0xf] }
 0x1f3   : > { %3196 = vst [vmem:[#allocation3 + $0x48] sm:$0xf] %v3195_v3  ;;  %v2855_v14 = vadd.f32 %v2830_v33, %v2625_v52  ;;  %v3317_v62 = vshrl.u32 %v3246_v44, 16  ;;  %v3320_v50 = vshll.u32 %v3246_v44, 16  ;;  %v2253_v53 = vadd.f32 %v2231_v18, %v2102_v21  ;;  %v2233_v4 = vpop.f32.mrf.mxu2  ;;  %v3256_v15 = vld [vmem:[#allocation3 + $0x44] sm:$0x1] }
 0x1f4   : > { %3199 = vst [vmem:[#allocation3 + $0x4c] sm:$0x1] %v3198_v43  ;;  %v3054_v46 = vshrl.u32 %v2974_v12, 16  ;;  %v3057_v54 = vshll.u32 %v2974_v12, 16  ;;  %v1873_v41 = vadd.f32 %v5837_v7, %v1499_v36  ;;  %v4492_v3 = vld [vmem:[#allocation3 + $0x40] sm:$0xf] }
 0x1f5   : > { %v2872_v29 = vadd.f32 %v5907_v10, %v2855_v14  ;;  %v3319_v20 = vrot.slane %v3317_v62, 4  ;;  %v3322_v42 = vrot.slane %v3320_v50, 5  ;;  %v2627_v61 = vadd.f32 %v2605_v51, %v2253_v53  ;;  %v2607_v43 = vpop.f32.mrf.mxu3 }
 0x1f6   : > { %v3056_v25 = vrot.slane %v3054_v46, 7  ;;  %v2103_v39 = vadd.f32 %v2082_v28, %v1873_v41  ;;  %v3326_v46 = vshll.u32 %v3256_v15, 16 }
 0x1f7   : > { %vm2888_vm0 = vcmp.gt.f32.partialorder %v2872_v29, 0.0  ;;  %v2905_v37 = vmul.f32 %v5919_v11, %v2872_v29  ;;  %v3323_v52 = vor.u32 %v3322_v42, %v3319_v20 }
 0x1f8   : > { %v3059_v56 = vor.u32 %v3057_v54, %v3056_v25  ;;  %v3060_v26 = vrot.slane %v3056_v25, 4  ;;  %v2254_v49 = vadd.f32 %v2233_v4, %v2103_v39 }
 0x1f9   : > { %v2921_v23 = vsel %vm2888_vm0, %v2872_v29, %v2905_v37  ;;  %v2085_v62 = vpop.f32.mrf.mxu1 }
 0x1fa   : > { %v3201_v16 = vsel %vm5954_vm1, %v3059_v56, %v3200_v55  ;;  %v3204_v60 = vsel %vm5960_vm2, %v3060_v26, %v3203_v27  ;;  %v2975_v45 = vpack.c.bf16 %v2921_v23, %v2921_v23  ;;  %v2832_v34 = vpop.f32.mrf.mxu0  ;;  %v3324_v27 = vrot.slane %v3323_v52, 4  ;;  %v3215_v23 = vld [vmem:[#allocation3 + $0x64] sm:$0x1] }
 0x1fb   : > { %3202 = vst [vmem:[#allocation3 + $0x50] sm:$0xf] %v3201_v16  ;;  %v2856_v19 = vadd.f32 %v2832_v34, %v2626_v47  ;;  %v3212_v47 = vld [vmem:[#allocation3 + $0x60] sm:$0xf]  ;;  %v1117_v34 = vadd.f32 %v5811_v17, %v5511_v38  ;;  %v2628_v21 = vadd.f32 %v2607_v43, %v2254_v49  ;;  %v4518_v17 = vld [vmem:[#allocation3 + $0x48] sm:$0xf]  ;;  %v2104_v41 = vadd.f32 %v2085_v62, %v5862_v63 }
 0x1fc   : > { %3205 = vst [vmem:[#allocation3 + $0x54] sm:$0x1] %v3204_v60  ;;  %v3062_v13 = vshrl.u32 %v2975_v45, 16  ;;  %v3065_v5 = vshll.u32 %v2975_v45, 16  ;;  %v3328_v60 = vrot.slane %v3326_v46, 5 }
 0x1fd   : > { %v2873_v57 = vadd.f32 %v5907_v10, %v2856_v19  ;;  %v2236_v19 = vpop.f32.mrf.mxu2 }
 0x1fe   : > { %v3064_v9 = vrot.slane %v3062_v13, 7  ;;  %v3329_v42 = vsel %vm5024_vm9, %v3324_v27, %v3328_v60  ;;  %v2255_v39 = vadd.f32 %v2236_v19, %v2104_v41 }
 0x1ff   : > { %vm2889_vm5 = vcmp.gt.f32.partialorder %v2873_v57, 0.0  ;;  %v2906_v1 = vmul.f32 %v5919_v11, %v2873_v57 }
 0x200   : > { %v3067_v30 = vor.u32 %v3065_v5, %v3064_v9  ;;  %v3068_v31 = vrot.slane %v3064_v9, 4 }
 0x201   : > { %v2922_v8 = vsel %vm2889_vm5, %v2873_v57, %v2906_v1  ;;  %v1351_v57 = vadd.f32 %v5813_v40, %v1117_v34 }
 0x202   : > { %v3207_v12 = vsel %vm5954_vm1, %v3067_v30, %v3206_v35  ;;  %v3210_v33 = vsel %vm5960_vm2, %v3068_v31, %v3209_v59  ;;  %v2976_v7 = vpack.c.bf16 %v2922_v8, %v2922_v8  ;;  %v2835_v48 = vpop.f32.mrf.mxu0  ;;  %v4634_v14 = vld [vmem:[#allocation3 + $0x4c] sm:$0xf0]  ;;  %v2610_v30 = vpop.f32.mrf.mxu3  ;;  %v3379_v31 = vunpack.c.l.b16 %v3329_v42 }
 0x203   : > { %v3247_v18 = vld [vmem:[#allocation3 + $0x50] sm:$0xf]  ;;  %3208 = vst [vmem:[#allocation3 + $0x58] sm:$0xf] %v3207_v12  ;;  %v2857_v32 = vadd.f32 %v2835_v48, %v2627_v61  ;;  %v4493_v29 = vor.u32 %v4634_v14, %v4492_v3  ;;  %v3257_v44 = vld [vmem:[#allocation3 + $0x54] sm:$0x1]  ;;  %v1501_v63 = vadd.f32 %v5819_v22, %v1351_v57  ;;  %v2087_v48 = vpop.f32.mrf.mxu1 }
 0x204   : > { %v3331_v25 = vshrl.u32 %v3247_v18, 16  ;;  %v3334_v54 = vshll.u32 %v3247_v18, 16  ;;  %3211 = vst [vmem:[#allocation3 + $0x5c] sm:$0x1] %v3210_v33  ;;  %v3070_v55 = vshrl.u32 %v2976_v7, 16  ;;  %v3340_v26 = vshll.u32 %v3257_v44, 16 }
 0x205   : > { %v2874_v37 = vadd.f32 %v5907_v10, %v2857_v32  ;;  %4504 = vmatmul.msk.bf16.gmra.mxu2 %vm3393_vm7, %v4493_v29  ;;  %v3073_v0 = vshll.u32 %v2976_v7, 16  ;;  %v3218_v12 = vld [vmem:[#allocation3 + $0x68] sm:$0xf]  ;;  %v3221_v33 = vld [vmem:[#allocation3 + $0x6c] sm:$0x1]  ;;  %v1875_v46 = vadd.f32 %v5885_v6, %v1501_v63  ;;  %v2629_v32 = vadd.f32 %v2610_v30, %v2255_v39  ;;  %v2238_v44 = vpop.f32.mrf.mxu2 }
 0x206   : > { %v3333_v51 = vrot.slane %v3331_v25, 4  ;;  %v3336_v56 = vrot.slane %v3334_v54, 5  ;;  %v3072_v50 = vrot.slane %v3070_v55, 7  ;;  %v3342_v53 = vrot.slane %v3340_v26, 5  ;;  %v3873_v39 = vld [vmem:[#allocation3 + $0x10] sm:$0xf] }
 0x207   : > { %vm2890_vm3 = vcmp.gt.f32.partialorder %v2874_v37, 0.0  ;;  %v2907_v16 = vmul.f32 %v5919_v11, %v2874_v37  ;;  %v2105_v55 = vadd.f32 %v2087_v48, %v1875_v46  ;;  %v3590_v63 = vld [vmem:[#allocation3 + $0x18] sm:$0xf] }
 0x208   : > { %v3337_v45 = vor.u32 %v3336_v56, %v3333_v51  ;;  %v3075_v28 = vor.u32 %v3073_v0, %v3072_v50  ;;  %v3076_v13 = vrot.slane %v3072_v50, 4  ;;  %v3224_v0 = vld [vmem:[#allocation3 + $0x70] sm:$0xf] }
 0x209   : > { %v2923_v20 = vsel %vm2890_vm3, %v2874_v37, %v2907_v16  ;;  %v2256_v51 = vadd.f32 %v2238_v44, %v2105_v55 }
 0x20a   : > { %v3338_v36 = vrot.slane %v3337_v45, 4  ;;  %v3213_v4 = vsel %vm5954_vm1, %v3075_v28, %v3212_v47  ;;  %v3216_v9 = vsel %vm5960_vm2, %v3076_v13, %v3215_v23  ;;  %v2977_v5 = vpack.c.bf16 %v2923_v20, %v2923_v20  ;;  %v2837_v38 = vpop.f32.mrf.mxu0  ;;  %v4640_v35 = vld [vmem:[#allocation3 + $0x54] sm:$0xf0]  ;;  %v2612_v26 = vpop.f32.mrf.mxu3  ;;  %v3227_v47 = vld [vmem:[#allocation3 + $0x74] sm:$0x1] }
 0x20b   : > { %3214 = vst [vmem:[#allocation3 + $0x60] sm:$0xf] %v3213_v4  ;;  %v2858_v59 = vadd.f32 %v2837_v38, %v2628_v21  ;;  %v4519_v1 = vor.u32 %v4640_v35, %v4518_v17  ;;  %v2630_v34 = vadd.f32 %v2612_v26, %v2256_v51  ;;  %v6157_v4 = vld [vmem:[#allocation3 + $0x8] sm:$0xf]  ;;  %v4580_v38 = vld [vmem:[%s4887_s15] sm:$0xf] }
 0x20c   : > { %v3343_v15 = vsel %vm5024_vm9, %v3338_v36, %v3342_v53  ;;  %3217 = vst [vmem:[#allocation3 + $0x64] sm:$0x1] %v3216_v9  ;;  %v3078_v40 = vshrl.u32 %v2977_v5, 16  ;;  %v3081_v3 = vshll.u32 %v2977_v5, 16  ;;  %v4604_v17 = vld [vmem:[%s4887_s15 + $0x4] sm:$0xf0] }
 0x20d   : > { %v3380_v52 = vunpack.c.l.b16 %v3343_v15  ;;  %v2875_v61 = vadd.f32 %v5907_v10, %v2858_v59  ;;  %4530 = vmatmul.msk.bf16.gmra.mxu3 %vm3393_vm7, %v4519_v1  ;;  %v3230_v59 = vld [vmem:[#allocation3 + $0x78] sm:$0xf]  ;;  %v4581_v1 = vor.u32 %v4604_v17, %v4580_v38  ;;  %v3233_v15 = vld [vmem:[#allocation3 + $0x7c] sm:$0x1]  ;;  %v3619_v26 = vshrl.u32 %v3590_v63, 16 }
 0x20e   : > { %v3080_v8 = vrot.slane %v3078_v40, 7  ;;  %v3876_v17 = vld [vmem:[#allocation3 + $0x24] sm:$0x1] }
 0x20f   : > { %v3385_v43 = vpack.c.b16 %v3380_v52, %v3379_v31  ;;  %vm2891_vm4 = vcmp.gt.f32.partialorder %v2875_v61, 0.0  ;;  %v2908_v7 = vmul.f32 %v5919_v11, %v2875_v61  ;;  %4594 = vmatmul.msk.bf16.vlgmr.msrb.gmra.mxu0 %vm4092_vm8, %v4581_v1  ;;  %v3591_v1 = vld [vmem:[#allocation3 + $0x1c] sm:$0x1] }
 0x210   : > { %v3083_v14 = vor.u32 %v3081_v3, %v3080_v8  ;;  %v3084_v18 = vrot.slane %v3080_v8, 4 }
 0x211   : > { %4480 = vmatmul.msk.bf16.gmra.mxu1 %vm3393_vm7, %v3385_v43  ;;  %v2924_v29 = vsel %vm2891_vm4, %v2875_v61, %v2908_v7  ;;  %v3875_v43 = vld [vmem:[#allocation3 + $0x20] sm:$0xf] }
 0x212   : > { %v3219_v25 = vsel %vm5954_vm1, %v3083_v14, %v3218_v12  ;;  %v3222_v22 = vsel %vm5960_vm2, %v3084_v18, %v3221_v33  ;;  %v2978_v54 = vpack.c.bf16 %v2924_v29, %v2924_v29  ;;  %v2840_v49 = vpop.f32.mrf.mxu0  ;;  %v3248_v6 = vld [vmem:[#allocation3 + $0x60] sm:$0xf] }
 0x213   : > { %3220 = vst [vmem:[#allocation3 + $0x68] sm:$0xf] %v3219_v25  ;;  %v2859_v27 = vadd.f32 %v2840_v49, %v2629_v32  ;;  %v3345_v45 = vshrl.u32 %v3248_v6, 16  ;;  %v3348_v19 = vshll.u32 %v3248_v6, 16  ;;  %v3258_v40 = vld [vmem:[#allocation3 + $0x64] sm:$0x1] }
 0x214   : > { %3223 = vst [vmem:[#allocation3 + $0x6c] sm:$0x1] %v3222_v22  ;;  %v3086_v37 = vshrl.u32 %v2978_v54, 16  ;;  %v3089_v50 = vshll.u32 %v2978_v54, 16  ;;  %v4496_v8 = vld [vmem:[#allocation3 + $0x60] sm:$0xf] }
 0x215   : > { %v2876_v56 = vadd.f32 %v5907_v10, %v2859_v27  ;;  %v3347_v57 = vrot.slane %v3345_v45, 4  ;;  %v3350_v5 = vrot.slane %v3348_v19, 5  ;;  %v3354_v14 = vshll.u32 %v3258_v40, 16 }
 0x216   : > { %v3088_v62 = vrot.slane %v3086_v37, 7  ;;  %v3890_v25 = vshrl.u32 %v3873_v39, 16  ;;  %v3904_v22 = vshrl.u32 %v3875_v43, 16  ;;  %v3907_v54 = vshll.u32 %v3875_v43, 16 }
 0x217   : > { %vm2892_vm6 = vcmp.gt.f32.partialorder %v2876_v56, 0.0  ;;  %v2909_v23 = vmul.f32 %v5919_v11, %v2876_v56  ;;  %v3351_v3 = vor.u32 %v3350_v5, %v3347_v57  ;;  %v3893_v6 = vshll.u32 %v3873_v39, 16  ;;  %v4584_v39 = vld [vmem:[%s4887_s15 + $0x10] sm:$0xf] }
 0x218   : > { %v3091_v16 = vor.u32 %v3089_v50, %v3088_v62  ;;  %v3092_v60 = vrot.slane %v3088_v62, 4  ;;  %v3236_v62 = vld [vmem:[#allocation3 + $0x80] sm:$0xf]  ;;  %v3239_v50 = vld [vmem:[#allocation3 + $0x84] sm:$0x1]  ;;  %v3906_v45 = vrot.slane %v3904_v22, 4 }
 0x219   : > { %v2925_v21 = vsel %vm2892_vm6, %v2876_v56, %v2909_v23  ;;  %v3352_v49 = vrot.slane %v3351_v3, 4  ;;  %v3622_v23 = vshll.u32 %v3590_v63, 16  ;;  %v3892_v57 = vrot.slane %v3890_v25, 4  ;;  %v4644_v63 = vld [vmem:[#allocation3 + $0x1c] sm:$0xf0] }
 0x21a   : > { %v3225_v28 = vsel %vm5954_vm1, %v3091_v16, %v3224_v0  ;;  %v3228_v13 = vsel %vm5960_vm2, %v3092_v60, %v3227_v47  ;;  %v2979_v20 = vpack.c.bf16 %v2925_v21, %v2925_v21  ;;  %v2842_v42 = vpop.f32.mrf.mxu0  ;;  %v3356_v0 = vrot.slane %v3354_v14, 5 }
 0x21b   : > { %3226 = vst [vmem:[#allocation3 + $0x70] sm:$0xf] %v3225_v28  ;;  %v2860_v36 = vadd.f32 %v2842_v42, %v2630_v34  ;;  %v3909_v34 = vrot.slane %v3907_v54, 5 }
 0x21c   : > { %3229 = vst [vmem:[#allocation3 + $0x74] sm:$0x1] %v3228_v13  ;;  %v3094_v53 = vshrl.u32 %v2979_v20, 16  ;;  %v3097_v41 = vshll.u32 %v2979_v20, 16  ;;  %v3357_v21 = vsel %vm5024_vm9, %v3352_v49, %v3356_v0  ;;  %v3608_v13 = vshll.u32 %v6157_v4, 16 }
 0x21d   : > { %v2877_v9 = vadd.f32 %v5907_v10, %v2860_v36  ;;  %v3605_v10 = vshrl.u32 %v6157_v4, 16  ;;  %v4522_v36 = vld [vmem:[#allocation3 + $0x68] sm:$0xf]  ;;  %v3624_v4 = vrot.slane %v3622_v23, 5  ;;  %v3381_v58 = vunpack.c.l.b16 %v3357_v21 }
 0x21e   : > { %v3096_v35 = vrot.slane %v3094_v53, 7 }
 0x21f   : > { %vm2893_vm11 = vcmp.gt.f32.partialorder %v2877_v9, 0.0  ;;  %v2910_v30 = vmul.f32 %v5919_v11, %v2877_v9 }
 0x220   : > { %v3099_v31 = vor.u32 %v3097_v41, %v3096_v35  ;;  %v3100_v52 = vrot.slane %v3096_v35, 4  ;;  %v3621_v35 = vrot.slane %v3619_v26, 4 }
 0x221   : > { %v2926_v61 = vsel %vm2893_vm11, %v2877_v9, %v2910_v30  ;;  %v3895_v9 = vrot.slane %v3893_v6, 5  ;;  %v3610_v30 = vrot.slane %v3608_v13, 5 }
 0x222   : > { %v3231_v12 = vsel %vm5954_vm1, %v3099_v31, %v3230_v59  ;;  %v3234_v33 = vsel %vm5960_vm2, %v3100_v52, %v3233_v15  ;;  %v2980_v11 = vpack.c.bf16 %v2926_v61, %v2926_v61  ;;  %v4635_v7 = vld [vmem:[#allocation3 + $0x6c] sm:$0xf0]  ;;  %v3910_v59 = vor.u32 %v3909_v34, %v3906_v45  ;;  %v4605_v61 = vld [vmem:[%s4887_s15 + $0x14] sm:$0xf0] }
 0x223   : > { %v3249_v48 = vld [vmem:[#allocation3 + $0x70] sm:$0xf]  ;;  %3232 = vst [vmem:[#allocation3 + $0x78] sm:$0xf] %v3231_v12  ;;  %v4497_v18 = vor.u32 %v4635_v7, %v4496_v8  ;;  %v3259_v46 = vld [vmem:[#allocation3 + $0x74] sm:$0x1]  ;;  %v3896_v31 = vor.u32 %v3895_v9, %v3892_v57  ;;  %v3625_v3 = vor.u32 %v3624_v4, %v3621_v35  ;;  %v4585_v43 = vor.u32 %v4605_v61, %v4584_v39 }
 0x224   : > { %v3359_v32 = vshrl.u32 %v3249_v48, 16  ;;  %v3362_v29 = vshll.u32 %v3249_v48, 16  ;;  %3235 = vst [vmem:[#allocation3 + $0x7c] sm:$0x1] %v3234_v33  ;;  %v3102_v44 = vshrl.u32 %v2980_v11, 16  ;;  %v3368_v37 = vshll.u32 %v3259_v46, 16 }
 0x225   : > { %4505 = vmatmul.msk.bf16.gmra.mxu2 %vm3393_vm7, %v4497_v18  ;;  %v3105_v56 = vshll.u32 %v2980_v11, 16  ;;  %v3607_v15 = vrot.slane %v3605_v10, 4  ;;  %v3913_v52 = vshll.u32 %v3876_v17, 16  ;;  %v3589_v8 = vld [vmem:[#allocation3 + $0xc] sm:$0x1]  ;;  %v3899_v12 = vshll.u32 %v3874_v2, 16  ;;  %4595 = vmatmul.msk.bf16.gmra.mxu0 %vm4092_vm8, %v4585_v43 }
 0x226   : > { %v3361_v55 = vrot.slane %v3359_v32, 4  ;;  %v3364_v27 = vrot.slane %v3362_v29, 5  ;;  %v3104_v51 = vrot.slane %v3102_v44, 7  ;;  %v3370_v28 = vrot.slane %v3368_v37, 5  ;;  %v3879_v48 = vld [vmem:[#allocation3 + $0x40] sm:$0xf] }
 0x227   : > { %v3911_v33 = vrot.slane %v3910_v59, 4  ;;  %v3611_v11 = vor.u32 %v3610_v30, %v3607_v15  ;;  %v3628_v7 = vshll.u32 %v3591_v1, 16  ;;  %v4546_v10 = vld [vmem:[#allocation3 + $0x10] sm:$0xf]  ;;  %v3897_v14 = vrot.slane %v3896_v31, 4 }
 0x228   : > { %v3365_v47 = vor.u32 %v3364_v27, %v3361_v55  ;;  %v3107_v16 = vor.u32 %v3105_v56, %v3104_v51  ;;  %v3108_v60 = vrot.slane %v3104_v51, 4  ;;  %v3915_v18 = vrot.slane %v3913_v52, 5  ;;  %v3877_v44 = vld [vmem:[#allocation3 + $0x30] sm:$0xf]  ;;  %v3594_v55 = vld [vmem:[#allocation3 + $0x38] sm:$0xf] }
 0x229   : > { %v3614_v46 = vshll.u32 %v3589_v8, 16  ;;  %v4547_v32 = vor.u32 %v4644_v63, %v4546_v10  ;;  %v3626_v29 = vrot.slane %v3625_v3, 4  ;;  %v3901_v25 = vrot.slane %v3899_v12, 5  ;;  %v4588_v4 = vld [vmem:[%s4887_s15 + $0x20] sm:$0xf] }
 0x22a   : > { %v3366_v19 = vrot.slane %v3365_v47, 4  ;;  %v3237_v20 = vsel %vm5954_vm1, %v3107_v16, %v3236_v62  ;;  %v3240_v42 = vsel %vm5960_vm2, %v3108_v60, %v3239_v50  ;;  %v4641_v53 = vld [vmem:[#allocation3 + $0x74] sm:$0xf0]  ;;  %v3916_v22 = vsel %vm5024_vm9, %v3911_v33, %v3915_v18  ;;  %v3592_v62 = vld [vmem:[#allocation3 + $0x28] sm:$0xf] }
 0x22b   : > { %3238 = vst [vmem:[#allocation3 + $0x80] sm:$0xf] %v3237_v20  ;;  %v4523_v5 = vor.u32 %v4641_v53, %v4522_v36  ;;  %v3932_v54 = vshrl.u32 %v3879_v48, 16  ;;  %v3935_v49 = vshll.u32 %v3879_v48, 16  ;;  %v3612_v27 = vrot.slane %v3611_v11, 4 }
 0x22c   : > { %v3371_v38 = vsel %vm5024_vm9, %v3366_v19, %v3370_v28  ;;  %3241 = vst [vmem:[#allocation3 + $0x84] sm:$0x1] %v3240_v42  ;;  %v3630_v37 = vrot.slane %v3628_v7, 5  ;;  %v3902_v51 = vsel %vm5024_vm9, %v3897_v14, %v3901_v25  ;;  %v3616_v56 = vrot.slane %v3614_v46, 5  ;;  %v3880_v36 = vld [vmem:[#allocation3 + $0x44] sm:$0x1] }
 0x22d   : > { %v3382_v41 = vunpack.c.l.b16 %v3371_v38  ;;  %4531 = vmatmul.msk.bf16.gmra.mxu3 %vm3393_vm7, %v4523_v5  ;;  %v3918_v6 = vshrl.u32 %v3877_v44, 16  ;;  %v3921_v26 = vshll.u32 %v3877_v44, 16  ;;  %v4005_v50 = vunpack.c.l.b16 %v3916_v22  ;;  %v3878_v5 = vld [vmem:[#allocation3 + $0x34] sm:$0x1]  ;;  %v3595_v1 = vld [vmem:[#allocation3 + $0x3c] sm:$0x1] }
 0x22e   : > { %v3631_v0 = vsel %vm5024_vm9, %v3626_v29, %v3630_v37  ;;  %v3647_v47 = vshrl.u32 %v3594_v55, 16  ;;  %v3650_v23 = vshll.u32 %v3594_v55, 16  ;;  %v3934_v16 = vrot.slane %v3932_v54, 4  ;;  %v3593_v30 = vld [vmem:[#allocation3 + $0x2c] sm:$0x1] }
 0x22f   : > { %v3386_v40 = vpack.c.b16 %v3382_v41, %v3381_v58  ;;  %v3937_v60 = vrot.slane %v3935_v49, 5  ;;  %v4004_v45 = vunpack.c.l.b16 %v3902_v51  ;;  %v3617_v34 = vsel %vm5024_vm9, %v3612_v27, %v3616_v56  ;;  %v4606_v58 = vld [vmem:[%s4887_s15 + $0x24] sm:$0xf0]  ;;  %v4645_v31 = vld [vmem:[#allocation3 + $0x3c] sm:$0xf0] }
 0x230   : > { %v3633_v21 = vshrl.u32 %v3592_v62, 16  ;;  %v3636_v19 = vshll.u32 %v3592_v62, 16  ;;  %v3720_v28 = vunpack.c.l.b16 %v3631_v0  ;;  %v3920_v13 = vrot.slane %v3918_v6, 4  ;;  %v3883_v3 = vld [vmem:[#allocation3 + $0x60] sm:$0xf] }
 0x231   : > { %4481 = vmatmul.msk.bf16.gmra.mxu1 %vm3393_vm7, %v3386_v40  ;;  %v3923_v20 = vrot.slane %v3921_v26, 5  ;;  %v4012_v42 = vpack.c.b16 %v4005_v50, %v4004_v45  ;;  %v3649_v53 = vrot.slane %v3647_v47, 4  ;;  %v3652_v57 = vrot.slane %v3650_v23, 5  ;;  %v4550_v43 = vld [vmem:[#allocation3 + $0x30] sm:$0xf] }
 0x232   : > { %v3719_v9 = vunpack.c.l.b16 %v3617_v34  ;;  %v3938_v38 = vor.u32 %v3937_v60, %v3934_v16  ;;  %v3635_v17 = vrot.slane %v3633_v21, 4  ;;  %v3638_v35 = vrot.slane %v3636_v19, 5  ;;  %v3881_v48 = vld [vmem:[#allocation3 + $0x50] sm:$0xf]  ;;  %v3596_v55 = vld [vmem:[#allocation3 + $0x48] sm:$0xf] }
 0x233   : > { %v3924_v59 = vor.u32 %v3923_v20, %v3920_v13  ;;  %v3941_v2 = vshll.u32 %v3880_v36, 16  ;;  %v4589_v15 = vor.u32 %v4606_v58, %v4588_v4  ;;  %v3653_v40 = vor.u32 %v3652_v57, %v3649_v53  ;;  %v3884_v34 = vld [vmem:[#allocation3 + $0x64] sm:$0x1]  ;;  %v3882_v20 = vld [vmem:[#allocation3 + $0x54] sm:$0x1] }
 0x234   : > { %v3727_v41 = vpack.c.b16 %v3720_v28, %v3719_v9  ;;  %v3927_v52 = vshll.u32 %v3878_v5, 16  ;;  %v3939_v39 = vrot.slane %v3938_v38, 4  ;;  %v3639_v61 = vor.u32 %v3638_v35, %v3635_v17  ;;  %v4592_v38 = vld [vmem:[%s4887_s15 + $0x30] sm:$0xf]  ;;  %v4607_v17 = vld [vmem:[%s4887_s15 + $0x34] sm:$0xf0] }
 0x235   : > { %4564 = vmatmul.msk.bf16.vlgmr.msra.gmra.mxu2 %vm3393_vm7, %v4547_v32  ;;  %v3656_v8 = vshll.u32 %v3595_v1, 16  ;;  %4596 = vmatmul.msk.bf16.gmra.mxu0 %vm4092_vm8, %v4589_v15  ;;  %v3925_v63 = vrot.slane %v3924_v59, 4  ;;  %v3943_v12 = vrot.slane %v3941_v2, 5  ;;  %v3642_v33 = vshll.u32 %v3593_v30, 16  ;;  %v3598_v32 = vld [vmem:[#allocation3 + $0x58] sm:$0xf] }
 0x236   : > { %v4551_v11 = vor.u32 %v4645_v31, %v4550_v43  ;;  %v3654_v7 = vrot.slane %v3653_v40, 4  ;;  %v3929_v10 = vrot.slane %v3927_v52, 5  ;;  %v3960_v18 = vshrl.u32 %v3883_v3, 16  ;;  %v3597_v35 = vld [vmem:[#allocation3 + $0x4c] sm:$0x1]  ;;  %s242_s15 = sand.u32 1, %s4778_s22  }
 0x237   : > { %v3944_v14 = vsel %vm5024_vm9, %v3939_v39, %v3943_v12  ;;  %v3963_v46 = vshll.u32 %v3883_v3, 16  ;;  %v3640_v29 = vrot.slane %v3639_v61, 4  ;;  %v3658_v44 = vrot.slane %v3656_v8, 5  ;;  %v3887_v30 = vld [vmem:[#allocation3 + $0x80] sm:$0xf]  ;;  %s4245_s16 = sshll.u32 %s242_s15, 6 }
 0x238   : > { %v3930_v25 = vsel %vm5024_vm9, %v3925_v63, %v3929_v10  ;;  %v3644_v22 = vrot.slane %v3642_v33, 5  ;;  %v3946_v54 = vshrl.u32 %v3881_v48, 16  ;;  %v3949_v49 = vshll.u32 %v3881_v48, 16  ;;  %v4554_v40 = vld [vmem:[#allocation3 + $0x50] sm:$0xf]  ;;  %s6261_s19 = scalar_lea.vmem [#allocation4], %s4245_s16 }
 0x239   : > { %v4007_v27 = vunpack.c.l.b16 %v3944_v14  ;;  %v3659_v37 = vsel %vm5024_vm9, %v3654_v7, %v3658_v44  ;;  %v3675_v51 = vshrl.u32 %v3598_v32, 16  ;;  %v3678_v56 = vshll.u32 %v3598_v32, 16  ;;  %v3885_v3 = vld [vmem:[#allocation3 + $0x70] sm:$0xf]  ;;  %v3600_v32 = vld [vmem:[#allocation3 + $0x68] sm:$0xf] }
 0x23a   : > { %v3962_v6 = vrot.slane %v3960_v18, 4  ;;  %v3965_v26 = vrot.slane %v3963_v46, 5  ;;  %v4006_v62 = vunpack.c.l.b16 %v3930_v25  ;;  %v3645_v50 = vsel %vm5024_vm9, %v3640_v29, %v3644_v22  ;;  %s4176_s9 = sshll.u32 %s6261_s19, 4  ;;  %s4164_s25 = scalar_lea.sflag [#allocation5], %s242_s15  ;;  %s4177_s9 = int_to_ptr.vmem [resolvable:$true] %s4176_s9 }
 0x23b   : > { %v3661_v0 = vshrl.u32 %v3596_v55, 16  ;;  %v3664_v47 = vshll.u32 %v3596_v55, 16  ;;  %v3722_v23 = vunpack.c.l.b16 %v3659_v37  ;;  %v3948_v16 = vrot.slane %v3946_v54, 4  ;;  %s4744_s16 = scalar_lea.hbm %s6335_s6, 128 }
 0x23c   : > { %v3951_v60 = vrot.slane %v3949_v49, 5  ;;  %v4013_v45 = vpack.c.b16 %v4007_v27, %v4006_v62  ;;  %v3677_v21 = vrot.slane %v3675_v51, 4  ;;  %v3680_v19 = vrot.slane %v3678_v56, 5  ;;  %p4746_p1 = scmp.lt.s32.totalorder %s4744_s16, %s4740_s12 }
 0x23d   : > { %4574 = vmatmul.msk.bf16.vlgmr.msra.gmra.mxu3 %vm3393_vm7, %v4012_v42  ;;  %v3721_v28 = vunpack.c.l.b16 %v3645_v50  ;;  %v3966_v13 = vor.u32 %v3965_v26, %v3962_v6  ;;  %v3599_v42 = vld [vmem:[#allocation3 + $0x5c] sm:$0x1]  ;;  %v3663_v36 = vrot.slane %v3661_v0, 4  ;;  %v3666_v53 = vrot.slane %v3664_v47, 5  ;;  %v3888_v50 = vld [vmem:[#allocation3 + $0x84] sm:$0x1] }
 0x23e   : > { %v3952_v9 = vor.u32 %v3951_v60, %v3948_v16  ;;  %v3969_v5 = vshll.u32 %v3884_v34, 16  ;;  %v3681_v4 = vor.u32 %v3680_v19, %v3677_v21  ;;  %v4593_v58 = vor.u32 %v4607_v17, %v4592_v38  ;;  %v3886_v60 = vld [vmem:[#allocation3 + $0x74] sm:$0x1]  ;;  %v4558_v38 = vld [vmem:[#allocation3 + $0x70] sm:$0xf]  ;;  %p4747_p2 = por %p4746_p1, %p4745_p0 }
 0x23f   : > { %v3728_v57 = vpack.c.b16 %v3722_v23, %v3721_v28  ;;  %v3955_v59 = vshll.u32 %v3882_v20, 16  ;;  %v3967_v2 = vrot.slane %v3966_v13, 4  ;;  %v3667_v1 = vor.u32 %v3666_v53, %v3663_v36  ;;  %v3603_v13 = vld [vmem:[#allocation3 + $0x7c] sm:$0x1] }
 0x240   : > { %v3684_v15 = vshll.u32 %v3599_v42, 16  ;;  %v3953_v31 = vrot.slane %v3952_v9, 4  ;;  %v3971_v52 = vrot.slane %v3969_v5, 5  ;;  %v3670_v39 = vshll.u32 %v3597_v35, 16  ;;  %v4647_v42 = vld [vmem:[#allocation3 + $0x7c] sm:$0xf0]  ;;  %p4748_p3 = pnand %p4747_p2, %p4743_p13 }
 0x241   : > { %4538 = vmatmul.msk.bf16.vlgmr.msra.gmra.mxu1 %vm3393_vm7, %v3727_v41  ;;  %v4646_v41 = vld [vmem:[#allocation3 + $0x5c] sm:$0xf0]  ;;  %v3682_v8 = vrot.slane %v3681_v4, 4  ;;  %v3957_v43 = vrot.slane %v3955_v59, 5  ;;  %v3988_v12 = vshrl.u32 %v3887_v30, 16  ;;  %v3991_v33 = vshll.u32 %v3887_v30, 16 }
 0x242   : > { %v4555_v61 = vor.u32 %v4646_v41, %v4554_v40  ;;  %v3972_v63 = vsel %vm5024_vm9, %v3967_v2, %v3971_v52  ;;  %v3668_v7 = vrot.slane %v3667_v1, 4  ;;  %v3686_v48 = vrot.slane %v3684_v15, 5 }
 0x243   : > { %v3958_v10 = vsel %vm5024_vm9, %v3953_v31, %v3957_v43  ;;  %v3672_v14 = vrot.slane %v3670_v39, 5  ;;  %v3974_v18 = vshrl.u32 %v3885_v3, 16  ;;  %v3977_v46 = vshll.u32 %v3885_v3, 16 }
 0x244   : > { %v4009_v29 = vunpack.c.l.b16 %v3972_v63  ;;  %v3687_v44 = vsel %vm5024_vm9, %v3682_v8, %v3686_v48  ;;  %v3990_v54 = vrot.slane %v3988_v12, 4  ;;  %v3993_v49 = vrot.slane %v3991_v33, 5 }
 0x245   : > { %4565 = vmatmul.msk.bf16.gmra.mxu2 %vm3393_vm7, %v4551_v11  ;;  %4597 = vmatmul.msk.bf16.gmra.mxu0 %vm4092_vm8, %v4593_v58  ;;  %v3602_v11 = vld [vmem:[#allocation3 + $0x78] sm:$0xf]  ;;  %v4008_v55 = vunpack.c.l.b16 %v3958_v10  ;;  %v3673_v27 = vsel %vm5024_vm9, %v3668_v7, %v3672_v14  ;;  %v3689_v37 = vshrl.u32 %v3600_v32, 16  ;;  %v3692_v51 = vshll.u32 %v3600_v32, 16 }
 0x246   : > { %v3703_v25 = vshrl.u32 %v3602_v11, 16  ;;  %v3706_v22 = vshll.u32 %v3602_v11, 16  ;;  %v3724_v56 = vunpack.c.l.b16 %v3687_v44  ;;  %v3976_v6 = vrot.slane %v3974_v18, 4 }
 0x247   : > { %v3979_v26 = vrot.slane %v3977_v46, 5  ;;  %v4014_v62 = vpack.c.b16 %v4009_v29, %v4008_v55  ;;  %v3723_v23 = vunpack.c.l.b16 %v3673_v27  ;;  %v3994_v16 = vor.u32 %v3993_v49, %v3990_v54 }
 0x248   : > { %v3705_v0 = vrot.slane %v3703_v25, 4  ;;  %v3708_v47 = vrot.slane %v3706_v22, 5  ;;  %v3694_v34 = vrot.slane %v3692_v51, 5  ;;  %v3997_v28 = vshll.u32 %v3888_v50, 16  ;;  %v3482_v12 = vpop.f32.mrf.mxu2 }
 0x249   : > { %v3729_v21 = vpack.c.b16 %v3724_v56, %v3723_v23  ;;  %v3980_v19 = vor.u32 %v3979_v26, %v3976_v6  ;;  %v3983_v36 = vshll.u32 %v3886_v60, 16  ;;  %v3995_v53 = vrot.slane %v3994_v16, 4 }
 0x24a   : > { %v3709_v20 = vor.u32 %v3708_v47, %v3705_v0  ;;  %v3712_v5 = vshll.u32 %v3603_v13, 16  ;;  %v3999_v35 = vrot.slane %v3997_v28, 5  ;;  %v4559_v4 = vor.u32 %v4647_v42, %v4558_v38  ;;  %v6258_v13 = vld [vmem:[%s6334_s5 + $0x2] ss:$0 sm:$0xff] }
 0x24b   : > { %v3981_v17 = vrot.slane %v3980_v19, 4  ;;  %v3985_v59 = vrot.slane %v3983_v36, 5 }
 0x24c   : > { %v3710_v41 = vrot.slane %v3709_v20, 4  ;;  %v4000_v2 = vsel %vm5024_vm9, %v3995_v53, %v3999_v35  ;;  %v3714_v15 = vrot.slane %v3712_v5, 5 }
 0x24d   : > { %4575 = vmatmul.msk.bf16.gmra.mxu3 %vm3393_vm7, %v4013_v45  ;;  %v3691_v45 = vrot.slane %v3689_v37, 4  ;;  %v3986_v30 = vsel %vm5024_vm9, %v3981_v17, %v3985_v59  ;;  %v4011_v40 = vunpack.c.l.b16 %v4000_v2 }
 0x24e   : > { %v3715_v52 = vsel %vm5024_vm9, %v3710_v41, %v3714_v15  ;;  %v4010_v39 = vunpack.c.l.b16 %v3986_v30  ;;  %v3415_v33 = vpop.f32.mrf.mxu1 }
 0x24f   : > { %v3695_v9 = vor.u32 %v3694_v34, %v3691_v45  ;;  %v3726_v8 = vunpack.c.l.b16 %v3715_v52 }
 0x250   : > { %v4015_v3 = vpack.c.b16 %v4011_v40, %v4010_v39  ;;  %v3560_v11 = vpop.f32.mrf.mxu3  ;;  %v3484_v7 = vpop.f32.mrf.mxu2 }
 0x251   : > { %4539 = vmatmul.msk.bf16.gmra.mxu1 %vm3393_vm7, %v3728_v57  ;;  %v3601_v57 = vld [vmem:[#allocation3 + $0x6c] sm:$0x1]  ;;  %v3696_v1 = vrot.slane %v3695_v9, 4 }
 0x252   : > { %v3698_v58 = vshll.u32 %v3601_v57, 16 }
 0x254   : > { %v3700_v31 = vrot.slane %v3698_v58, 5 }
 0x255   : > { %4566 = vmatmul.msk.bf16.gmra.mxu2 %vm3393_vm7, %v4555_v61 }
 0x256   : > { %v3701_v61 = vsel %vm5024_vm9, %v3696_v1, %v3700_v31  ;;  %v3417_v48 = vpop.f32.mrf.mxu1 }
 0x257   : > { %v3725_v43 = vunpack.c.l.b16 %v3701_v61  ;;  %v3485_v45 = vadd.f32 %v3484_v7, %v3417_v48 }
 0x258   : > { %v3562_v10 = vpop.f32.mrf.mxu3 }
 0x259   : > { %v3730_v63 = vpack.c.b16 %v3726_v8, %v3725_v43  ;;  %v3581_v20 = vadd.f32 %v3562_v10, %v3485_v45 }
 0x25d   : > { %4576 = vmatmul.msk.bf16.gmra.mxu3 %vm3393_vm7, %v4014_v62  ;;  %v3483_v62 = vadd.f32 %v3482_v12, %v3415_v33 }
 0x25f   : > { %v3580_v47 = vadd.f32 %v3560_v11, %v3483_v62 }
 0x261   : > { %4540 = vmatmul.msk.bf16.gmra.mxu1 %vm3393_vm7, %v3729_v21 }
 0x265   : > { %4567 = vmatmul.msk.bf16.gmra.mxu2 %vm3393_vm7, %v4559_v4 }
 0x268   : > { %v3487_v14 = vpop.f32.mrf.mxu2 }
 0x26d   : > { %4577 = vmatmul.msk.bf16.gmra.mxu3 %vm3393_vm7, %v4015_v3 }
 0x26e   : > { %v3420_v18 = vpop.f32.mrf.mxu1 }
 0x26f   : > { %v3488_v9 = vadd.f32 %v3487_v14, %v3420_v18 }
 0x270   : > { %v3565_v46 = vpop.f32.mrf.mxu3  ;;  %v3489_v32 = vpop.f32.mrf.mxu2 }
 0x271   : > { %4541 = vmatmul.msk.bf16.gmra.mxu1 %vm3393_vm7, %v3730_v63  ;;  %v3582_v58 = vadd.f32 %v3565_v46, %v3488_v9 }
 0x276   : > { %v3422_v24 = vpop.f32.mrf.mxu1 }
 0x277   : > { %v3490_v15 = vadd.f32 %v3489_v32, %v3422_v24 }
 0x278   : > { %v3567_v29 = vpop.f32.mrf.mxu3 }
 0x279   : > { %v3583_v61 = vadd.f32 %v3567_v29, %v3490_v15 }
 0x288   : > { %v3492_v44 = vpop.f32.mrf.mxu2 }
 0x28c   : > { %v4118_v26 = vpop.f32.mrf.mxu0 }
 0x28e   : > { %v3425_v25 = vpop.f32.mrf.mxu1 }
 0x28f   : > { %v3493_v12 = vadd.f32 %v3492_v44, %v3425_v25 }
 0x290   : > { %v3570_v22 = vpop.f32.mrf.mxu3  ;;  %v6234_v54 = vpop.f32.mrf.mxu2 }
 0x291   : > { %v3584_v10 = vadd.f32 %v3570_v22, %v3493_v12 }
 0x294   : > { %v4120_v60 = vpop.f32.mrf.mxu0 }
 0x296   : > { %v6236_v49 = vpop.f32.mrf.mxu1 }
 0x297   : > { %v3495_v29 = vadd.f32 %v6234_v54, %v6236_v49 }
 0x298   : > { %v6238_v55 = vpop.f32.mrf.mxu3 }
 0x2a2   : > { %v4123_v35 = vpop.f32.mrf.mxu0 }
 0x2a8   : > { %v6240_v27 = vpop.f32.mrf.mxu2 }
 0x2aa   : > { %v4125_v39 = vpop.f32.mrf.mxu0 }
 0x2ae   : > { %v6242_v37 = vpop.f32.mrf.mxu1 }
 0x2af   : > { %v3498_v45 = vadd.f32 %v6240_v27, %v6242_v37 }
 0x2b0   : > { %v6244_v51 = vpop.f32.mrf.mxu2  ;;  %v6246_v56 = vpop.f32.mrf.mxu3 }
 0x2b2   : > { %v4128_v18 = vpop.f32.mrf.mxu0 }
 0x2b6   : > { %v6248_v6 = vpop.f32.mrf.mxu1 }
 0x2b8   : > { %v6250_v50 = vpop.f32.mrf.mxu3  ;;  %v3845_v0 = vpop.f32.mrf.mxu2 }
 0x2be   : > { %v3758_v23 = vpop.f32.mrf.mxu1 }
 0x2bf   : > { %v3778_v16 = vadd.f32 %v3758_v23, %v3580_v47 }
 0x2c0   : > { %v3847_v34 = vpop.f32.mrf.mxu2  ;;  %v4043_v19 = vpop.f32.mrf.mxu3 }
 0x2c1   : > { %v3865_v21 = vadd.f32 %v3845_v0, %v3778_v16  ;;  %v3585_v0 = vadd.f32 %v6238_v55, %v3495_v29 }
 0x2c3   : > { %v4063_v28 = vadd.f32 %v4043_v19, %v3865_v21  ;;  %v3586_v21 = vadd.f32 %v6246_v56, %v3498_v45 }
 0x2c5   : > { %v4138_v42 = vadd.f32 %v4118_v26, %v4063_v28 }
 0x2c6   : > { %v3760_v36 = vpop.f32.mrf.mxu1 }
 0x2c7   : > { %v4147_v53 = vadd.f32 %v6258_v13, %v4138_v42  ;;  %v3779_v57 = vadd.f32 %v3760_v36, %v3581_v20  ;;  %v3500_v36 = vadd.f32 %v6244_v51, %v6248_v6 }
 0x2c8   : > { %v3850_v5 = vpop.f32.mrf.mxu2  ;;  %v4045_v17 = vpop.f32.mrf.mxu3 }
 0x2c9   : > { %4155 = vst.msk [vmem:[%s6261_s19] sm:$0xff] %vm925_vm10, %v4147_v53  ;;  %v3866_v38 = vadd.f32 %v3847_v34, %v3779_v57  ;;  %v3587_v9 = vadd.f32 %v6250_v50, %v3500_v36 }
 0x2cb   : > { %v4064_v4 = vadd.f32 %v4045_v17, %v3866_v38 }
 0x2cd   : > { %v4139_v41 = vadd.f32 %v4120_v60, %v4064_v4  ;;  %v4130_v60 = vpop.f32.mrf.mxu0 }
 0x2ce   : > { %v3763_v59 = vpop.f32.mrf.mxu1 }
 0x2cf   : > { %v4148_v2 = vadd.f32 %v6258_v13, %v4139_v41  ;;  %v3780_v1 = vadd.f32 %v3763_v59, %v3582_v58 }
 0x2d0   : > { %v3852_v30 = vpop.f32.mrf.mxu2  ;;  %v4048_v31 = vpop.f32.mrf.mxu3 }
 0x2d1   : > { %4156 = vst.msk [vmem:[%s6261_s19 + $0x8] sm:$0xff] %vm925_vm10, %v4148_v2  ;;  %v3867_v40 = vadd.f32 %v3850_v5, %v3780_v1 }
 0x2d3   : > { %v4065_v52 = vadd.f32 %v4048_v31, %v3867_v40 }
 0x2d5   : > { %v4140_v8 = vadd.f32 %v4123_v35, %v4065_v52  ;;  %v4133_v53 = vpop.f32.mrf.mxu0 }
 0x2d6   : > { %v3765_v3 = vpop.f32.mrf.mxu1 }
 0x2d7   : > { %v4149_v43 = vadd.f32 %v6258_v13, %v4140_v8  ;;  %v3781_v63 = vadd.f32 %v3765_v3, %v3583_v61 }
 0x2d8   : > { %v4050_v11 = vpop.f32.mrf.mxu3  ;;  %v3855_v7 = vpop.f32.mrf.mxu2 }
 0x2d9   : > { %4157 = vst.msk [vmem:[%s6261_s19 + $0x10] sm:$0xff] %vm925_vm10, %v4149_v43  ;;  %v3868_v33 = vadd.f32 %v3852_v30, %v3781_v63 }
 0x2db   : > { %v4066_v48 = vadd.f32 %v4050_v11, %v3868_v33 }
 0x2dd   : > { %v4141_v14 = vadd.f32 %v4125_v39, %v4066_v48  ;;  %v4135_v50 = vpop.f32.mrf.mxu0 }
 0x2de   : > { %v3768_v46 = vpop.f32.mrf.mxu1 }
 0x2df   : > { %v4150_v32 = vadd.f32 %v6258_v13, %v4141_v14  ;;  %v3782_v24 = vadd.f32 %v3768_v46, %v3584_v10 }
 0x2e0   : > { %v4053_v25 = vpop.f32.mrf.mxu3  ;;  %v3857_v62 = vpop.f32.mrf.mxu2 }
 0x2e1   : > { %4158 = vst.msk [vmem:[%s6261_s19 + $0x18] sm:$0xff] %vm925_vm10, %v4150_v32  ;;  %v3869_v44 = vadd.f32 %v3855_v7, %v3782_v24 }
 0x2e3   : > { %v4067_v26 = vadd.f32 %v4053_v25, %v3869_v44 }
 0x2e5   : > { %v4142_v47 = vadd.f32 %v4128_v18, %v4067_v26 }
 0x2e6   : > { %v3770_v22 = vpop.f32.mrf.mxu1 }
 0x2e7   : > { %v4151_v23 = vadd.f32 %v6258_v13, %v4142_v47  ;;  %v3783_v16 = vadd.f32 %v3770_v22, %v3585_v0 }
 0x2e8   : > { %v4055_v49 = vpop.f32.mrf.mxu3  ;;  %v3860_v55 = vpop.f32.mrf.mxu2 }
 0x2e9   : > { %4159 = vst.msk [vmem:[%s6261_s19 + $0x20] sm:$0xff] %vm925_vm10, %v4151_v23  ;;  %v3870_v54 = vadd.f32 %v3857_v62, %v3783_v16 }
 0x2eb   : > { %v4068_v34 = vadd.f32 %v4055_v49, %v3870_v54 }
 0x2ed   : > { %v4143_v19 = vadd.f32 %v4130_v60, %v4068_v34 }
 0x2ee   : > { %v3773_v28 = vpop.f32.mrf.mxu1 }
 0x2ef   : > { %v4152_v20 = vadd.f32 %v6258_v13, %v4143_v19  ;;  %v3784_v42 = vadd.f32 %v3773_v28, %v3586_v21 }
 0x2f0   : > { %v4058_v37 = vpop.f32.mrf.mxu3  ;;  %v3862_v35 = vpop.f32.mrf.mxu2 }
 0x2f1   : > { %4160 = vst.msk [vmem:[%s6261_s19 + $0x28] sm:$0xff] %vm925_vm10, %v4152_v20  ;;  %v3871_v27 = vadd.f32 %v3860_v55, %v3784_v42 }
 0x2f3   : > { %v4069_v57 = vadd.f32 %v4058_v37, %v3871_v27 }
 0x2f5   : > { %v4144_v56 = vadd.f32 %v4133_v53, %v4069_v57 }
 0x2f6   : > { %v3775_v5 = vpop.f32.mrf.mxu1 }
 0x2f7   : > { %v4153_v38 = vadd.f32 %v6258_v13, %v4144_v56  ;;  %v3785_v17 = vadd.f32 %v3775_v5, %v3587_v9 }
 0x2f8   : > { %v4060_v6 = vpop.f32.mrf.mxu3 }
 0x2f9   : > { %4161 = vst.msk [vmem:[%s6261_s19 + $0x30] sm:$0xff] %vm925_vm10, %v4153_v38  ;;  %v3872_v51 = vadd.f32 %v3862_v35, %v3785_v17 }
 0x2fb   : > { %v4070_v4 = vadd.f32 %v4060_v6, %v3872_v51 }
 0x2fd   : > { %v4145_v58 = vadd.f32 %v4135_v50, %v4070_v4 }
 0x2ff   : > { %v4154_v41 = vadd.f32 %v6258_v13, %v4145_v58 }
 0x301   : > { %4162 = vst.msk [vmem:[%s6261_s19 + $0x38] sm:$0xff] %vm925_vm10, %v4154_v41 }
 0x302   : > { %4751 = shalt.err (!%p4748_p3)
}
 0x303   : > { %s4789_s15 = smov 128   ;;  %s4790_s19 = smov 8  }
 0x304   : > { %4674 = dma.vmem_to_hbm [thread:$0]  (%p4864_p5), %s4177_s9, 1024, %s4179_s10, %s4164_s25, %s4789_s15, %s4789_s15, %s4790_s19  }
 0x305 PF: > { %p4680_p4 = scmp.ge.s32.totalorder %s4786_s24, 2  ;;  %s4193_s20 = sand.u32 1, %s4774_s21  }
 0x306   : > { %s4194_s26 = scalar_lea.sflag [#allocation5], %s4193_s20 }
 0x307   : > { %p4677_p7 = pnand %p4680_p4, %p4868_p6 }
 0x309   : > { %p4678_p8 = pneg %p4677_p7 }
 0x30b   : > { %4769 = dma.done.wait (%p4678_p8), %s4194_s26, 1024  }
 0x30c   : > { %4771 = vsyncadd (%p4678_p8), %s4194_s26, 4294966272  ;;  %p16_p9 = scmp.ge.s32.totalorder %s4851_s27, 4   ;;  %s6350_s21 = smov %s4778_s22 }
 0x30d   : > { %s6351_s22 = smov %s4782_s23  ;;  %s6352_s23 = smov %s4862_s30 }
 0x30e   : > { %s6353_s24 = smov %s4851_s27  ;;  %18 = sbr.rel (!%p16_p9) target bundleno = 3 (0x3), region = 96 }
 0x313   :  { %4200 = vsyncpa [#allocation5], 1 }
 0x314   :  { %4202 = vsyncpa [#allocation5 + $0x1], 1 }

</bundles_post_ra>
